<compile_context>
chip_gen: v6e
topology: v6e:2x2x1
jax: 0.10.0
libtpu: 0.0.40
codegen_flags: <defaults>
</compile_context>

<pallas_src>
import numpy as np
import jax
import jax.numpy as jnp
from jax.experimental import pallas as pl
from jax.experimental.pallas import tpu as pltpu

KS = 5
STRIDE = 2
BN_EPS = 1e-5
CHANNELS = (16, 32, 32)


def _conv_out(s):
    return (s - KS) // STRIDE + 1


def _layer_dims(height, width, steps):
    dims = []
    h, w, cin = height, width, steps
    for cout in CHANNELS:
        ho, wo = _conv_out(h), _conv_out(w)
        dims.append(dict(h=h, w=w, cin=cin, ho=ho, wo=wo, cout=cout))
        h, w, cin = ho, wo, cout
    return dims


# ---------------------------------------------------------------------------
# Host-side (one-time) constant / weight preprocessing
# ---------------------------------------------------------------------------
def _expand_conv_weight(w_torch, w_in):
    """(Cout, Cin, ks, ks) torch conv weight -> (ks, W_in*Cin, Wo*Cout).

    Row-matmul form of the stride-2 conv in NHWC-row layout
    (activation rows = (n, h), lanes = (w, c)):
        out[(n,i), (j,co)] = sum_kh  A[(n, 2i+kh), :] @ Wexp[kh]
    with Wexp[kh][w*Cin + c, j*Cout + co] = w_torch[co, c, kh, w - 2j]
    (zero outside 0 <= w - 2j < ks).
    """
    cout, cin, ks, _ = w_torch.shape
    wo = _conv_out(w_in)
    wexp = np.zeros((ks, w_in * cin, wo * cout), np.float32)
    for kh in range(ks):
        for j in range(wo):
            for kw in range(ks):
                ws = STRIDE * j + kw
                wexp[kh, ws * cin:(ws + 1) * cin, j * cout:(j + 1) * cout] = (
                    w_torch[:, :, kh, kw].T)
    return wexp


def _row_select(n, h_in, h_out):
    """(ks, n*h_out, n*h_in) 0/1 matrices: S[kh] @ A picks rows (b, 2i+kh)."""
    s = np.zeros((KS, n * h_out, n * h_in), np.float32)
    for kh in range(KS):
        for b in range(n):
            for i in range(h_out):
                s[kh, b * h_out + i, b * h_in + STRIDE * i + kh] = 1.0
    return s


def _channel_pool(wo, c):
    """(wo*c, c) 0/1 matrix: sums the wo lane blocks -> per-channel sums."""
    return np.tile(np.eye(c, dtype=np.float32), (wo, 1))


def _fc_select(n, h_out):
    """(h_out, n, n*h_out) 0/1 matrices: Sfc[i] @ A3 picks row (b, i) per b."""
    s = np.zeros((h_out, n, n * h_out), np.float32)
    for i in range(h_out):
        for b in range(n):
            s[i, b, b * h_out + i] = 1.0
    return s


# ---------------------------------------------------------------------------
# Parameters (PyTorch layouts) + one-time conversion to kernel operands
# ---------------------------------------------------------------------------
def init_params(key, in_dim, out_dim):
    """PyTorch-layout parameters (Conv2d weight (Cout,Cin,ks,ks), Linear (out,in)).

    Conv biases are intentionally omitted: each conv is immediately followed by
    BatchNorm2d in training mode (batch statistics), which subtracts the
    per-channel mean, so a conv bias has exactly zero effect on the output.
    """
    steps, width, height = in_dim
    dims = _layer_dims(height, width, steps)
    linear_size = dims[-1]["ho"] * dims[-1]["wo"] * dims[-1]["cout"]
    keys = jax.random.split(key, len(CHANNELS) + 2)
    params = {}
    cin = steps
    for i, cout in enumerate(CHANNELS, start=1):
        bound = 1.0 / np.sqrt(cin * KS * KS)
        params[f"conv{i}_w"] = jax.random.uniform(
            keys[i - 1], (cout, cin, KS, KS), jnp.float32, -bound, bound)
        params[f"bn{i}_gamma"] = jnp.ones((1, cout), jnp.float32)
        params[f"bn{i}_beta"] = jnp.zeros((1, cout), jnp.float32)
        cin = cout
    bound = 1.0 / np.sqrt(linear_size)
    params["fc_w"] = jax.random.uniform(
        keys[-2], (out_dim, linear_size), jnp.float32, -bound, bound)
    params["fc_b"] = jax.random.uniform(
        keys[-1], (1, out_dim), jnp.float32, -bound, bound)
    return params


def prepare_params(params, in_dim, out_dim, batch):
    """One-time host-side conversion to the operands the fused kernel consumes."""
    steps, width, height = in_dim
    dims = _layer_dims(height, width, steps)
    ops = []
    for li, d in enumerate(dims, start=1):
        w_t = np.asarray(params[f"conv{li}_w"], np.float32)
        ops.append(jnp.asarray(_expand_conv_weight(w_t, d["w"]), jnp.bfloat16))
        ops.append(jnp.asarray(_row_select(batch, d["h"], d["ho"]), jnp.float32))
        p = _channel_pool(d["wo"], d["cout"])
        ops.append(jnp.asarray(p, jnp.float32))      # (wo*c, c)  per-channel sum
        ops.append(jnp.asarray(p.T, jnp.float32))    # (c, wo*c)  broadcast back
        ops.append(params[f"bn{li}_gamma"])
        ops.append(params[f"bn{li}_beta"])
    d3 = dims[-1]
    ops.append(jnp.asarray(_fc_select(batch, d3["ho"]), jnp.float32))
    # PyTorch flattens NCHW (c, i, j); kernel activations are NHWC rows=(n, i),
    # lanes=(j, c).  Pre-permute the FC weight once so results match exactly.
    wfc = np.asarray(params["fc_w"], np.float32).reshape(
        out_dim, d3["cout"], d3["ho"], d3["wo"])
    wfc = wfc.transpose(2, 3, 1, 0).reshape(
        d3["ho"] * d3["wo"] * d3["cout"], out_dim)
    ops.append(jnp.asarray(wfc, jnp.float32))
    ops.append(params["fc_b"])
    return ops


# ---------------------------------------------------------------------------
# Fused Pallas kernel: 3x (conv + BN + ReLU) + Linear, all in one invocation
# ---------------------------------------------------------------------------
def _build_kernel(dims, batch, out_dim):
    n_layers = len(dims)

    def kernel(*refs):
        x_ref = refs[0]
        layer_refs = refs[1:1 + 6 * n_layers]
        sfc_ref, wfc_ref, bfc_ref, o_ref = refs[1 + 6 * n_layers:]

        a = x_ref[...]                               # (N*H, W*C) f32, NHWC rows
        for li, d in enumerate(dims):
            (wexp_ref, srow_ref, p_ref, pt_ref,
             g_ref, beta_ref) = layer_refs[6 * li:6 * li + 6]
            ho, wo, cout = d["ho"], d["wo"], d["cout"]

            # Conv: 5 lane-dense MXU matmuls (stride-2 row gather done as a
            # 0/1 selection matmul; weights pre-expanded on the host, bf16).
            acc = None
            for kh in range(KS):
                rows = jnp.dot(srow_ref[kh], a,
                               preferred_element_type=jnp.float32)
                term = jnp.dot(rows.astype(jnp.bfloat16), wexp_ref[kh],
                               preferred_element_type=jnp.float32)
                acc = term if acc is None else acc + term

            # BatchNorm2d (training-mode batch stats), folded one-pass form:
            #   scale = gamma * rsqrt(E[y^2] - E[y]^2 + eps)
            #   shift = beta - E[y] * scale ;  y_hat = y * scale + shift
            inv_m = 1.0 / float(batch * ho * wo)
            col_s1 = jnp.sum(acc, axis=0, keepdims=True)          # (1, wo*cout)
            col_s2 = jnp.sum(acc * acc, axis=0, keepdims=True)
            mean = jnp.dot(col_s1, p_ref[...],
                           preferred_element_type=jnp.float32) * inv_m
            ex2 = jnp.dot(col_s2, p_ref[...],
                          preferred_element_type=jnp.float32) * inv_m
            var = ex2 - mean * mean                                # (1, cout)
            scale = g_ref[...] * jax.lax.rsqrt(var + BN_EPS)
            shift = beta_ref[...] - mean * scale
            scale_w = jnp.dot(scale, pt_ref[...],
                              preferred_element_type=jnp.float32)  # (1, wo*cout)
            shift_w = jnp.dot(shift, pt_ref[...],
                              preferred_element_type=jnp.float32)
            a = jnp.maximum(acc * scale_w + shift_w, 0.0)          # ReLU

        # Final Linear; the NCHW flatten is folded into per-row weight blocks.
        d3 = dims[-1]
        blk = d3["wo"] * d3["cout"]
        out = None
        for i in range(d3["ho"]):
            rows = jnp.dot(sfc_ref[i], a, preferred_element_type=jnp.float32)
            term = jnp.dot(rows, wfc_ref[i * blk:(i + 1) * blk, :],
                           preferred_element_type=jnp.float32)
            out = term if out is None else out + term
        o_ref[...] = out + bfc_ref[...]

    return kernel


@jax.jit
def critic_forward(x, prepared):
    """x: (N, steps, H, W) float32 (NCHW, PyTorch convention)."""
    n, c, h, w = x.shape
    dims = _layer_dims(h, w, c)
    out_dim = prepared[-2].shape[1]
    # Layout plumbing only (tiny input): NCHW -> NHWC -> (N*H, W*C).
    # Activations keep this lane-dense layout for the entire fused kernel.
    x2d = jnp.transpose(x, (0, 2, 3, 1)).reshape(n * h, w * c)

    kernel = _build_kernel(dims, n, out_dim)
    num_inputs = 1 + len(prepared)
    out = pl.pallas_call(
        kernel,
        out_shape=jax.ShapeDtypeStruct((n, out_dim), jnp.float32),
        in_specs=[pl.BlockSpec(memory_space=pltpu.MemorySpace.VMEM)] * num_inputs,
        out_specs=pl.BlockSpec(memory_space=pltpu.MemorySpace.VMEM),
    )(x2d, *prepared)
    return jnp.squeeze(out)  # matches the PyTorch .squeeze()


# ---------------------------------------------------------------------------
if __name__ == "__main__":
    # in_dim = (steps, width, height); 40x40 is the smallest "nice" size that
    # survives 3x (ks=5, stride=2) -> 18 -> 7 -> 2, linear_size = 2*2*32 = 128.
    steps, width, height = 4, 40, 40
    in_dim = (steps, width, height)
    out_dim = 1
    batch = 2

    key = jax.random.PRNGKey(0)
    k_x, k_p = jax.random.split(key)
    x = jax.random.normal(k_x, (batch, steps, height, width), jnp.float32)

    params = init_params(k_p, in_dim, out_dim)
    prepared = prepare_params(params, in_dim, out_dim, batch)

    out = critic_forward(x, prepared)
    out = jax.block_until_ready(out)
    assert out.shape == (batch,), out.shape
    assert bool(jnp.all(jnp.isfinite(out)))
    print("KERNEL_OK")
</pallas_src>

<mosaic_0001>
module attributes {stable_mosaic.version = 11 : i64} {
  func.func @kernel(%arg0: memref<80x160xf32, #tpu.memory_space<vmem>>, %arg1: memref<5x160x288xbf16, #tpu.memory_space<vmem>>, %arg2: memref<5x36x80xf32, #tpu.memory_space<vmem>>, %arg3: memref<288x16xf32, #tpu.memory_space<vmem>>, %arg4: memref<16x288xf32, #tpu.memory_space<vmem>>, %arg5: memref<1x16xf32, #tpu.memory_space<vmem>>, %arg6: memref<1x16xf32, #tpu.memory_space<vmem>>, %arg7: memref<5x288x224xbf16, #tpu.memory_space<vmem>>, %arg8: memref<5x14x36xf32, #tpu.memory_space<vmem>>, %arg9: memref<224x32xf32, #tpu.memory_space<vmem>>, %arg10: memref<32x224xf32, #tpu.memory_space<vmem>>, %arg11: memref<1x32xf32, #tpu.memory_space<vmem>>, %arg12: memref<1x32xf32, #tpu.memory_space<vmem>>, %arg13: memref<5x224x64xbf16, #tpu.memory_space<vmem>>, %arg14: memref<5x4x14xf32, #tpu.memory_space<vmem>>, %arg15: memref<64x32xf32, #tpu.memory_space<vmem>>, %arg16: memref<32x64xf32, #tpu.memory_space<vmem>>, %arg17: memref<1x32xf32, #tpu.memory_space<vmem>>, %arg18: memref<1x32xf32, #tpu.memory_space<vmem>>, %arg19: memref<2x2x4xf32, #tpu.memory_space<vmem>>, %arg20: memref<128x1xf32, #tpu.memory_space<vmem>>, %arg21: memref<1x1xf32, #tpu.memory_space<vmem>>, %arg22: memref<2x1xf32, #tpu.memory_space<vmem>>) attributes {dimension_semantics = [], scalar_prefetch = 0 : i64, scratch_operands = 0 : i64, tpu.core_type = #tpu.core_type<tc>} {
    %c0 = arith.constant 0 : index
    %c0_0 = arith.constant 0 : index
    %0 = vector.load %arg0[%c0, %c0_0] : memref<80x160xf32, #tpu.memory_space<vmem>>, vector<80x160xf32>
    %c0_1 = arith.constant 0 : index
    %c0_2 = arith.constant 0 : index
    %c0_3 = arith.constant 0 : index
    %1 = vector.load %arg2[%c0_1, %c0_2, %c0_3] : memref<5x36x80xf32, #tpu.memory_space<vmem>>, vector<1x36x80xf32>
    %2 = vector.shape_cast %1 : vector<1x36x80xf32> to vector<36x80xf32>
    %cst = arith.constant dense<0.000000e+00> : vector<36x160xf32>
    %3 = tpu.matmul %2, %0, %cst {dimension_numbers = #tpu.dot_dimension_numbers<[1], [0], [0], [1], [0, 0, 1, 1], [], []>} : vector<36x80xf32>, vector<80x160xf32>, vector<36x160xf32> -> vector<36x160xf32>
    %4 = arith.truncf %3 : vector<36x160xf32> to vector<36x160xbf16>
    %c0_4 = arith.constant 0 : index
    %c0_5 = arith.constant 0 : index
    %c0_6 = arith.constant 0 : index
    %5 = vector.load %arg1[%c0_4, %c0_5, %c0_6] : memref<5x160x288xbf16, #tpu.memory_space<vmem>>, vector<1x160x288xbf16>
    %6 = vector.shape_cast %5 : vector<1x160x288xbf16> to vector<160x288xbf16>
    %cst_7 = arith.constant dense<0.000000e+00> : vector<36x288xf32>
    %7 = tpu.matmul %4, %6, %cst_7 {dimension_numbers = #tpu.dot_dimension_numbers<[1], [0], [0], [1], [0, 0, 1, 1], [], []>} : vector<36x160xbf16>, vector<160x288xbf16>, vector<36x288xf32> -> vector<36x288xf32>
    %c1 = arith.constant 1 : index
    %c0_8 = arith.constant 0 : index
    %c0_9 = arith.constant 0 : index
    %8 = vector.load %arg2[%c1, %c0_8, %c0_9] : memref<5x36x80xf32, #tpu.memory_space<vmem>>, vector<1x36x80xf32>
    %9 = vector.shape_cast %8 : vector<1x36x80xf32> to vector<36x80xf32>
    %cst_10 = arith.constant dense<0.000000e+00> : vector<36x160xf32>
    %10 = tpu.matmul %9, %0, %cst_10 {dimension_numbers = #tpu.dot_dimension_numbers<[1], [0], [0], [1], [0, 0, 1, 1], [], []>} : vector<36x80xf32>, vector<80x160xf32>, vector<36x160xf32> -> vector<36x160xf32>
    %11 = arith.truncf %10 : vector<36x160xf32> to vector<36x160xbf16>
    %c1_11 = arith.constant 1 : index
    %c0_12 = arith.constant 0 : index
    %c0_13 = arith.constant 0 : index
    %12 = vector.load %arg1[%c1_11, %c0_12, %c0_13] : memref<5x160x288xbf16, #tpu.memory_space<vmem>>, vector<1x160x288xbf16>
    %13 = vector.shape_cast %12 : vector<1x160x288xbf16> to vector<160x288xbf16>
    %cst_14 = arith.constant dense<0.000000e+00> : vector<36x288xf32>
    %14 = tpu.matmul %11, %13, %cst_14 {dimension_numbers = #tpu.dot_dimension_numbers<[1], [0], [0], [1], [0, 0, 1, 1], [], []>} : vector<36x160xbf16>, vector<160x288xbf16>, vector<36x288xf32> -> vector<36x288xf32>
    %15 = arith.addf %7, %14 : vector<36x288xf32>
    %c2 = arith.constant 2 : index
    %c0_15 = arith.constant 0 : index
    %c0_16 = arith.constant 0 : index
    %16 = vector.load %arg2[%c2, %c0_15, %c0_16] : memref<5x36x80xf32, #tpu.memory_space<vmem>>, vector<1x36x80xf32>
    %17 = vector.shape_cast %16 : vector<1x36x80xf32> to vector<36x80xf32>
    %cst_17 = arith.constant dense<0.000000e+00> : vector<36x160xf32>
    %18 = tpu.matmul %17, %0, %cst_17 {dimension_numbers = #tpu.dot_dimension_numbers<[1], [0], [0], [1], [0, 0, 1, 1], [], []>} : vector<36x80xf32>, vector<80x160xf32>, vector<36x160xf32> -> vector<36x160xf32>
    %19 = arith.truncf %18 : vector<36x160xf32> to vector<36x160xbf16>
    %c2_18 = arith.constant 2 : index
    %c0_19 = arith.constant 0 : index
    %c0_20 = arith.constant 0 : index
    %20 = vector.load %arg1[%c2_18, %c0_19, %c0_20] : memref<5x160x288xbf16, #tpu.memory_space<vmem>>, vector<1x160x288xbf16>
    %21 = vector.shape_cast %20 : vector<1x160x288xbf16> to vector<160x288xbf16>
    %cst_21 = arith.constant dense<0.000000e+00> : vector<36x288xf32>
    %22 = tpu.matmul %19, %21, %cst_21 {dimension_numbers = #tpu.dot_dimension_numbers<[1], [0], [0], [1], [0, 0, 1, 1], [], []>} : vector<36x160xbf16>, vector<160x288xbf16>, vector<36x288xf32> -> vector<36x288xf32>
    %23 = arith.addf %15, %22 : vector<36x288xf32>
    %c3 = arith.constant 3 : index
    %c0_22 = arith.constant 0 : index
    %c0_23 = arith.constant 0 : index
    %24 = vector.load %arg2[%c3, %c0_22, %c0_23] : memref<5x36x80xf32, #tpu.memory_space<vmem>>, vector<1x36x80xf32>
    %25 = vector.shape_cast %24 : vector<1x36x80xf32> to vector<36x80xf32>
    %cst_24 = arith.constant dense<0.000000e+00> : vector<36x160xf32>
    %26 = tpu.matmul %25, %0, %cst_24 {dimension_numbers = #tpu.dot_dimension_numbers<[1], [0], [0], [1], [0, 0, 1, 1], [], []>} : vector<36x80xf32>, vector<80x160xf32>, vector<36x160xf32> -> vector<36x160xf32>
    %27 = arith.truncf %26 : vector<36x160xf32> to vector<36x160xbf16>
    %c3_25 = arith.constant 3 : index
    %c0_26 = arith.constant 0 : index
    %c0_27 = arith.constant 0 : index
    %28 = vector.load %arg1[%c3_25, %c0_26, %c0_27] : memref<5x160x288xbf16, #tpu.memory_space<vmem>>, vector<1x160x288xbf16>
    %29 = vector.shape_cast %28 : vector<1x160x288xbf16> to vector<160x288xbf16>
    %cst_28 = arith.constant dense<0.000000e+00> : vector<36x288xf32>
    %30 = tpu.matmul %27, %29, %cst_28 {dimension_numbers = #tpu.dot_dimension_numbers<[1], [0], [0], [1], [0, 0, 1, 1], [], []>} : vector<36x160xbf16>, vector<160x288xbf16>, vector<36x288xf32> -> vector<36x288xf32>
    %31 = arith.addf %23, %30 : vector<36x288xf32>
    %c4 = arith.constant 4 : index
    %c0_29 = arith.constant 0 : index
    %c0_30 = arith.constant 0 : index
    %32 = vector.load %arg2[%c4, %c0_29, %c0_30] : memref<5x36x80xf32, #tpu.memory_space<vmem>>, vector<1x36x80xf32>
    %33 = vector.shape_cast %32 : vector<1x36x80xf32> to vector<36x80xf32>
    %cst_31 = arith.constant dense<0.000000e+00> : vector<36x160xf32>
    %34 = tpu.matmul %33, %0, %cst_31 {dimension_numbers = #tpu.dot_dimension_numbers<[1], [0], [0], [1], [0, 0, 1, 1], [], []>} : vector<36x80xf32>, vector<80x160xf32>, vector<36x160xf32> -> vector<36x160xf32>
    %35 = arith.truncf %34 : vector<36x160xf32> to vector<36x160xbf16>
    %c4_32 = arith.constant 4 : index
    %c0_33 = arith.constant 0 : index
    %c0_34 = arith.constant 0 : index
    %36 = vector.load %arg1[%c4_32, %c0_33, %c0_34] : memref<5x160x288xbf16, #tpu.memory_space<vmem>>, vector<1x160x288xbf16>
    %37 = vector.shape_cast %36 : vector<1x160x288xbf16> to vector<160x288xbf16>
    %cst_35 = arith.constant dense<0.000000e+00> : vector<36x288xf32>
    %38 = tpu.matmul %35, %37, %cst_35 {dimension_numbers = #tpu.dot_dimension_numbers<[1], [0], [0], [1], [0, 0, 1, 1], [], []>} : vector<36x160xbf16>, vector<160x288xbf16>, vector<36x288xf32> -> vector<36x288xf32>
    %39 = arith.addf %31, %38 : vector<36x288xf32>
    %cst_36 = arith.constant dense<0.000000e+00> : vector<288xf32>
    %40 = vector.multi_reduction <add>, %39, %cst_36 [0] : vector<36x288xf32> to vector<288xf32>
    %41 = vector.shape_cast %40 : vector<288xf32> to vector<1x288xf32>
    %42 = arith.mulf %39, %39 : vector<36x288xf32>
    %cst_37 = arith.constant dense<0.000000e+00> : vector<288xf32>
    %43 = vector.multi_reduction <add>, %42, %cst_37 [0] : vector<36x288xf32> to vector<288xf32>
    %44 = vector.shape_cast %43 : vector<288xf32> to vector<1x288xf32>
    %c0_38 = arith.constant 0 : index
    %c0_39 = arith.constant 0 : index
    %45 = vector.load %arg3[%c0_38, %c0_39] : memref<288x16xf32, #tpu.memory_space<vmem>>, vector<288x16xf32>
    %cst_40 = arith.constant dense<0.000000e+00> : vector<1x16xf32>
    %46 = tpu.matmul %41, %45, %cst_40 {dimension_numbers = #tpu.dot_dimension_numbers<[1], [0], [0], [1], [0, 0, 1, 1], [], []>} : vector<1x288xf32>, vector<288x16xf32>, vector<1x16xf32> -> vector<1x16xf32>
    %cst_41 = arith.constant 0.00154320989 : f32
    %47 = vector.broadcast %cst_41 : f32 to vector<1x16xf32>
    %48 = arith.mulf %46, %47 : vector<1x16xf32>
    %c0_42 = arith.constant 0 : index
    %c0_43 = arith.constant 0 : index
    %49 = vector.load %arg3[%c0_42, %c0_43] : memref<288x16xf32, #tpu.memory_space<vmem>>, vector<288x16xf32>
    %cst_44 = arith.constant dense<0.000000e+00> : vector<1x16xf32>
    %50 = tpu.matmul %44, %49, %cst_44 {dimension_numbers = #tpu.dot_dimension_numbers<[1], [0], [0], [1], [0, 0, 1, 1], [], []>} : vector<1x288xf32>, vector<288x16xf32>, vector<1x16xf32> -> vector<1x16xf32>
    %cst_45 = arith.constant 0.00154320989 : f32
    %51 = vector.broadcast %cst_45 : f32 to vector<1x16xf32>
    %52 = arith.mulf %50, %51 : vector<1x16xf32>
    %53 = arith.mulf %48, %48 : vector<1x16xf32>
    %54 = arith.subf %52, %53 : vector<1x16xf32>
    %c0_46 = arith.constant 0 : index
    %c0_47 = arith.constant 0 : index
    %55 = vector.load %arg5[%c0_46, %c0_47] : memref<1x16xf32, #tpu.memory_space<vmem>>, vector<1x16xf32>
    %cst_48 = arith.constant 9.99999974E-6 : f32
    %56 = vector.broadcast %cst_48 : f32 to vector<1x16xf32>
    %57 = arith.addf %54, %56 : vector<1x16xf32>
    %58 = math.rsqrt %57 : vector<1x16xf32>
    %59 = arith.mulf %55, %58 : vector<1x16xf32>
    %c0_49 = arith.constant 0 : index
    %c0_50 = arith.constant 0 : index
    %60 = vector.load %arg6[%c0_49, %c0_50] : memref<1x16xf32, #tpu.memory_space<vmem>>, vector<1x16xf32>
    %61 = arith.mulf %48, %59 : vector<1x16xf32>
    %62 = arith.subf %60, %61 : vector<1x16xf32>
    %c0_51 = arith.constant 0 : index
    %c0_52 = arith.constant 0 : index
    %63 = vector.load %arg4[%c0_51, %c0_52] : memref<16x288xf32, #tpu.memory_space<vmem>>, vector<16x288xf32>
    %cst_53 = arith.constant dense<0.000000e+00> : vector<1x288xf32>
    %64 = tpu.matmul %59, %63, %cst_53 {dimension_numbers = #tpu.dot_dimension_numbers<[1], [0], [0], [1], [0, 0, 1, 1], [], []>} : vector<1x16xf32>, vector<16x288xf32>, vector<1x288xf32> -> vector<1x288xf32>
    %c0_54 = arith.constant 0 : index
    %c0_55 = arith.constant 0 : index
    %65 = vector.load %arg4[%c0_54, %c0_55] : memref<16x288xf32, #tpu.memory_space<vmem>>, vector<16x288xf32>
    %cst_56 = arith.constant dense<0.000000e+00> : vector<1x288xf32>
    %66 = tpu.matmul %62, %65, %cst_56 {dimension_numbers = #tpu.dot_dimension_numbers<[1], [0], [0], [1], [0, 0, 1, 1], [], []>} : vector<1x16xf32>, vector<16x288xf32>, vector<1x288xf32> -> vector<1x288xf32>
    %67 = vector.broadcast %64 : vector<1x288xf32> to vector<36x288xf32>
    %68 = arith.mulf %39, %67 : vector<36x288xf32>
    %69 = vector.broadcast %66 : vector<1x288xf32> to vector<36x288xf32>
    %70 = arith.addf %68, %69 : vector<36x288xf32>
    %cst_57 = arith.constant 0.000000e+00 : f32
    %71 = vector.broadcast %cst_57 : f32 to vector<36x288xf32>
    %72 = arith.maximumf %70, %71 : vector<36x288xf32>
    %c0_58 = arith.constant 0 : index
    %c0_59 = arith.constant 0 : index
    %c0_60 = arith.constant 0 : index
    %73 = vector.load %arg8[%c0_58, %c0_59, %c0_60] : memref<5x14x36xf32, #tpu.memory_space<vmem>>, vector<1x14x36xf32>
    %74 = vector.shape_cast %73 : vector<1x14x36xf32> to vector<14x36xf32>
    %cst_61 = arith.constant dense<0.000000e+00> : vector<14x288xf32>
    %75 = tpu.matmul %74, %72, %cst_61 {dimension_numbers = #tpu.dot_dimension_numbers<[1], [0], [0], [1], [0, 0, 1, 1], [], []>} : vector<14x36xf32>, vector<36x288xf32>, vector<14x288xf32> -> vector<14x288xf32>
    %76 = arith.truncf %75 : vector<14x288xf32> to vector<14x288xbf16>
    %c0_62 = arith.constant 0 : index
    %c0_63 = arith.constant 0 : index
    %c0_64 = arith.constant 0 : index
    %77 = vector.load %arg7[%c0_62, %c0_63, %c0_64] : memref<5x288x224xbf16, #tpu.memory_space<vmem>>, vector<1x288x224xbf16>
    %78 = vector.shape_cast %77 : vector<1x288x224xbf16> to vector<288x224xbf16>
    %cst_65 = arith.constant dense<0.000000e+00> : vector<14x224xf32>
    %79 = tpu.matmul %76, %78, %cst_65 {dimension_numbers = #tpu.dot_dimension_numbers<[1], [0], [0], [1], [0, 0, 1, 1], [], []>} : vector<14x288xbf16>, vector<288x224xbf16>, vector<14x224xf32> -> vector<14x224xf32>
    %c1_66 = arith.constant 1 : index
    %c0_67 = arith.constant 0 : index
    %c0_68 = arith.constant 0 : index
    %80 = vector.load %arg8[%c1_66, %c0_67, %c0_68] : memref<5x14x36xf32, #tpu.memory_space<vmem>>, vector<1x14x36xf32>
    %81 = vector.shape_cast %80 : vector<1x14x36xf32> to vector<14x36xf32>
    %cst_69 = arith.constant dense<0.000000e+00> : vector<14x288xf32>
    %82 = tpu.matmul %81, %72, %cst_69 {dimension_numbers = #tpu.dot_dimension_numbers<[1], [0], [0], [1], [0, 0, 1, 1], [], []>} : vector<14x36xf32>, vector<36x288xf32>, vector<14x288xf32> -> vector<14x288xf32>
    %83 = arith.truncf %82 : vector<14x288xf32> to vector<14x288xbf16>
    %c1_70 = arith.constant 1 : index
    %c0_71 = arith.constant 0 : index
    %c0_72 = arith.constant 0 : index
    %84 = vector.load %arg7[%c1_70, %c0_71, %c0_72] : memref<5x288x224xbf16, #tpu.memory_space<vmem>>, vector<1x288x224xbf16>
    %85 = vector.shape_cast %84 : vector<1x288x224xbf16> to vector<288x224xbf16>
    %cst_73 = arith.constant dense<0.000000e+00> : vector<14x224xf32>
    %86 = tpu.matmul %83, %85, %cst_73 {dimension_numbers = #tpu.dot_dimension_numbers<[1], [0], [0], [1], [0, 0, 1, 1], [], []>} : vector<14x288xbf16>, vector<288x224xbf16>, vector<14x224xf32> -> vector<14x224xf32>
    %87 = arith.addf %79, %86 : vector<14x224xf32>
    %c2_74 = arith.constant 2 : index
    %c0_75 = arith.constant 0 : index
    %c0_76 = arith.constant 0 : index
    %88 = vector.load %arg8[%c2_74, %c0_75, %c0_76] : memref<5x14x36xf32, #tpu.memory_space<vmem>>, vector<1x14x36xf32>
    %89 = vector.shape_cast %88 : vector<1x14x36xf32> to vector<14x36xf32>
    %cst_77 = arith.constant dense<0.000000e+00> : vector<14x288xf32>
    %90 = tpu.matmul %89, %72, %cst_77 {dimension_numbers = #tpu.dot_dimension_numbers<[1], [0], [0], [1], [0, 0, 1, 1], [], []>} : vector<14x36xf32>, vector<36x288xf32>, vector<14x288xf32> -> vector<14x288xf32>
    %91 = arith.truncf %90 : vector<14x288xf32> to vector<14x288xbf16>
    %c2_78 = arith.constant 2 : index
    %c0_79 = arith.constant 0 : index
    %c0_80 = arith.constant 0 : index
    %92 = vector.load %arg7[%c2_78, %c0_79, %c0_80] : memref<5x288x224xbf16, #tpu.memory_space<vmem>>, vector<1x288x224xbf16>
    %93 = vector.shape_cast %92 : vector<1x288x224xbf16> to vector<288x224xbf16>
    %cst_81 = arith.constant dense<0.000000e+00> : vector<14x224xf32>
    %94 = tpu.matmul %91, %93, %cst_81 {dimension_numbers = #tpu.dot_dimension_numbers<[1], [0], [0], [1], [0, 0, 1, 1], [], []>} : vector<14x288xbf16>, vector<288x224xbf16>, vector<14x224xf32> -> vector<14x224xf32>
    %95 = arith.addf %87, %94 : vector<14x224xf32>
    %c3_82 = arith.constant 3 : index
    %c0_83 = arith.constant 0 : index
    %c0_84 = arith.constant 0 : index
    %96 = vector.load %arg8[%c3_82, %c0_83, %c0_84] : memref<5x14x36xf32, #tpu.memory_space<vmem>>, vector<1x14x36xf32>
    %97 = vector.shape_cast %96 : vector<1x14x36xf32> to vector<14x36xf32>
    %cst_85 = arith.constant dense<0.000000e+00> : vector<14x288xf32>
    %98 = tpu.matmul %97, %72, %cst_85 {dimension_numbers = #tpu.dot_dimension_numbers<[1], [0], [0], [1], [0, 0, 1, 1], [], []>} : vector<14x36xf32>, vector<36x288xf32>, vector<14x288xf32> -> vector<14x288xf32>
    %99 = arith.truncf %98 : vector<14x288xf32> to vector<14x288xbf16>
    %c3_86 = arith.constant 3 : index
    %c0_87 = arith.constant 0 : index
    %c0_88 = arith.constant 0 : index
    %100 = vector.load %arg7[%c3_86, %c0_87, %c0_88] : memref<5x288x224xbf16, #tpu.memory_space<vmem>>, vector<1x288x224xbf16>
    %101 = vector.shape_cast %100 : vector<1x288x224xbf16> to vector<288x224xbf16>
    %cst_89 = arith.constant dense<0.000000e+00> : vector<14x224xf32>
    %102 = tpu.matmul %99, %101, %cst_89 {dimension_numbers = #tpu.dot_dimension_numbers<[1], [0], [0], [1], [0, 0, 1, 1], [], []>} : vector<14x288xbf16>, vector<288x224xbf16>, vector<14x224xf32> -> vector<14x224xf32>
    %103 = arith.addf %95, %102 : vector<14x224xf32>
    %c4_90 = arith.constant 4 : index
    %c0_91 = arith.constant 0 : index
    %c0_92 = arith.constant 0 : index
    %104 = vector.load %arg8[%c4_90, %c0_91, %c0_92] : memref<5x14x36xf32, #tpu.memory_space<vmem>>, vector<1x14x36xf32>
    %105 = vector.shape_cast %104 : vector<1x14x36xf32> to vector<14x36xf32>
    %cst_93 = arith.constant dense<0.000000e+00> : vector<14x288xf32>
    %106 = tpu.matmul %105, %72, %cst_93 {dimension_numbers = #tpu.dot_dimension_numbers<[1], [0], [0], [1], [0, 0, 1, 1], [], []>} : vector<14x36xf32>, vector<36x288xf32>, vector<14x288xf32> -> vector<14x288xf32>
    %107 = arith.truncf %106 : vector<14x288xf32> to vector<14x288xbf16>
    %c4_94 = arith.constant 4 : index
    %c0_95 = arith.constant 0 : index
    %c0_96 = arith.constant 0 : index
    %108 = vector.load %arg7[%c4_94, %c0_95, %c0_96] : memref<5x288x224xbf16, #tpu.memory_space<vmem>>, vector<1x288x224xbf16>
    %109 = vector.shape_cast %108 : vector<1x288x224xbf16> to vector<288x224xbf16>
    %cst_97 = arith.constant dense<0.000000e+00> : vector<14x224xf32>
    %110 = tpu.matmul %107, %109, %cst_97 {dimension_numbers = #tpu.dot_dimension_numbers<[1], [0], [0], [1], [0, 0, 1, 1], [], []>} : vector<14x288xbf16>, vector<288x224xbf16>, vector<14x224xf32> -> vector<14x224xf32>
    %111 = arith.addf %103, %110 : vector<14x224xf32>
    %cst_98 = arith.constant dense<0.000000e+00> : vector<224xf32>
    %112 = vector.multi_reduction <add>, %111, %cst_98 [0] : vector<14x224xf32> to vector<224xf32>
    %113 = vector.shape_cast %112 : vector<224xf32> to vector<1x224xf32>
    %114 = arith.mulf %111, %111 : vector<14x224xf32>
    %cst_99 = arith.constant dense<0.000000e+00> : vector<224xf32>
    %115 = vector.multi_reduction <add>, %114, %cst_99 [0] : vector<14x224xf32> to vector<224xf32>
    %116 = vector.shape_cast %115 : vector<224xf32> to vector<1x224xf32>
    %c0_100 = arith.constant 0 : index
    %c0_101 = arith.constant 0 : index
    %117 = vector.load %arg9[%c0_100, %c0_101] : memref<224x32xf32, #tpu.memory_space<vmem>>, vector<224x32xf32>
    %cst_102 = arith.constant dense<0.000000e+00> : vector<1x32xf32>
    %118 = tpu.matmul %113, %117, %cst_102 {dimension_numbers = #tpu.dot_dimension_numbers<[1], [0], [0], [1], [0, 0, 1, 1], [], []>} : vector<1x224xf32>, vector<224x32xf32>, vector<1x32xf32> -> vector<1x32xf32>
    %cst_103 = arith.constant 0.0102040814 : f32
    %119 = vector.broadcast %cst_103 : f32 to vector<1x32xf32>
    %120 = arith.mulf %118, %119 : vector<1x32xf32>
    %c0_104 = arith.constant 0 : index
    %c0_105 = arith.constant 0 : index
    %121 = vector.load %arg9[%c0_104, %c0_105] : memref<224x32xf32, #tpu.memory_space<vmem>>, vector<224x32xf32>
    %cst_106 = arith.constant dense<0.000000e+00> : vector<1x32xf32>
    %122 = tpu.matmul %116, %121, %cst_106 {dimension_numbers = #tpu.dot_dimension_numbers<[1], [0], [0], [1], [0, 0, 1, 1], [], []>} : vector<1x224xf32>, vector<224x32xf32>, vector<1x32xf32> -> vector<1x32xf32>
    %cst_107 = arith.constant 0.0102040814 : f32
    %123 = vector.broadcast %cst_107 : f32 to vector<1x32xf32>
    %124 = arith.mulf %122, %123 : vector<1x32xf32>
    %125 = arith.mulf %120, %120 : vector<1x32xf32>
    %126 = arith.subf %124, %125 : vector<1x32xf32>
    %c0_108 = arith.constant 0 : index
    %c0_109 = arith.constant 0 : index
    %127 = vector.load %arg11[%c0_108, %c0_109] : memref<1x32xf32, #tpu.memory_space<vmem>>, vector<1x32xf32>
    %cst_110 = arith.constant 9.99999974E-6 : f32
    %128 = vector.broadcast %cst_110 : f32 to vector<1x32xf32>
    %129 = arith.addf %126, %128 : vector<1x32xf32>
    %130 = math.rsqrt %129 : vector<1x32xf32>
    %131 = arith.mulf %127, %130 : vector<1x32xf32>
    %c0_111 = arith.constant 0 : index
    %c0_112 = arith.constant 0 : index
    %132 = vector.load %arg12[%c0_111, %c0_112] : memref<1x32xf32, #tpu.memory_space<vmem>>, vector<1x32xf32>
    %133 = arith.mulf %120, %131 : vector<1x32xf32>
    %134 = arith.subf %132, %133 : vector<1x32xf32>
    %c0_113 = arith.constant 0 : index
    %c0_114 = arith.constant 0 : index
    %135 = vector.load %arg10[%c0_113, %c0_114] : memref<32x224xf32, #tpu.memory_space<vmem>>, vector<32x224xf32>
    %cst_115 = arith.constant dense<0.000000e+00> : vector<1x224xf32>
    %136 = tpu.matmul %131, %135, %cst_115 {dimension_numbers = #tpu.dot_dimension_numbers<[1], [0], [0], [1], [0, 0, 1, 1], [], []>} : vector<1x32xf32>, vector<32x224xf32>, vector<1x224xf32> -> vector<1x224xf32>
    %c0_116 = arith.constant 0 : index
    %c0_117 = arith.constant 0 : index
    %137 = vector.load %arg10[%c0_116, %c0_117] : memref<32x224xf32, #tpu.memory_space<vmem>>, vector<32x224xf32>
    %cst_118 = arith.constant dense<0.000000e+00> : vector<1x224xf32>
    %138 = tpu.matmul %134, %137, %cst_118 {dimension_numbers = #tpu.dot_dimension_numbers<[1], [0], [0], [1], [0, 0, 1, 1], [], []>} : vector<1x32xf32>, vector<32x224xf32>, vector<1x224xf32> -> vector<1x224xf32>
    %139 = vector.broadcast %136 : vector<1x224xf32> to vector<14x224xf32>
    %140 = arith.mulf %111, %139 : vector<14x224xf32>
    %141 = vector.broadcast %138 : vector<1x224xf32> to vector<14x224xf32>
    %142 = arith.addf %140, %141 : vector<14x224xf32>
    %cst_119 = arith.constant 0.000000e+00 : f32
    %143 = vector.broadcast %cst_119 : f32 to vector<14x224xf32>
    %144 = arith.maximumf %142, %143 : vector<14x224xf32>
    %c0_120 = arith.constant 0 : index
    %c0_121 = arith.constant 0 : index
    %c0_122 = arith.constant 0 : index
    %145 = vector.load %arg14[%c0_120, %c0_121, %c0_122] : memref<5x4x14xf32, #tpu.memory_space<vmem>>, vector<1x4x14xf32>
    %146 = vector.shape_cast %145 : vector<1x4x14xf32> to vector<4x14xf32>
    %cst_123 = arith.constant dense<0.000000e+00> : vector<4x224xf32>
    %147 = tpu.matmul %146, %144, %cst_123 {dimension_numbers = #tpu.dot_dimension_numbers<[1], [0], [0], [1], [0, 0, 1, 1], [], []>} : vector<4x14xf32>, vector<14x224xf32>, vector<4x224xf32> -> vector<4x224xf32>
    %148 = arith.truncf %147 : vector<4x224xf32> to vector<4x224xbf16>
    %c0_124 = arith.constant 0 : index
    %c0_125 = arith.constant 0 : index
    %c0_126 = arith.constant 0 : index
    %149 = vector.load %arg13[%c0_124, %c0_125, %c0_126] : memref<5x224x64xbf16, #tpu.memory_space<vmem>>, vector<1x224x64xbf16>
    %150 = vector.shape_cast %149 : vector<1x224x64xbf16> to vector<224x64xbf16>
    %cst_127 = arith.constant dense<0.000000e+00> : vector<4x64xf32>
    %151 = tpu.matmul %148, %150, %cst_127 {dimension_numbers = #tpu.dot_dimension_numbers<[1], [0], [0], [1], [0, 0, 1, 1], [], []>} : vector<4x224xbf16>, vector<224x64xbf16>, vector<4x64xf32> -> vector<4x64xf32>
    %c1_128 = arith.constant 1 : index
    %c0_129 = arith.constant 0 : index
    %c0_130 = arith.constant 0 : index
    %152 = vector.load %arg14[%c1_128, %c0_129, %c0_130] : memref<5x4x14xf32, #tpu.memory_space<vmem>>, vector<1x4x14xf32>
    %153 = vector.shape_cast %152 : vector<1x4x14xf32> to vector<4x14xf32>
    %cst_131 = arith.constant dense<0.000000e+00> : vector<4x224xf32>
    %154 = tpu.matmul %153, %144, %cst_131 {dimension_numbers = #tpu.dot_dimension_numbers<[1], [0], [0], [1], [0, 0, 1, 1], [], []>} : vector<4x14xf32>, vector<14x224xf32>, vector<4x224xf32> -> vector<4x224xf32>
    %155 = arith.truncf %154 : vector<4x224xf32> to vector<4x224xbf16>
    %c1_132 = arith.constant 1 : index
    %c0_133 = arith.constant 0 : index
    %c0_134 = arith.constant 0 : index
    %156 = vector.load %arg13[%c1_132, %c0_133, %c0_134] : memref<5x224x64xbf16, #tpu.memory_space<vmem>>, vector<1x224x64xbf16>
    %157 = vector.shape_cast %156 : vector<1x224x64xbf16> to vector<224x64xbf16>
    %cst_135 = arith.constant dense<0.000000e+00> : vector<4x64xf32>
    %158 = tpu.matmul %155, %157, %cst_135 {dimension_numbers = #tpu.dot_dimension_numbers<[1], [0], [0], [1], [0, 0, 1, 1], [], []>} : vector<4x224xbf16>, vector<224x64xbf16>, vector<4x64xf32> -> vector<4x64xf32>
    %159 = arith.addf %151, %158 : vector<4x64xf32>
    %c2_136 = arith.constant 2 : index
    %c0_137 = arith.constant 0 : index
    %c0_138 = arith.constant 0 : index
    %160 = vector.load %arg14[%c2_136, %c0_137, %c0_138] : memref<5x4x14xf32, #tpu.memory_space<vmem>>, vector<1x4x14xf32>
    %161 = vector.shape_cast %160 : vector<1x4x14xf32> to vector<4x14xf32>
    %cst_139 = arith.constant dense<0.000000e+00> : vector<4x224xf32>
    %162 = tpu.matmul %161, %144, %cst_139 {dimension_numbers = #tpu.dot_dimension_numbers<[1], [0], [0], [1], [0, 0, 1, 1], [], []>} : vector<4x14xf32>, vector<14x224xf32>, vector<4x224xf32> -> vector<4x224xf32>
    %163 = arith.truncf %162 : vector<4x224xf32> to vector<4x224xbf16>
    %c2_140 = arith.constant 2 : index
    %c0_141 = arith.constant 0 : index
    %c0_142 = arith.constant 0 : index
    %164 = vector.load %arg13[%c2_140, %c0_141, %c0_142] : memref<5x224x64xbf16, #tpu.memory_space<vmem>>, vector<1x224x64xbf16>
    %165 = vector.shape_cast %164 : vector<1x224x64xbf16> to vector<224x64xbf16>
    %cst_143 = arith.constant dense<0.000000e+00> : vector<4x64xf32>
    %166 = tpu.matmul %163, %165, %cst_143 {dimension_numbers = #tpu.dot_dimension_numbers<[1], [0], [0], [1], [0, 0, 1, 1], [], []>} : vector<4x224xbf16>, vector<224x64xbf16>, vector<4x64xf32> -> vector<4x64xf32>
    %167 = arith.addf %159, %166 : vector<4x64xf32>
    %c3_144 = arith.constant 3 : index
    %c0_145 = arith.constant 0 : index
    %c0_146 = arith.constant 0 : index
    %168 = vector.load %arg14[%c3_144, %c0_145, %c0_146] : memref<5x4x14xf32, #tpu.memory_space<vmem>>, vector<1x4x14xf32>
    %169 = vector.shape_cast %168 : vector<1x4x14xf32> to vector<4x14xf32>
    %cst_147 = arith.constant dense<0.000000e+00> : vector<4x224xf32>
    %170 = tpu.matmul %169, %144, %cst_147 {dimension_numbers = #tpu.dot_dimension_numbers<[1], [0], [0], [1], [0, 0, 1, 1], [], []>} : vector<4x14xf32>, vector<14x224xf32>, vector<4x224xf32> -> vector<4x224xf32>
    %171 = arith.truncf %170 : vector<4x224xf32> to vector<4x224xbf16>
    %c3_148 = arith.constant 3 : index
    %c0_149 = arith.constant 0 : index
    %c0_150 = arith.constant 0 : index
    %172 = vector.load %arg13[%c3_148, %c0_149, %c0_150] : memref<5x224x64xbf16, #tpu.memory_space<vmem>>, vector<1x224x64xbf16>
    %173 = vector.shape_cast %172 : vector<1x224x64xbf16> to vector<224x64xbf16>
    %cst_151 = arith.constant dense<0.000000e+00> : vector<4x64xf32>
    %174 = tpu.matmul %171, %173, %cst_151 {dimension_numbers = #tpu.dot_dimension_numbers<[1], [0], [0], [1], [0, 0, 1, 1], [], []>} : vector<4x224xbf16>, vector<224x64xbf16>, vector<4x64xf32> -> vector<4x64xf32>
    %175 = arith.addf %167, %174 : vector<4x64xf32>
    %c4_152 = arith.constant 4 : index
    %c0_153 = arith.constant 0 : index
    %c0_154 = arith.constant 0 : index
    %176 = vector.load %arg14[%c4_152, %c0_153, %c0_154] : memref<5x4x14xf32, #tpu.memory_space<vmem>>, vector<1x4x14xf32>
    %177 = vector.shape_cast %176 : vector<1x4x14xf32> to vector<4x14xf32>
    %cst_155 = arith.constant dense<0.000000e+00> : vector<4x224xf32>
    %178 = tpu.matmul %177, %144, %cst_155 {dimension_numbers = #tpu.dot_dimension_numbers<[1], [0], [0], [1], [0, 0, 1, 1], [], []>} : vector<4x14xf32>, vector<14x224xf32>, vector<4x224xf32> -> vector<4x224xf32>
    %179 = arith.truncf %178 : vector<4x224xf32> to vector<4x224xbf16>
    %c4_156 = arith.constant 4 : index
    %c0_157 = arith.constant 0 : index
    %c0_158 = arith.constant 0 : index
    %180 = vector.load %arg13[%c4_156, %c0_157, %c0_158] : memref<5x224x64xbf16, #tpu.memory_space<vmem>>, vector<1x224x64xbf16>
    %181 = vector.shape_cast %180 : vector<1x224x64xbf16> to vector<224x64xbf16>
    %cst_159 = arith.constant dense<0.000000e+00> : vector<4x64xf32>
    %182 = tpu.matmul %179, %181, %cst_159 {dimension_numbers = #tpu.dot_dimension_numbers<[1], [0], [0], [1], [0, 0, 1, 1], [], []>} : vector<4x224xbf16>, vector<224x64xbf16>, vector<4x64xf32> -> vector<4x64xf32>
    %183 = arith.addf %175, %182 : vector<4x64xf32>
    %cst_160 = arith.constant dense<0.000000e+00> : vector<64xf32>
    %184 = vector.multi_reduction <add>, %183, %cst_160 [0] : vector<4x64xf32> to vector<64xf32>
    %185 = vector.shape_cast %184 : vector<64xf32> to vector<1x64xf32>
    %186 = arith.mulf %183, %183 : vector<4x64xf32>
    %cst_161 = arith.constant dense<0.000000e+00> : vector<64xf32>
    %187 = vector.multi_reduction <add>, %186, %cst_161 [0] : vector<4x64xf32> to vector<64xf32>
    %188 = vector.shape_cast %187 : vector<64xf32> to vector<1x64xf32>
    %c0_162 = arith.constant 0 : index
    %c0_163 = arith.constant 0 : index
    %189 = vector.load %arg15[%c0_162, %c0_163] : memref<64x32xf32, #tpu.memory_space<vmem>>, vector<64x32xf32>
    %cst_164 = arith.constant dense<0.000000e+00> : vector<1x32xf32>
    %190 = tpu.matmul %185, %189, %cst_164 {dimension_numbers = #tpu.dot_dimension_numbers<[1], [0], [0], [1], [0, 0, 1, 1], [], []>} : vector<1x64xf32>, vector<64x32xf32>, vector<1x32xf32> -> vector<1x32xf32>
    %cst_165 = arith.constant 1.250000e-01 : f32
    %191 = vector.broadcast %cst_165 : f32 to vector<1x32xf32>
    %192 = arith.mulf %190, %191 : vector<1x32xf32>
    %c0_166 = arith.constant 0 : index
    %c0_167 = arith.constant 0 : index
    %193 = vector.load %arg15[%c0_166, %c0_167] : memref<64x32xf32, #tpu.memory_space<vmem>>, vector<64x32xf32>
    %cst_168 = arith.constant dense<0.000000e+00> : vector<1x32xf32>
    %194 = tpu.matmul %188, %193, %cst_168 {dimension_numbers = #tpu.dot_dimension_numbers<[1], [0], [0], [1], [0, 0, 1, 1], [], []>} : vector<1x64xf32>, vector<64x32xf32>, vector<1x32xf32> -> vector<1x32xf32>
    %cst_169 = arith.constant 1.250000e-01 : f32
    %195 = vector.broadcast %cst_169 : f32 to vector<1x32xf32>
    %196 = arith.mulf %194, %195 : vector<1x32xf32>
    %197 = arith.mulf %192, %192 : vector<1x32xf32>
    %198 = arith.subf %196, %197 : vector<1x32xf32>
    %c0_170 = arith.constant 0 : index
    %c0_171 = arith.constant 0 : index
    %199 = vector.load %arg17[%c0_170, %c0_171] : memref<1x32xf32, #tpu.memory_space<vmem>>, vector<1x32xf32>
    %cst_172 = arith.constant 9.99999974E-6 : f32
    %200 = vector.broadcast %cst_172 : f32 to vector<1x32xf32>
    %201 = arith.addf %198, %200 : vector<1x32xf32>
    %202 = math.rsqrt %201 : vector<1x32xf32>
    %203 = arith.mulf %199, %202 : vector<1x32xf32>
    %c0_173 = arith.constant 0 : index
    %c0_174 = arith.constant 0 : index
    %204 = vector.load %arg18[%c0_173, %c0_174] : memref<1x32xf32, #tpu.memory_space<vmem>>, vector<1x32xf32>
    %205 = arith.mulf %192, %203 : vector<1x32xf32>
    %206 = arith.subf %204, %205 : vector<1x32xf32>
    %c0_175 = arith.constant 0 : index
    %c0_176 = arith.constant 0 : index
    %207 = vector.load %arg16[%c0_175, %c0_176] : memref<32x64xf32, #tpu.memory_space<vmem>>, vector<32x64xf32>
    %cst_177 = arith.constant dense<0.000000e+00> : vector<1x64xf32>
    %208 = tpu.matmul %203, %207, %cst_177 {dimension_numbers = #tpu.dot_dimension_numbers<[1], [0], [0], [1], [0, 0, 1, 1], [], []>} : vector<1x32xf32>, vector<32x64xf32>, vector<1x64xf32> -> vector<1x64xf32>
    %c0_178 = arith.constant 0 : index
    %c0_179 = arith.constant 0 : index
    %209 = vector.load %arg16[%c0_178, %c0_179] : memref<32x64xf32, #tpu.memory_space<vmem>>, vector<32x64xf32>
    %cst_180 = arith.constant dense<0.000000e+00> : vector<1x64xf32>
    %210 = tpu.matmul %206, %209, %cst_180 {dimension_numbers = #tpu.dot_dimension_numbers<[1], [0], [0], [1], [0, 0, 1, 1], [], []>} : vector<1x32xf32>, vector<32x64xf32>, vector<1x64xf32> -> vector<1x64xf32>
    %211 = vector.broadcast %208 : vector<1x64xf32> to vector<4x64xf32>
    %212 = arith.mulf %183, %211 : vector<4x64xf32>
    %213 = vector.broadcast %210 : vector<1x64xf32> to vector<4x64xf32>
    %214 = arith.addf %212, %213 : vector<4x64xf32>
    %cst_181 = arith.constant 0.000000e+00 : f32
    %215 = vector.broadcast %cst_181 : f32 to vector<4x64xf32>
    %216 = arith.maximumf %214, %215 : vector<4x64xf32>
    %c0_182 = arith.constant 0 : index
    %c0_183 = arith.constant 0 : index
    %c0_184 = arith.constant 0 : index
    %217 = vector.load %arg19[%c0_182, %c0_183, %c0_184] : memref<2x2x4xf32, #tpu.memory_space<vmem>>, vector<1x2x4xf32>
    %218 = vector.shape_cast %217 : vector<1x2x4xf32> to vector<2x4xf32>
    %cst_185 = arith.constant dense<0.000000e+00> : vector<2x64xf32>
    %219 = tpu.matmul %218, %216, %cst_185 {dimension_numbers = #tpu.dot_dimension_numbers<[1], [0], [0], [1], [0, 0, 1, 1], [], []>} : vector<2x4xf32>, vector<4x64xf32>, vector<2x64xf32> -> vector<2x64xf32>
    %c0_186 = arith.constant 0 : index
    %c0_187 = arith.constant 0 : index
    %220 = vector.load %arg20[%c0_186, %c0_187] : memref<128x1xf32, #tpu.memory_space<vmem>>, vector<64x1xf32>
    %cst_188 = arith.constant dense<0.000000e+00> : vector<2x1xf32>
    %221 = tpu.matmul %219, %220, %cst_188 {dimension_numbers = #tpu.dot_dimension_numbers<[1], [0], [0], [1], [0, 0, 1, 1], [], []>} : vector<2x64xf32>, vector<64x1xf32>, vector<2x1xf32> -> vector<2x1xf32>
    %c1_189 = arith.constant 1 : index
    %c0_190 = arith.constant 0 : index
    %c0_191 = arith.constant 0 : index
    %222 = vector.load %arg19[%c1_189, %c0_190, %c0_191] : memref<2x2x4xf32, #tpu.memory_space<vmem>>, vector<1x2x4xf32>
    %223 = vector.shape_cast %222 : vector<1x2x4xf32> to vector<2x4xf32>
    %cst_192 = arith.constant dense<0.000000e+00> : vector<2x64xf32>
    %224 = tpu.matmul %223, %216, %cst_192 {dimension_numbers = #tpu.dot_dimension_numbers<[1], [0], [0], [1], [0, 0, 1, 1], [], []>} : vector<2x4xf32>, vector<4x64xf32>, vector<2x64xf32> -> vector<2x64xf32>
    %c64 = arith.constant 64 : index
    %c0_193 = arith.constant 0 : index
    %225 = vector.load %arg20[%c64, %c0_193] : memref<128x1xf32, #tpu.memory_space<vmem>>, vector<64x1xf32>
    %cst_194 = arith.constant dense<0.000000e+00> : vector<2x1xf32>
    %226 = tpu.matmul %224, %225, %cst_194 {dimension_numbers = #tpu.dot_dimension_numbers<[1], [0], [0], [1], [0, 0, 1, 1], [], []>} : vector<2x64xf32>, vector<64x1xf32>, vector<2x1xf32> -> vector<2x1xf32>
    %227 = arith.addf %221, %226 : vector<2x1xf32>
    %c0_195 = arith.constant 0 : index
    %c0_196 = arith.constant 0 : index
    %228 = vector.load %arg21[%c0_195, %c0_196] : memref<1x1xf32, #tpu.memory_space<vmem>>, vector<1x1xf32>
    %229 = vector.broadcast %228 : vector<1x1xf32> to vector<2x1xf32>
    %230 = arith.addf %227, %229 : vector<2x1xf32>
    %c0_197 = arith.constant 0 : index
    %c0_198 = arith.constant 0 : index
    %231 = vector.load %arg22[%c0_197, %c0_198] : memref<2x1xf32, #tpu.memory_space<vmem>>, vector<2x1xf32>
    tpu.vector_store %arg22[%c0_197, %c0_198], %230 {strides = array<i32>} : memref<2x1xf32, #tpu.memory_space<vmem>>, vector<2x1xf32>,
    return
  }
}

</mosaic_0001>

<bundles_post_ra>
// kernel: critic_forward.1
= control target key start
LH: loop header
LB: loop body
LE: loop exit
PB: predicated region body
PF: predicated region fallthrough
CT: control target
= control target key end

     0   :  { %s12787_s0 = inlined_call_operand.vmem [shape: f32[80,160], index: 0, kind: input, shape index: {}]   ;;  %s12788_s1 = inlined_call_operand.vmem [shape: bf16[5,160,288], index: 1, kind: input, shape index: {}]   ;;  %s12789_s2 = inlined_call_operand.vmem [shape: f32[5,36,80], index: 2, kind: input, shape index: {}]   ;;  %s12790_s3 = inlined_call_operand.vmem [shape: f32[288,16], index: 3, kind: input, shape index: {}]   ;;  %s12791_s4 = inlined_call_operand.hbm [shape: f32[16,288], index: 4, kind: input, shape index: {}]   ;;  %s12792_s5 = inlined_call_operand.vmem [shape: f32[1,16], index: 5, kind: input, shape index: {}]   ;;  %s12793_s6 = inlined_call_operand.vmem [shape: f32[1,16], index: 6, kind: input, shape index: {}]   ;;  %s12794_s7 = inlined_call_operand.vmem [shape: bf16[5,288,224], index: 7, kind: input, shape index: {}]   ;;  %s12795_s8 = inlined_call_operand.hbm [shape: f32[5,14,36], index: 8, kind: input, shape index: {}]   ;;  %s12796_s9 = inlined_call_operand.vmem [shape: f32[224,32], index: 9, kind: input, shape index: {}]   ;;  %s12797_s10 = inlined_call_operand.hbm [shape: f32[32,224], index: 10, kind: input, shape index: {}]   ;;  %s12798_s11 = inlined_call_operand.vmem [shape: f32[1,32], index: 11, kind: input, shape index: {}]   ;;  %s12799_s12 = inlined_call_operand.vmem [shape: f32[1,32], index: 12, kind: input, shape index: {}]   ;;  %s12800_s13 = inlined_call_operand.vmem [shape: bf16[5,224,64], index: 13, kind: input, shape index: {}]   ;;  %s12801_s14 = inlined_call_operand.hbm [shape: f32[5,4,14], index: 14, kind: input, shape index: {}]   ;;  %s12802_s15 = inlined_call_operand.vmem [shape: f32[64,32], index: 15, kind: input, shape index: {}]   ;;  %s12803_s16 = inlined_call_operand.vmem [shape: f32[32,64], index: 16, kind: input, shape index: {}]   ;;  %s12804_s17 = inlined_call_operand.vmem [shape: f32[1,32], index: 17, kind: input, shape index: {}]   ;;  %s12805_s18 = inlined_call_operand.vmem [shape: f32[1,32], index: 18, kind: input, shape index: {}]   ;;  %s12806_s19 = inlined_call_operand.vmem [shape: f32[2,2,4], index: 19, kind: input, shape index: {}]   ;;  %s12807_s20 = inlined_call_operand.vmem [shape: f32[128,1], index: 20, kind: input, shape index: {}]   ;;  %s12808_s21 = inlined_call_operand.<no memory space> [shape: f32[1,1], index: 21, kind: input, shape index: {}]   ;;  %s12809_s22 = inlined_call_operand.vmem [shape: f32[2,1], index: 22, kind: output, shape index: {}]  }
   0x1   :  { %12814 = sst [smem:[#allocation13_spill]] %s12787_s0  ;;  %v27_v0 = vstv %s12808_s21 }
   0x2   :  { %12815 = sst [smem:[#allocation14_spill]] %s12788_s1  ;;  %28 = vst [vmem:[#allocation2] sm:$0x1] %v27_v0 }
   0x3   :  { %12816 = sst [smem:[#allocation15_spill]] %s12789_s2 }
   0x4   :  { %12817 = sst [smem:[#allocation16_spill]] %s12790_s3 }
   0x5   :  { %12818 = sst [smem:[#allocation17_spill]] %s12791_s4 }
   0x6   :  { %12819 = sst [smem:[#allocation18_spill]] %s12792_s5 }
   0x7   :  { %12820 = sst [smem:[#allocation19_spill]] %s12793_s6 }
   0x8   :  { %29 = vsyncpa [#allocation4], 0 }
   0x9   :  { %30 = vsyncpa [#allocation6], 0 }
   0xa   :  { %31 = vsyncpa [#allocation9], 0  ;;  %s9880_s29 = smov [#allocation5]  }
   0xb   :  { %s63_s30 = sshll.u32 %s9880_s29, 4  ;;  %s64_s30 = int_to_ptr.vmem [resolvable:$true] %s63_s30 }
   0xc   :  { %s9802_s4 = scalar_lea.vmem %s64_s30, 1280  ;;  %p9807_p1 = scmp.lt.s32.totalorder %s64_s30, %s64_s30 }
   0xd   :  { %p9803_p0 = scmp.ne.s32.totalorder %s64_s30, %s9802_s4  ;;  %p9808_p2 = scmp.lt.s32.totalorder %s9802_s4, %s9802_s4 }
   0xf   :  { %p9809_p3 = por %p9808_p2, %p9807_p1 }
  0x11   :  { %p9810_p4 = pnand %p9809_p3, %p9803_p0 }
  0x13   :  { %9813 = shalt.err (!%p9810_p4)
}
  0x14   :  { %s9881_s0 = smov 128   ;;  %s9882_s23 = smov 8  }
  0x15   :  { %69 = dma.hbm_to_vmem [thread:$0]  %s12795_s8, 1280, %s64_s30, [#allocation6], %s9881_s0, %s9881_s0, %s9882_s23  }
  0x16   :  { %s9883_s21 = smov [#allocation3]  }
  0x17   :  { %s45_s24 = sshll.u32 %s9883_s21, 4  ;;  %s46_s24 = int_to_ptr.vmem [resolvable:$true] %s45_s24 }
  0x18   :  { %s9822_s6 = scalar_lea.vmem %s46_s24, 768  ;;  %p9827_p6 = scmp.lt.s32.totalorder %s46_s24, %s46_s24 }
  0x19   :  { %p9823_p5 = scmp.ne.s32.totalorder %s46_s24, %s9822_s6  ;;  %p9828_p7 = scmp.lt.s32.totalorder %s9822_s6, %s9822_s6 }
  0x1b   :  { %p9829_p8 = por %p9828_p7, %p9827_p6 }
  0x1d   :  { %p9830_p9 = pnand %p9829_p8, %p9823_p5 }
  0x1f   :  { %9833 = shalt.err (!%p9830_p9)
}
  0x20   :  { %s9884_s25 = smov 384   ;;  %s9885_s26 = smov 24  }
  0x21   :  { %s12821_s3 = sld [smem:[#allocation17_spill]]  ;;  %s9886_s28 = smov [#allocation7]  }
  0x22   :  { %s77_s29 = sshll.u32 %s9886_s28, 4  ;;  %s78_s29 = int_to_ptr.vmem [resolvable:$true] %s77_s29 }
  0x23   :  { %s9842_s8 = scalar_lea.vmem %s78_s29, 1024  ;;  %p9847_p11 = scmp.lt.s32.totalorder %s78_s29, %s78_s29 }
  0x24   :  { %p9843_p10 = scmp.ne.s32.totalorder %s78_s29, %s9842_s8  ;;  %p9848_p12 = scmp.lt.s32.totalorder %s9842_s8, %s9842_s8 }
  0x26   :  { %p9849_p13 = por %p9848_p12, %p9847_p11 }
  0x27   :  { %51 = dma.hbm_to_vmem [thread:$0]  %s12821_s3, 768, %s46_s24, [#allocation4], %s9884_s25, %s9884_s25, %s9885_s26  }
  0x28   :  { %p9850_p0 = pnand %p9849_p13, %p9843_p10 }
  0x2a   :  { %9853 = shalt.err (!%p9850_p0)
}
  0x2b   :  { %s9887_s30 = smov 256   ;;  %s9888_s4 = smov 16  }
  0x2c   :  { %83 = dma.hbm_to_vmem [thread:$0]  %s12797_s10, 1024, %s78_s29, [#allocation6], %s9887_s30, %s9887_s30, %s9888_s4  }
  0x2d   :  { %s9889_s1 = smov [#allocation8]  }
  0x2e   :  { %s95_s5 = sshll.u32 %s9889_s1, 4  ;;  %s96_s5 = int_to_ptr.vmem [resolvable:$true] %s95_s5 }
  0x2f   :  { %s9862_s21 = scalar_lea.vmem %s96_s5, 320  ;;  %p9867_p2 = scmp.lt.s32.totalorder %s96_s5, %s96_s5 }
  0x30   :  { %p9863_p1 = scmp.ne.s32.totalorder %s96_s5, %s9862_s21  ;;  %p9868_p3 = scmp.lt.s32.totalorder %s9862_s21, %s9862_s21 }
  0x32   :  { %p9869_p4 = por %p9868_p3, %p9867_p2 }
  0x34   :  { %p9870_p5 = pnand %p9869_p4, %p9863_p1 }
  0x36   :  { %9873 = shalt.err (!%p9870_p5)
}
  0x37   :  { %s9890_s24 = smov 64   ;;  %s9891_s6 = smov 4  }
  0x38   :  { %101 = dma.hbm_to_vmem [thread:$0]  %s12801_s14, 320, %s96_s5, [#allocation9], %s9890_s24, %s9890_s24, %s9891_s6  }
  0x39   :  { %9874 = dma.done.wait [#allocation4], 768  }
  0x3a   :  { %9875 = vsyncadd [#allocation4], 4294966528 }
  0x3b   :  { %9876 = dma.done.wait [#allocation6], 2304  }
  0x3c   :  { %9877 = vsyncadd [#allocation6], 4294964992 }
  0x3d   :  { %9878 = dma.done.wait [#allocation9], 320  }
  0x3e   :  { %9879 = vsyncadd [#allocation9], 4294966976  ;;  %v9892_v1 = vmov 0.0   ;;  %s12822_s27 = sld [smem:[#allocation13_spill]]  ;;  %vm154_vm0 = vcmask 654336   ;;  %v9893_v30 = vmov 0  }
  0x3f   :  { %396 = vmatprep.mubr.f32.mxu1 %v9892_v1  ;;  %234 = vmatprep.mubr.f32.mxu0 %v9892_v1  ;;  %s12823_s8 = sld [smem:[#allocation15_spill]]  ;;  %vm634_vm1 = vcmask 261120   ;;  %vm2442_vm2 = vcmask 1043456   ;;  %vm2469_vm3 = vcmask 257024   ;;  %vm9894_vm4 = vmmov 0  }
  0x40   :  { %s12824_s1 = sld [smem:[#allocation14_spill]]  ;;  %vm2869_vm5 = vcmask 130048   ;;  %vm3229_vm6 = vcmask 293888   ;;  %vm5597_vm7 = vcmask 1045504   ;;  %vm5606_vm8 = vcmask 785408  }
  0x41   :  { %s12825_s24 = sld [smem:[#allocation16_spill]]  ;;  %vm5608_vm9 = vcmask 783360   ;;  %vm6008_vm10 = vcmask 113664   ;;  %vm7185_vm11 = vcmask 519168   ;;  %vm7209_vm12 = vcmask 523264  }
  0x42   :  { %s12826_s21 = sld [smem:[#allocation18_spill]]  ;;  %vm7529_vm13 = vcmask 31744   ;;  %vm7851_vm14 = vcmask 1024  }
  0x43   :  { %s12827_s25 = sld [smem:[#allocation19_spill]] }
  0x44   :  { %v148_v2 = vld [vmem:[%s12822_s27 + $0x98] sm:$0xff]  ;;  %v147_v3 = vld [vmem:[%s12822_s27 + $0x90] sm:$0xff]  ;;  %v146_v4 = vld [vmem:[%s12822_s27 + $0x88] sm:$0xff] }
  0x45   :  { %344 = vmatprep.subr.mxu1 %v148_v2  ;;  %v145_v5 = vld [vmem:[%s12822_s27 + $0x80] sm:$0xff]  ;;  %182 = vmatprep.subr.mxu0 %v148_v2  ;;  %v144_v6 = vld [vmem:[%s12822_s27 + $0x78] sm:$0xff]  ;;  %v143_v7 = vld [vmem:[%s12822_s27 + $0x70] sm:$0xff] }
  0x46   :  { %345 = vmatpush1.msra.mxu1 %v147_v3  ;;  %183 = vmatpush1.msra.mxu0 %v147_v3  ;;  %v142_v8 = vld [vmem:[%s12822_s27 + $0x68] sm:$0xff]  ;;  %v141_v9 = vld [vmem:[%s12822_s27 + $0x60] sm:$0xff]  ;;  %v140_v10 = vld [vmem:[%s12822_s27 + $0x58] sm:$0xff] }
  0x47   :  { %346 = vmatprep.subr.mxu1 %v146_v4  ;;  %184 = vmatprep.subr.mxu0 %v146_v4  ;;  %v139_v11 = vld [vmem:[%s12822_s27 + $0x50] sm:$0xff]  ;;  %v138_v12 = vld [vmem:[%s12822_s27 + $0x48] sm:$0xff]  ;;  %v137_v13 = vld [vmem:[%s12822_s27 + $0x40] sm:$0xff] }
  0x48   :  { %347 = vmatpush1.msra.mxu1 %v145_v5  ;;  %185 = vmatpush1.msra.mxu0 %v145_v5  ;;  %v136_v14 = vld [vmem:[%s12822_s27 + $0x38] sm:$0xff]  ;;  %v135_v15 = vld [vmem:[%s12822_s27 + $0x30] sm:$0xff]  ;;  %v134_v16 = vld [vmem:[%s12822_s27 + $0x28] sm:$0xff] }
  0x49   :  { %348 = vmatprep.subr.mxu1 %v144_v6  ;;  %186 = vmatprep.subr.mxu0 %v144_v6  ;;  %v133_v17 = vld [vmem:[%s12822_s27 + $0x20] sm:$0xff]  ;;  %v132_v18 = vld [vmem:[%s12822_s27 + $0x18] sm:$0xff]  ;;  %v131_v19 = vld [vmem:[%s12822_s27 + $0x10] sm:$0xff] }
  0x4a   :  { %349 = vmatpush1.msra.mxu1 %v143_v7  ;;  %187 = vmatpush1.msra.mxu0 %v143_v7  ;;  %v130_v20 = vld [vmem:[%s12822_s27 + $0x8] sm:$0xff]  ;;  %v129_v21 = vld [vmem:[%s12822_s27] sm:$0xff]  ;;  %v7866_v27 = vld [vmem:[%s12823_s8 + $0x30] sm:$0xff] }
  0x4b   :  { %350 = vmatprep.subr.mxu1 %v142_v8  ;;  %188 = vmatprep.subr.mxu0 %v142_v8  ;;  %v7865_v22 = vld [vmem:[%s12823_s8 + $0x28] sm:$0xff]  ;;  %v149_v23 = vld [vmem:[%s12823_s8] sm:$0xff]  ;;  %v7867_v33 = vld [vmem:[%s12823_s8 + $0x38] sm:$0xff] }
  0x4c   :  { %351 = vmatpush1.msra.mxu1 %v141_v9  ;;  %189 = vmatpush1.msra.mxu0 %v141_v9  ;;  %v9230_v24 = vld [vmem:[%s12824_s1 + $0x19c] ss:$12 sps:$4 sm:$0xff]   ;;  %v9228_v25 = vld [vmem:[%s12824_s1 + $0x198] ss:$12 sps:$4 sm:$0xff]   ;;  %v9231_v26 = vld [vmem:[%s12824_s1 + $0x1a0] ss:$12 sps:$4 sm:$0xff]  }
  0x4d   :  { %352 = vmatprep.subr.mxu1 %v140_v10  ;;  %190 = vmatprep.subr.mxu0 %v140_v10  ;;  %v150_v28 = vld [vmem:[%s12823_s8 + $0x8] sm:$0xff]  ;;  %v9234_v31 = vld [vmem:[%s12824_s1 + $0x184] ss:$12 sps:$4 sm:$0xff]   ;;  %v152_v38 = vld [vmem:[%s12823_s8 + $0x18] sm:$0xff] }
  0x4e   :  { %353 = vmatpush1.msra.mxu1 %v139_v11  ;;  %191 = vmatpush1.msra.mxu0 %v139_v11  ;;  %v9232_v29 = vld [vmem:[%s12824_s1 + $0x180] ss:$12 sps:$4 sm:$0xff]   ;;  %v9235_v32 = vld [vmem:[%s12824_s1 + $0x188] ss:$12 sps:$4 sm:$0xff]   ;;  %v9239_v39 = vld [vmem:[%s12824_s1 + $0x170] ss:$12 sps:$4 sm:$0xff]  }
  0x4f   :  { %354 = vmatprep.subr.mxu1 %v138_v12  ;;  %192 = vmatprep.subr.mxu0 %v138_v12  ;;  %v151_v34 = vld [vmem:[%s12823_s8 + $0x10] sm:$0xff]  ;;  %v9238_v36 = vld [vmem:[%s12824_s1 + $0x16c] ss:$12 sps:$4 sm:$0xff]   ;;  %v7868_v37 = vld [vmem:[%s12823_s8 + $0x40] sm:$0xff] }
  0x50   :  { %355 = vmatpush1.msra.mxu1 %v137_v13  ;;  %193 = vmatpush1.msra.mxu0 %v137_v13  ;;  %v9236_v35 = vld [vmem:[%s12824_s1 + $0x168] ss:$12 sps:$4 sm:$0xff]   ;;  %v9240_v41 = vld [vmem:[%s12824_s1 + $0x150] ss:$12 sps:$4 sm:$0xff]   ;;  %v9243_v42 = vld [vmem:[%s12824_s1 + $0x158] ss:$12 sps:$4 sm:$0xff]  }
  0x51   :  { %356 = vmatprep.subr.mxu1 %v136_v14  ;;  %194 = vmatprep.subr.mxu0 %v136_v14  ;;  %v9242_v40 = vld [vmem:[%s12824_s1 + $0x154] ss:$12 sps:$4 sm:$0xff]   ;;  %v7869_v43 = vld [vmem:[%s12823_s8 + $0x48] sm:$0xf]  ;;  %v9244_v46 = vld [vmem:[%s12824_s1 + $0x138] ss:$12 sps:$4 sm:$0xff]  }
  0x52   :  { %357 = vmatpush1.msra.mxu1 %v135_v15  ;;  %195 = vmatpush1.msra.mxu0 %v135_v15  ;;  %v153_v44 = vld [vmem:[%s12823_s8 + $0x20] sm:$0xf]  ;;  %v9246_v45 = vld [vmem:[%s12824_s1 + $0x13c] ss:$12 sps:$4 sm:$0xff]   ;;  %v9250_v48 = vld [vmem:[%s12824_s1 + $0x124] ss:$12 sps:$4 sm:$0xff]  }
  0x53   :  { %358 = vmatprep.subr.mxu1 %v134_v16  ;;  %196 = vmatprep.subr.mxu0 %v134_v16  ;;  %v9247_v47 = vld [vmem:[%s12824_s1 + $0x140] ss:$12 sps:$4 sm:$0xff]   ;;  %v9251_v50 = vld [vmem:[%s12824_s1 + $0x128] ss:$12 sps:$4 sm:$0xff]   ;;  %v9255_v53 = vld [vmem:[%s12824_s1 + $0x110] ss:$12 sps:$4 sm:$0xff]  }
  0x54   :  { %359 = vmatpush1.msra.mxu1 %v133_v17  ;;  %197 = vmatpush1.msra.mxu0 %v133_v17  ;;  %v9248_v49 = vld [vmem:[%s12824_s1 + $0x120] ss:$12 sps:$4 sm:$0xff]   ;;  %v9252_v52 = vld [vmem:[%s12824_s1 + $0x108] ss:$12 sps:$4 sm:$0xff]   ;;  %v9256_v55 = vld [vmem:[%s12824_s1 + $0xf0] ss:$12 sps:$4 sm:$0xff]  }
  0x55   :  { %360 = vmatprep.subr.mxu1 %v132_v18  ;;  %198 = vmatprep.subr.mxu0 %v132_v18  ;;  %v9254_v51 = vld [vmem:[%s12824_s1 + $0x10c] ss:$12 sps:$4 sm:$0xff]   ;;  %v9258_v54 = vld [vmem:[%s12824_s1 + $0xf4] ss:$12 sps:$4 sm:$0xff]   ;;  %v9263_v59 = vld [vmem:[%s12824_s1 + $0x1d0] ss:$12 sps:$4 sm:$0xff]  }
  0x56   :  { %361 = vmatpush1.msra.mxu1 %v131_v19  ;;  %199 = vmatpush1.msra.mxu0 %v131_v19  ;;  %v9259_v56 = vld [vmem:[%s12824_s1 + $0xf8] ss:$12 sps:$4 sm:$0xff]   ;;  %v9260_v58 = vld [vmem:[%s12824_s1 + $0x1c8] ss:$12 sps:$4 sm:$0xff]   ;;  %v9264_v61 = vld [vmem:[%s12824_s1 + $0x1b0] ss:$12 sps:$4 sm:$0xff]  }
  0x57   :  { %362 = vmatprep.subr.mxu1 %v130_v20  ;;  %200 = vmatprep.subr.mxu0 %v130_v20  ;;  %v9262_v57 = vld [vmem:[%s12824_s1 + $0x1cc] ss:$12 sps:$4 sm:$0xff]   ;;  %v9266_v60 = vld [vmem:[%s12824_s1 + $0x1b4] ss:$12 sps:$4 sm:$0xff]   ;;  %v9271_v7 = vld [vmem:[%s12824_s1 + $0xb0] ss:$12 sps:$4 sm:$0xff]  }
  0x58   :  { %363 = vmatpush1.msra.mxu1 %v129_v21  ;;  %201 = vmatpush1.msra.mxu0 %v129_v21  ;;  %v9267_v62 = vld [vmem:[%s12824_s1 + $0x1b8] ss:$12 sps:$4 sm:$0xff]   ;;  %v9268_v6 = vld [vmem:[%s12824_s1 + $0xa8] ss:$12 sps:$4 sm:$0xff]   ;;  %v9272_v13 = vld [vmem:[%s12824_s1 + $0x90] ss:$12 sps:$4 sm:$0xff]  }
  0x59   :  { %7870 = vmatmul.mubr.msk.f32.vlgmr.msra.gmra.mxu1 %vm154_vm0, %v7865_v22  ;;  %7860 = vmatmul.mubr.msk.f32.vlgmr.msra.gmra.mxu0 %vm154_vm0, %v149_v23  ;;  %v9270_v63 = vld [vmem:[%s12824_s1 + $0xac] ss:$12 sps:$4 sm:$0xff]   ;;  %v9274_v10 = vld [vmem:[%s12824_s1 + $0x94] ss:$12 sps:$4 sm:$0xff]   ;;  %v9278_v16 = vld [vmem:[%s12824_s1 + $0x7c] ss:$12 sps:$4 sm:$0xff]  }
  0x5a   :  { %402 = vmatprep.mubr.f32.mxu1 %v9892_v1  ;;  %240 = vmatprep.mubr.f32.mxu0 %v9892_v1  ;;  %v9275_v14 = vld [vmem:[%s12824_s1 + $0x98] ss:$12 sps:$4 sm:$0xff]   ;;  %v9279_v22 = vld [vmem:[%s12824_s1 + $0x80] ss:$12 sps:$4 sm:$0xff]  }
  0x5b   :  { %644 = vmatprep.subr.bf16.mxu0 %v9230_v24  ;;  %705 = vmatprep.subr.bf16.mxu1 %v9893_v30  ;;  %v9276_v21 = vld [vmem:[%s12824_s1 + $0x78] ss:$12 sps:$4 sm:$0xff]  }
  0x5c   :  { %645 = vmatpush1.bf16.msra.mxu0 %v9228_v25  ;;  %706 = vmatpush1.bf16.msra.mxu1 %v9231_v26  ;;  %v9282_v23 = vld [vmem:[%s12824_s1 + $0x64] ss:$12 sps:$4 sm:$0xff]  }
  0x5d   :  { %7871 = vmatmul.mubr.msk.f32.gmra.mxu1 %vm154_vm0, %v7866_v27  ;;  %7861 = vmatmul.mubr.msk.f32.gmra.mxu0 %vm154_vm0, %v150_v28  ;;  %v9280_v27 = vld [vmem:[%s12824_s1 + $0x60] ss:$12 sps:$4 sm:$0xff]   ;;  %v9283_v28 = vld [vmem:[%s12824_s1 + $0x68] ss:$12 sps:$4 sm:$0xff]  }
  0x5e   :  { %408 = vmatprep.mubr.f32.mxu1 %v9892_v1  ;;  %246 = vmatprep.mubr.f32.mxu0 %v9892_v1 }
  0x5f   :  { %646 = vmatprep.subr.bf16.mxu0 %v9234_v31  ;;  %707 = vmatprep.subr.bf16.mxu1 %v9893_v30  ;;  %v9286_v31 = vld [vmem:[%s12824_s1 + $0x4c] ss:$12 sps:$4 sm:$0xff]  }
  0x60   :  { %647 = vmatpush1.bf16.msra.mxu0 %v9232_v29  ;;  %708 = vmatpush1.bf16.msra.mxu1 %v9235_v32 }
  0x61   :  { %7872 = vmatmul.mubr.msk.f32.gmra.mxu1 %vm154_vm0, %v7867_v33  ;;  %7862 = vmatmul.mubr.msk.f32.gmra.mxu0 %vm154_vm0, %v151_v34  ;;  %v9284_v34 = vld [vmem:[%s12824_s1 + $0x48] ss:$12 sps:$4 sm:$0xff]  }
  0x62   :  { %414 = vmatprep.mubr.f32.mxu1 %v9892_v1  ;;  %252 = vmatprep.mubr.f32.mxu0 %v9892_v1 }
  0x63   :  { %648 = vmatprep.subr.bf16.mxu0 %v9238_v36  ;;  %709 = vmatprep.subr.bf16.mxu1 %v9893_v30  ;;  %v9290_v36 = vld [vmem:[%s12824_s1 + $0x34] ss:$12 sps:$4 sm:$0xff]  }
  0x64   :  { %649 = vmatpush1.bf16.msra.mxu0 %v9236_v35  ;;  %710 = vmatpush1.bf16.msra.mxu1 %v9239_v39  ;;  %v9287_v35 = vld [vmem:[%s12824_s1 + $0x50] ss:$12 sps:$4 sm:$0xff]   ;;  %v9291_v39 = vld [vmem:[%s12824_s1 + $0x38] ss:$12 sps:$4 sm:$0xff]  }
  0x65   :  { %7873 = vmatmul.mubr.msk.f32.gmra.mxu1 %vm154_vm0, %v7868_v37  ;;  %7863 = vmatmul.mubr.msk.f32.gmra.mxu0 %vm154_vm0, %v152_v38  ;;  %v9288_v38 = vld [vmem:[%s12824_s1 + $0x30] ss:$12 sps:$4 sm:$0xff]  }
  0x66   :  { %420 = vmatprep.mubr.f32.mxu1 %v9892_v1  ;;  %258 = vmatprep.mubr.f32.mxu0 %v9892_v1 }
  0x67   :  { %650 = vmatprep.subr.bf16.mxu0 %v9242_v40  ;;  %711 = vmatprep.subr.bf16.mxu1 %v9893_v30  ;;  %v9294_v40 = vld [vmem:[%s12824_s1 + $0x1c] ss:$12 sps:$4 sm:$0xff]  }
  0x68   :  { %651 = vmatpush1.bf16.msra.mxu0 %v9240_v41  ;;  %712 = vmatpush1.bf16.msra.mxu1 %v9243_v42  ;;  %v9292_v41 = vld [vmem:[%s12824_s1 + $0x18] ss:$12 sps:$4 sm:$0xff]   ;;  %v9295_v42 = vld [vmem:[%s12824_s1 + $0x20] ss:$12 sps:$4 sm:$0xff]  }
  0x69   :  { %7874 = vmatmul.mubr.msk.f32.gmra.mxu1 %vm154_vm0, %v7869_v43  ;;  %7864 = vmatmul.mubr.msk.f32.gmra.mxu0 %vm154_vm0, %v153_v44  ;;  %v9298_v43 = vld [vmem:[%s12824_s1 + $0x4] ss:$12 sps:$4 sm:$0xff]  }
  0x6a   :  { %652 = vmatprep.subr.bf16.mxu0 %v9246_v45  ;;  %713 = vmatprep.subr.bf16.mxu1 %v9893_v30  ;;  %v9296_v45 = vld [vmem:[%s12824_s1] ss:$12 sps:$4 sm:$0xff]  }
  0x6c   :  { %653 = vmatpush1.bf16.msra.mxu0 %v9244_v46  ;;  %714 = vmatpush1.bf16.msra.mxu1 %v9247_v47  ;;  %v9299_v46 = vld [vmem:[%s12824_s1 + $0x8] ss:$12 sps:$4 sm:$0xff]  }
  0x6d   :  { %654 = vmatprep.subr.bf16.mxu0 %v9250_v48  ;;  %715 = vmatprep.subr.bf16.mxu1 %v9893_v30  ;;  %v9302_v47 = vld [vmem:[%s12824_s1 + $0xdc] ss:$12 sps:$4 sm:$0xff]  }
  0x70   :  { %655 = vmatpush1.bf16.msra.mxu0 %v9248_v49  ;;  %716 = vmatpush1.bf16.msra.mxu1 %v9251_v50  ;;  %v9300_v49 = vld [vmem:[%s12824_s1 + $0xd8] ss:$12 sps:$4 sm:$0xff]   ;;  %v9303_v50 = vld [vmem:[%s12824_s1 + $0xe0] ss:$12 sps:$4 sm:$0xff]  }
  0x71   :  { %656 = vmatprep.subr.bf16.mxu0 %v9254_v51  ;;  %717 = vmatprep.subr.bf16.mxu1 %v9893_v30 }
  0x74   :  { %657 = vmatpush1.bf16.msra.mxu0 %v9252_v52  ;;  %718 = vmatpush1.bf16.msra.mxu1 %v9255_v53  ;;  %v9306_v52 = vld [vmem:[%s12824_s1 + $0xc4] ss:$12 sps:$4 sm:$0xff]   ;;  %v9304_v53 = vld [vmem:[%s12824_s1 + $0xc0] ss:$12 sps:$4 sm:$0xff]  }
  0x75   :  { %658 = vmatprep.subr.bf16.mxu0 %v9258_v54  ;;  %719 = vmatprep.subr.bf16.mxu1 %v9893_v30  ;;  %v9307_v54 = vld [vmem:[%s12824_s1 + $0xc8] ss:$12 sps:$4 sm:$0xff]  }
  0x78   :  { %659 = vmatpush1.bf16.msra.mxu0 %v9256_v55  ;;  %720 = vmatpush1.bf16.msra.mxu1 %v9259_v56 }
  0x79   :  { %733 = vmatprep.subr.bf16.mxu1 %v9893_v30  ;;  %672 = vmatprep.subr.bf16.mxu0 %v9262_v57 }
  0x7c   :  { %673 = vmatpush2.bf16.msra.mxu0 %v9260_v58  ;;  %734 = vmatpush2.bf16.msra.mxu1 %v9263_v59  ;;  %v10352_v58 = vld [vmem:[%s12822_s27 + $0x98] sm:$0xff] }
  0x7d   :  { %735 = vmatprep.subr.bf16.mxu1 %v9893_v30  ;;  %674 = vmatprep.subr.bf16.mxu0 %v9266_v60  ;;  %v10360_v60 = vld [vmem:[%s12822_s27 + $0x90] sm:$0xff] }
  0x80   :  { %675 = vmatpush2.bf16.msra.mxu0 %v9264_v61  ;;  %736 = vmatpush2.bf16.msra.mxu1 %v9267_v62  ;;  %v10366_v62 = vld [vmem:[%s12822_s27 + $0x88] sm:$0xff] }
  0x81   :  { %991 = vmatprep.subr.bf16.mxu1 %v9893_v30  ;;  %930 = vmatprep.subr.bf16.mxu0 %v9270_v63  ;;  %v10372_v63 = vld [vmem:[%s12822_s27 + $0x80] sm:$0xff] }
 0x119   :  { %v398_v0 = vpop.f32.mrf.mxu1  ;;  %v10250_v12 = vpop.f32.mrf.mxu0 }
 0x11b   :  { %v400_v2 = vpop.f32.mrf.mxu1  ;;  %v238_v19 = vpop.f32.mrf.mxu0 }
 0x11d   :  { %v404_v3 = vpop.f32.mrf.mxu1  ;;  %v10274_v26 = vpop.f32.mrf.mxu0 }
 0x11e   :  { %v427_v8 = vpack.c.bf16 %v404_v3, %v398_v0  ;;  %v265_v57 = vpack.c.bf16 %v10274_v26, %v10250_v12  ;;  %v10378_v0 = vld [vmem:[%s12822_s27 + $0x78] sm:$0xff] }
 0x11f   :  { %v406_v4 = vpop.f32.mrf.mxu1  ;;  %v244_v33 = vpop.f32.mrf.mxu0  ;;  %v10428_v12 = vld [vmem:[%s12822_s27 + $0x38] sm:$0xff] }
 0x120   :  { %v428_v5 = vpack.c.bf16 %v406_v4, %v400_v2  ;;  %v266_v37 = vpack.c.bf16 %v244_v33, %v238_v19  ;;  %v10384_v4 = vld [vmem:[%s12822_s27 + $0x70] sm:$0xff]  ;;  %v9310_v26 = vld [vmem:[%s12824_s1 + $0x28c] ss:$12 sps:$4 sm:$0xff]  }
 0x121   :  { %v410_v9 = vpop.f32.mrf.mxu1  ;;  %v248_v44 = vpop.f32.mrf.mxu0  ;;  %v7987_v19 = vld [vmem:[%s12823_s8 + $0x50] sm:$0xff]  ;;  %v9316_v33 = vld [vmem:[%s12824_s1 + $0x258] ss:$12 sps:$4 sm:$0xff]  }
 0x122   :  { %7945 = vmatprep.mubr.msk.bf16.mxu0 %vm634_vm1, %v428_v5  ;;  %7948 = vmatprep.mubr.msk.bf16.mxu1 %vm634_vm1, %v428_v5  ;;  %v10390_v5 = vld [vmem:[%s12822_s27 + $0x68] sm:$0xff] }
 0x123   :  { %677 = vmatmul.mubr.bf16.vlgmr.msra.gmra.mxu0 %v427_v8  ;;  %738 = vmatmul.mubr.bf16.vlgmr.msra.gmra.mxu1 %v427_v8  ;;  %v412_v11 = vpop.f32.mrf.mxu1  ;;  %v250_v48 = vpop.f32.mrf.mxu0  ;;  %v10410_v8 = vld [vmem:[%s12822_s27 + $0x50] sm:$0xff] }
 0x124   :  { %931 = vmatpush1.bf16.msra.mxu0 %v9268_v6  ;;  %992 = vmatpush1.bf16.msra.mxu1 %v9271_v7  ;;  %v10396_v6 = vld [vmem:[%s12822_s27 + $0x60] sm:$0xff]  ;;  %v10403_v7 = vld [vmem:[%s12822_s27 + $0x58] sm:$0xff] }
 0x125   :  { %932 = vmatprep.subr.bf16.mxu0 %v9274_v10  ;;  %993 = vmatprep.subr.bf16.mxu1 %v9893_v30  ;;  %v416_v15 = vpop.f32.mrf.mxu1  ;;  %v254_v51 = vpop.f32.mrf.mxu0  ;;  %v10422_v10 = vld [vmem:[%s12822_s27 + $0x40] sm:$0xff] }
 0x126   :  { %v429_v17 = vpack.c.bf16 %v416_v15, %v410_v9  ;;  %v267_v3 = vpack.c.bf16 %v254_v51, %v248_v44  ;;  %v10416_v9 = vld [vmem:[%s12822_s27 + $0x48] sm:$0xff]  ;;  %v10447_v15 = vld [vmem:[%s12822_s27 + $0x20] sm:$0xff] }
 0x127   :  { %v418_v18 = vpop.f32.mrf.mxu1  ;;  %v256_v55 = vpop.f32.mrf.mxu0  ;;  %v9334_v44 = vld [vmem:[%s12824_s1 + $0x1fc] ss:$12 sps:$4 sm:$0xff]   ;;  %v9340_v51 = vld [vmem:[%s12824_s1 + $0x2b8] ss:$12 sps:$4 sm:$0xff]  }
 0x128   :  { %933 = vmatpush1.bf16.msra.mxu0 %v9272_v13  ;;  %994 = vmatpush1.bf16.msra.mxu1 %v9275_v14  ;;  %v430_v20 = vpack.c.bf16 %v418_v18, %v412_v11  ;;  %v268_v56 = vpack.c.bf16 %v256_v55, %v250_v48  ;;  %v10434_v13 = vld [vmem:[%s12822_s27 + $0x30] sm:$0xff]  ;;  %v10440_v14 = vld [vmem:[%s12822_s27 + $0x28] sm:$0xff] }
 0x129   :  { %934 = vmatprep.subr.bf16.mxu0 %v9278_v16  ;;  %995 = vmatprep.subr.bf16.mxu1 %v9893_v30  ;;  %v422_v24 = vpop.f32.mrf.mxu1  ;;  %v260_v59 = vpop.f32.mrf.mxu0  ;;  %v10453_v16 = vld [vmem:[%s12822_s27 + $0x18] sm:$0xff]  ;;  %v10465_v18 = vld [vmem:[%s12822_s27 + $0x8] sm:$0xff] }
 0x12a   :  { %7946 = vmatprep.mubr.msk.bf16.mxu0 %vm634_vm1, %v430_v20  ;;  %7949 = vmatprep.mubr.msk.bf16.mxu1 %vm634_vm1, %v430_v20  ;;  %v431_v32 = vpack.c.bf16 %v422_v24, %v422_v24  ;;  %v269_v11 = vpack.c.bf16 %v260_v59, %v260_v59  ;;  %v10474_v20 = vld [vmem:[%s12822_s27] sm:$0xff]  ;;  %v7991_v24 = vld [vmem:[%s12823_s8 + $0x70] sm:$0xf]  ;;  %v9347_v55 = vld [vmem:[%s12824_s1 + $0x2a8] ss:$12 sps:$4 sm:$0xff]  }
 0x12b   :  { %687 = vmatmul.mubr.bf16.gmra.mxu0 %v429_v17  ;;  %746 = vmatmul.mubr.bf16.gmra.mxu1 %v429_v17  ;;  %v424_v25 = vpop.f32.mrf.mxu1  ;;  %v262_v61 = vpop.f32.mrf.mxu0  ;;  %v10459_v17 = vld [vmem:[%s12822_s27 + $0x10] sm:$0xff]  ;;  %v9336_v48 = vld [vmem:[%s12824_s1 + $0x1e0] ss:$12 sps:$4 sm:$0xff]  }
 0x12c   :  { %935 = vmatpush1.bf16.msra.mxu0 %v9276_v21  ;;  %996 = vmatpush1.bf16.msra.mxu1 %v9279_v22  ;;  %v432_v29 = vpack.c.bf16 %v424_v25, %v424_v25  ;;  %v270_v2 = vpack.c.bf16 %v262_v61, %v262_v61  ;;  %v7988_v21 = vld [vmem:[%s12823_s8 + $0x58] sm:$0xff]  ;;  %v7989_v22 = vld [vmem:[%s12823_s8 + $0x60] sm:$0xff]  ;;  %v9308_v25 = vld [vmem:[%s12824_s1 + $0x288] ss:$12 sps:$4 sm:$0xff]  }
 0x12d   :  { %936 = vmatprep.subr.bf16.mxu0 %v9282_v23  ;;  %997 = vmatprep.subr.bf16.mxu1 %v9893_v30  ;;  %v7990_v23 = vld [vmem:[%s12823_s8 + $0x68] sm:$0xff] }
 0x12e   :  { %7947 = vmatprep.mubr.msk.bf16.mxu0 %vm634_vm1, %v432_v29  ;;  %7950 = vmatprep.mubr.msk.bf16.mxu1 %vm634_vm1, %v432_v29  ;;  %v9315_v29 = vld [vmem:[%s12824_s1 + $0x278] ss:$12 sps:$4 sm:$0xff]  }
 0x130   :  { %937 = vmatpush1.bf16.msra.mxu0 %v9280_v27  ;;  %998 = vmatpush1.bf16.msra.mxu1 %v9283_v28  ;;  %v9311_v27 = vld [vmem:[%s12824_s1 + $0x290] ss:$12 sps:$4 sm:$0xff]   ;;  %v9314_v28 = vld [vmem:[%s12824_s1 + $0x274] ss:$12 sps:$4 sm:$0xff]  }
 0x131   :  { %938 = vmatprep.subr.bf16.mxu0 %v9286_v31  ;;  %999 = vmatprep.subr.bf16.mxu1 %v9893_v30  ;;  %v9312_v31 = vld [vmem:[%s12824_s1 + $0x270] ss:$12 sps:$4 sm:$0xff]  }
 0x133   :  { %697 = vmatmul.mubr.bf16.gmra.mxu0 %v431_v32  ;;  %754 = vmatmul.mubr.bf16.gmra.mxu1 %v431_v32  ;;  %v9318_v32 = vld [vmem:[%s12824_s1 + $0x25c] ss:$12 sps:$4 sm:$0xff]  }
 0x134   :  { %939 = vmatpush1.bf16.msra.mxu0 %v9284_v34  ;;  %1000 = vmatpush1.bf16.msra.mxu1 %v9287_v35  ;;  %v9319_v34 = vld [vmem:[%s12824_s1 + $0x260] ss:$12 sps:$4 sm:$0xff]   ;;  %v9322_v35 = vld [vmem:[%s12824_s1 + $0x244] ss:$12 sps:$4 sm:$0xff]  }
 0x135   :  { %940 = vmatprep.subr.bf16.mxu0 %v9290_v36  ;;  %1001 = vmatprep.subr.bf16.mxu1 %v9893_v30  ;;  %v9320_v36 = vld [vmem:[%s12824_s1 + $0x240] ss:$12 sps:$4 sm:$0xff]  }
 0x136   :  { %7981 = vmatprep.mubr.msk.bf16.mxu0 %vm634_vm1, %v266_v37  ;;  %7984 = vmatprep.mubr.msk.bf16.mxu1 %vm634_vm1, %v266_v37  ;;  %v9323_v37 = vld [vmem:[%s12824_s1 + $0x248] ss:$12 sps:$4 sm:$0xff]  }
 0x138   :  { %941 = vmatpush1.bf16.msra.mxu0 %v9288_v38  ;;  %1002 = vmatpush1.bf16.msra.mxu1 %v9291_v39  ;;  %v9326_v38 = vld [vmem:[%s12824_s1 + $0x22c] ss:$12 sps:$4 sm:$0xff]   ;;  %v9324_v39 = vld [vmem:[%s12824_s1 + $0x228] ss:$12 sps:$4 sm:$0xff]  }
 0x139   :  { %942 = vmatprep.subr.bf16.mxu0 %v9294_v40  ;;  %1003 = vmatprep.subr.bf16.mxu1 %v9893_v30  ;;  %v9327_v40 = vld [vmem:[%s12824_s1 + $0x230] ss:$12 sps:$4 sm:$0xff]  }
 0x13c   :  { %943 = vmatpush1.bf16.msra.mxu0 %v9292_v41  ;;  %1004 = vmatpush1.bf16.msra.mxu1 %v9295_v42  ;;  %v9330_v41 = vld [vmem:[%s12824_s1 + $0x214] ss:$12 sps:$4 sm:$0xff]   ;;  %v9328_v42 = vld [vmem:[%s12824_s1 + $0x210] ss:$12 sps:$4 sm:$0xff]  }
 0x13d   :  { %944 = vmatprep.subr.bf16.mxu0 %v9298_v43  ;;  %1005 = vmatprep.subr.bf16.mxu1 %v9893_v30  ;;  %v9331_v43 = vld [vmem:[%s12824_s1 + $0x218] ss:$12 sps:$4 sm:$0xff]  }
 0x140   :  { %945 = vmatpush1.bf16.msra.mxu0 %v9296_v45  ;;  %1006 = vmatpush1.bf16.msra.mxu1 %v9299_v46  ;;  %v9332_v45 = vld [vmem:[%s12824_s1 + $0x1f8] ss:$12 sps:$4 sm:$0xff]   ;;  %v9335_v46 = vld [vmem:[%s12824_s1 + $0x200] ss:$12 sps:$4 sm:$0xff]  }
 0x141   :  { %958 = vmatprep.subr.bf16.mxu0 %v9302_v47  ;;  %1019 = vmatprep.subr.bf16.mxu1 %v9893_v30  ;;  %v9338_v47 = vld [vmem:[%s12824_s1 + $0x1e4] ss:$12 sps:$4 sm:$0xff]  }
 0x144   :  { %959 = vmatpush2.bf16.msra.mxu0 %v9300_v49  ;;  %1020 = vmatpush2.bf16.msra.mxu1 %v9303_v50  ;;  %v9339_v49 = vld [vmem:[%s12824_s1 + $0x1e8] ss:$12 sps:$4 sm:$0xff]  }
 0x145   :  { %960 = vmatprep.subr.bf16.mxu0 %v9306_v52  ;;  %1021 = vmatprep.subr.bf16.mxu1 %v9893_v30  ;;  %v9342_v50 = vld [vmem:[%s12824_s1 + $0x2bc] ss:$12 sps:$4 sm:$0xff]   ;;  %v9343_v52 = vld [vmem:[%s12824_s1 + $0x2c0] ss:$12 sps:$4 sm:$0xff]  }
 0x148   :  { %961 = vmatpush2.bf16.msra.mxu0 %v9304_v53  ;;  %1022 = vmatpush2.bf16.msra.mxu1 %v9307_v54  ;;  %v9346_v53 = vld [vmem:[%s12824_s1 + $0x2a4] ss:$12 sps:$4 sm:$0xff]   ;;  %v9344_v54 = vld [vmem:[%s12824_s1 + $0x2a0] ss:$12 sps:$4 sm:$0xff]  }
 0x149   :  { %1080 = vmatprep.subr.mxu0 %v10352_v58  ;;  %1379 = vmatprep.subr.bf16.mxu1 %v9310_v26 }
 0x14b   :  { %963 = vmatmul.mubr.bf16.vlgmr.msra.gmra.mxu0 %v265_v57  ;;  %1024 = vmatmul.mubr.bf16.vlgmr.msra.gmra.mxu1 %v265_v57 }
 0x14c   :  { %7982 = vmatprep.mubr.msk.bf16.mxu0 %vm634_vm1, %v268_v56  ;;  %7985 = vmatprep.mubr.msk.bf16.mxu1 %vm634_vm1, %v268_v56  ;;  %v9350_v56 = vld [vmem:[%s12824_s1 + $0x37c] ss:$12 sps:$4 sm:$0xff]  }
 0x14d   :  { %1081 = vmatpush1.msra.mxu0 %v10360_v60  ;;  %1380 = vmatpush1.bf16.msra.mxu1 %v9308_v25 }
 0x14e   :  { %1082 = vmatprep.subr.mxu0 %v10366_v62  ;;  %1381 = vmatprep.subr.bf16.mxu1 %v9314_v28 }
 0x14f   :  { %1083 = vmatpush1.msra.mxu0 %v10372_v63 }
 0x150   :  { %1084 = vmatprep.subr.mxu0 %v10378_v0 }
 0x151   :  { %1085 = vmatpush1.msra.mxu0 %v10384_v4  ;;  %1382 = vmatpush1.bf16.msra.mxu1 %v9312_v31 }
 0x152   :  { %1086 = vmatprep.subr.mxu0 %v10390_v5  ;;  %1383 = vmatprep.subr.bf16.mxu1 %v9318_v32 }
 0x153   :  { %973 = vmatmul.mubr.bf16.gmra.mxu0 %v267_v3  ;;  %1032 = vmatmul.mubr.bf16.gmra.mxu1 %v267_v3 }
 0x154   :  { %1087 = vmatpush1.msra.mxu0 %v10396_v6  ;;  %7983 = vmatprep.mubr.msk.bf16.mxu0 %vm634_vm1, %v270_v2 }
 0x155   :  { %1088 = vmatprep.subr.mxu0 %v10403_v7  ;;  %7986 = vmatprep.mubr.msk.bf16.mxu1 %vm634_vm1, %v270_v2 }
 0x156   :  { %1089 = vmatpush1.msra.mxu0 %v10410_v8  ;;  %1384 = vmatpush1.bf16.msra.mxu1 %v9316_v33 }
 0x157   :  { %1090 = vmatprep.subr.mxu0 %v10416_v9  ;;  %1385 = vmatprep.subr.bf16.mxu1 %v9322_v35 }
 0x158   :  { %1091 = vmatpush1.msra.mxu0 %v10422_v10 }
 0x159   :  { %1092 = vmatprep.subr.mxu0 %v10428_v12 }
 0x15a   :  { %1093 = vmatpush1.msra.mxu0 %v10434_v13  ;;  %1386 = vmatpush1.bf16.msra.mxu1 %v9320_v36 }
 0x15b   :  { %983 = vmatmul.mubr.bf16.gmra.mxu0 %v269_v11  ;;  %1040 = vmatmul.mubr.bf16.gmra.mxu1 %v269_v11 }
 0x15c   :  { %1094 = vmatprep.subr.mxu0 %v10440_v14  ;;  %1132 = vmatprep.mubr.f32.mxu0 %v9892_v1 }
 0x15d   :  { %1095 = vmatpush1.msra.mxu0 %v10447_v15  ;;  %1387 = vmatprep.subr.bf16.mxu1 %v9326_v38 }
 0x15e   :  { %1096 = vmatprep.subr.mxu0 %v10453_v16  ;;  %1388 = vmatpush1.bf16.msra.mxu1 %v9324_v39 }
 0x15f   :  { %1097 = vmatpush1.msra.mxu0 %v10459_v17  ;;  %1389 = vmatprep.subr.bf16.mxu1 %v9330_v41 }
 0x160   :  { %1098 = vmatprep.subr.mxu0 %v10465_v18 }
 0x161   :  { %1099 = vmatpush1.msra.mxu0 %v10474_v20 }
 0x162   :  { %1440 = vmatprep.subr.bf16.mxu0 %v9893_v30  ;;  %1390 = vmatpush1.bf16.msra.mxu1 %v9328_v42 }
 0x163   :  { %7992 = vmatmul.mubr.msk.f32.vlgmr.msra.gmra.mxu0 %vm154_vm0, %v7987_v19  ;;  %1391 = vmatprep.subr.bf16.mxu1 %v9334_v44 }
 0x164   :  { %1138 = vmatprep.mubr.f32.mxu0 %v9892_v1  ;;  %1441 = vmatpush1.bf16.msra.mxu0 %v9311_v27 }
 0x165   :  { %1442 = vmatprep.subr.bf16.mxu0 %v9893_v30 }
 0x166   :  { %1392 = vmatpush1.bf16.msra.mxu1 %v9332_v45 }
 0x167   :  { %7993 = vmatmul.mubr.msk.f32.gmra.mxu0 %vm154_vm0, %v7988_v21  ;;  %1393 = vmatprep.subr.bf16.mxu1 %v9338_v47 }
 0x168   :  { %1144 = vmatprep.mubr.f32.mxu0 %v9892_v1  ;;  %1443 = vmatpush1.bf16.msra.mxu0 %v9315_v29 }
 0x169   :  { %1444 = vmatprep.subr.bf16.mxu0 %v9893_v30 }
 0x16a   :  { %1394 = vmatpush1.bf16.msra.mxu1 %v9336_v48 }
 0x16b   :  { %7994 = vmatmul.mubr.msk.f32.gmra.mxu0 %vm154_vm0, %v7989_v22  ;;  %1407 = vmatprep.subr.bf16.mxu1 %v9342_v50 }
 0x16c   :  { %1150 = vmatprep.mubr.f32.mxu0 %v9892_v1  ;;  %1445 = vmatpush1.bf16.msra.mxu0 %v9319_v34 }
 0x16d   :  { %1446 = vmatprep.subr.bf16.mxu0 %v9893_v30 }
 0x16e   :  { %1408 = vmatpush2.bf16.msra.mxu1 %v9340_v51 }
 0x16f   :  { %7995 = vmatmul.mubr.msk.f32.gmra.mxu0 %vm154_vm0, %v7990_v23  ;;  %1409 = vmatprep.subr.bf16.mxu1 %v9346_v53 }
 0x170   :  { %1156 = vmatprep.mubr.f32.mxu0 %v9892_v1  ;;  %1447 = vmatpush1.bf16.msra.mxu0 %v9323_v37 }
 0x171   :  { %1448 = vmatprep.subr.bf16.mxu0 %v9893_v30 }
 0x172   :  { %1410 = vmatpush2.bf16.msra.mxu1 %v9344_v54 }
 0x173   :  { %7996 = vmatmul.mubr.msk.f32.gmra.mxu0 %vm154_vm0, %v7991_v24  ;;  %1544 = vmatprep.subr.mxu1 %v10352_v58 }
 0x174   :  { %1449 = vmatpush1.bf16.msra.mxu0 %v9327_v40 }
 0x175   :  { %1450 = vmatprep.subr.bf16.mxu0 %v9893_v30 }
 0x178   :  { %1451 = vmatpush1.bf16.msra.mxu0 %v9331_v43 }
 0x179   :  { %1452 = vmatprep.subr.bf16.mxu0 %v9893_v30 }
 0x17c   :  { %1453 = vmatpush1.bf16.msra.mxu0 %v9335_v46 }
 0x17d   :  { %1454 = vmatprep.subr.bf16.mxu0 %v9893_v30 }
 0x180   :  { %1455 = vmatpush1.bf16.msra.mxu0 %v9339_v49 }
 0x181   :  { %1468 = vmatprep.subr.bf16.mxu0 %v9893_v30 }
 0x184   :  { %1469 = vmatpush2.bf16.msra.mxu0 %v9343_v52 }
 0x185   :  { %1470 = vmatprep.subr.bf16.mxu0 %v9893_v30 }
 0x188   :  { %1471 = vmatpush2.bf16.msra.mxu0 %v9347_v55 }
 0x189   :  { %1843 = vmatprep.subr.bf16.mxu0 %v9350_v56 }
 0x1e3   :  { %v678_v57 = vpop.f32.mrf.mxu0  ;;  %v739_v59 = vpop.f32.mrf.mxu1 }
 0x1e5   :  { %v10602_v61 = vpop.f32.mrf.mxu0  ;;  %v741_v2 = vpop.f32.mrf.mxu1 }
 0x1e7   :  { %v682_v3 = vpop.f32.mrf.mxu0  ;;  %v742_v11 = vpop.f32.mrf.mxu1 }
 0x1e9   :  { %v10604_v19 = vpop.f32.mrf.mxu0  ;;  %v744_v21 = vpop.f32.mrf.mxu1 }
 0x1eb   :  { %v688_v22 = vpop.f32.mrf.mxu0  ;;  %v747_v23 = vpop.f32.mrf.mxu1 }
 0x1ed   :  { %v10606_v24 = vpop.f32.mrf.mxu0  ;;  %v749_v25 = vpop.f32.mrf.mxu1 }
 0x1ef   :  { %v692_v26 = vpop.f32.mrf.mxu0  ;;  %v750_v27 = vpop.f32.mrf.mxu1 }
 0x1f1   :  { %v694_v28 = vpop.f32.mrf.mxu0  ;;  %v752_v29 = vpop.f32.mrf.mxu1 }
 0x1f3   :  { %v698_v31 = vpop.f32.mrf.mxu0  ;;  %v755_v32 = vpop.f32.mrf.mxu1 }
 0x1f5   :  { %v10608_v33 = vpop.f32.mrf.mxu0  ;;  %v757_v34 = vpop.f32.mrf.mxu1 }
 0x1f7   :  { %v702_v35 = vpop.f32.mrf.mxu0  ;;  %v758_v36 = vpop.f32.mrf.mxu1 }
 0x1f9   :  { %v703_v37 = vpop.f32.mrf.mxu0  ;;  %v759_v38 = vpop.f32.mrf.mxu1 }
 0x20b   :  { %v964_v39 = vpop.f32.mrf.mxu0  ;;  %v1025_v40 = vpop.f32.mrf.mxu1 }
 0x20c   :  { %v10610_v41 = vadd.f32 %v964_v39, %v678_v57  ;;  %v10612_v42 = vadd.f32 %v1025_v40, %v739_v59 }
 0x20d   :  { %v10614_v43 = vpop.f32.mrf.mxu0  ;;  %v1027_v44 = vpop.f32.mrf.mxu1 }
 0x20f   :  { %v968_v45 = vpop.f32.mrf.mxu0  ;;  %v1028_v46 = vpop.f32.mrf.mxu1 }
 0x210   :  { %v10616_v47 = vadd.f32 %v968_v45, %v682_v3  ;;  %v10618_v48 = vadd.f32 %v1028_v46, %v742_v11 }
 0x211   :  { %v10620_v49 = vpop.f32.mrf.mxu0  ;;  %v1030_v50 = vpop.f32.mrf.mxu1 }
 0x213   :  { %v974_v51 = vpop.f32.mrf.mxu0  ;;  %v1033_v52 = vpop.f32.mrf.mxu1 }
 0x214   :  { %v10622_v53 = vadd.f32 %v974_v51, %v688_v22  ;;  %v10624_v54 = vadd.f32 %v1033_v52, %v747_v23  ;;  %v9352_v52 = vld [vmem:[%s12824_s1 + $0x360] ss:$12 sps:$4 sm:$0xff]  }
 0x215   :  { %v10626_v55 = vpop.f32.mrf.mxu0  ;;  %v1035_v56 = vpop.f32.mrf.mxu1 }
 0x217   :  { %v978_v57 = vpop.f32.mrf.mxu0  ;;  %v1036_v59 = vpop.f32.mrf.mxu1 }
 0x218   :  { %v10628_v2 = vadd.f32 %v978_v57, %v692_v26  ;;  %v10630_v3 = vadd.f32 %v1036_v59, %v750_v27 }
 0x219   :  { %v980_v11 = vpop.f32.mrf.mxu0  ;;  %v1038_v21 = vpop.f32.mrf.mxu1 }
 0x21a   :  { %v10632_v25 = vadd.f32 %v980_v11, %v694_v28  ;;  %v9348_v28 = vld [vmem:[%s12824_s1 + $0x378] ss:$12 sps:$4 sm:$0xff]  }
 0x21b   :  { %v984_v29 = vpop.f32.mrf.mxu0  ;;  %v1041_v34 = vpop.f32.mrf.mxu1 }
 0x21c   :  { %v10634_v35 = vadd.f32 %v984_v29, %v698_v31  ;;  %v10636_v22 = vadd.f32 %v1041_v34, %v755_v32  ;;  %v9354_v32 = vld [vmem:[%s12824_s1 + $0x364] ss:$12 sps:$4 sm:$0xff]  }
 0x21d   :  { %v10638_v23 = vpop.f32.mrf.mxu0  ;;  %v1043_v36 = vpop.f32.mrf.mxu1 }
 0x21f   :  { %v988_v37 = vpop.f32.mrf.mxu0  ;;  %v1044_v38 = vpop.f32.mrf.mxu1 }
 0x220   :  { %v8073_v37 = vld [vmem:[%s12823_s8 + $0x78] sm:$0xff]  ;;  %v9351_v38 = vld [vmem:[%s12824_s1 + $0x380] ss:$12 sps:$4 sm:$0xff]  }
 0x221   :  { %v989_v39 = vpop.f32.mrf.mxu0  ;;  %v1045_v26 = vpop.f32.mrf.mxu1 }
 0x222   :  { %v8074_v39 = vld [vmem:[%s12823_s8 + $0x80] sm:$0xff]  ;;  %v9355_v26 = vld [vmem:[%s12824_s1 + $0x368] ss:$12 sps:$4 sm:$0xff]  }
 0x223   :  { %v1134_v40 = vpop.f32.mrf.mxu0 }
 0x225   :  { %v1136_v27 = vpop.f32.mrf.mxu0 }
 0x227   :  { %v1140_v44 = vpop.f32.mrf.mxu0 }
 0x228   :  { %v1163_v31 = vpack.c.bf16 %v1140_v44, %v1134_v40  ;;  %v8075_v40 = vld [vmem:[%s12823_s8 + $0x88] sm:$0xff]  ;;  %v8077_v44 = vld [vmem:[%s12823_s8 + $0x98] sm:$0xf] }
 0x229   :  { %v1142_v45 = vpop.f32.mrf.mxu0 }
 0x22a   :  { %v1164_v46 = vpack.c.bf16 %v1142_v45, %v1136_v27  ;;  %v8076_v27 = vld [vmem:[%s12823_s8 + $0x90] sm:$0xff]  ;;  %v9358_v45 = vld [vmem:[%s12824_s1 + $0x34c] ss:$12 sps:$4 sm:$0xff]  }
 0x22b   :  { %v1146_v50 = vpop.f32.mrf.mxu0 }
 0x22c   :  { %8067 = vmatprep.mubr.msk.bf16.mxu1 %vm634_vm1, %v1164_v46  ;;  %8070 = vmatprep.mubr.msk.bf16.mxu0 %vm634_vm1, %v1164_v46  ;;  %v9356_v46 = vld [vmem:[%s12824_s1 + $0x348] ss:$12 sps:$4 sm:$0xff]  }
 0x22d   :  { %v1148_v51 = vpop.f32.mrf.mxu0  ;;  %1412 = vmatmul.mubr.bf16.vlgmr.msra.gmra.mxu1 %v1163_v31  ;;  %1473 = vmatmul.mubr.bf16.vlgmr.msra.gmra.mxu0 %v1163_v31  ;;  %v9362_v31 = vld [vmem:[%s12824_s1 + $0x334] ss:$12 sps:$4 sm:$0xff]  }
 0x22e   :  { %1545 = vmatpush1.msra.mxu1 %v10360_v60  ;;  %1844 = vmatpush1.bf16.msra.mxu0 %v9348_v28  ;;  %v9359_v28 = vld [vmem:[%s12824_s1 + $0x350] ss:$12 sps:$4 sm:$0xff]  }
 0x22f   :  { %v1152_v56 = vpop.f32.mrf.mxu0  ;;  %1546 = vmatprep.subr.mxu1 %v10366_v62  ;;  %1845 = vmatprep.subr.bf16.mxu0 %v9354_v32  ;;  %v9363_v32 = vld [vmem:[%s12824_s1 + $0x338] ss:$12 sps:$4 sm:$0xff]  }
 0x230   :  { %1547 = vmatpush1.msra.mxu1 %v10372_v63  ;;  %v1165_v11 = vpack.c.bf16 %v1152_v56, %v1146_v50  ;;  %v9360_v50 = vld [vmem:[%s12824_s1 + $0x330] ss:$12 sps:$4 sm:$0xff]   ;;  %v9367_v56 = vld [vmem:[%s12824_s1 + $0x320] ss:$12 sps:$4 sm:$0xff]  }
 0x231   :  { %v1154_v57 = vpop.f32.mrf.mxu0  ;;  %1548 = vmatprep.subr.mxu1 %v10378_v0 }
 0x232   :  { %v1166_v59 = vpack.c.bf16 %v1154_v57, %v1148_v51  ;;  %1549 = vmatpush1.msra.mxu1 %v10384_v4  ;;  %1846 = vmatpush1.bf16.msra.mxu0 %v9352_v52  ;;  %v9366_v51 = vld [vmem:[%s12824_s1 + $0x31c] ss:$12 sps:$4 sm:$0xff]   ;;  %v9364_v52 = vld [vmem:[%s12824_s1 + $0x318] ss:$12 sps:$4 sm:$0xff]  }
 0x233   :  { %v1158_v21 = vpop.f32.mrf.mxu0  ;;  %1550 = vmatprep.subr.mxu1 %v10390_v5  ;;  %1847 = vmatprep.subr.bf16.mxu0 %v9358_v45  ;;  %v9370_v57 = vld [vmem:[%s12824_s1 + $0x304] ss:$12 sps:$4 sm:$0xff]  }
 0x234   :  { %8068 = vmatprep.mubr.msk.bf16.mxu1 %vm634_vm1, %v1166_v59  ;;  %8071 = vmatprep.mubr.msk.bf16.mxu0 %vm634_vm1, %v1166_v59  ;;  %v1167_v36 = vpack.c.bf16 %v1158_v21, %v1158_v21  ;;  %v9368_v59 = vld [vmem:[%s12824_s1 + $0x300] ss:$12 sps:$4 sm:$0xff]   ;;  %v9387_v45 = vld [vmem:[%s12824_s1 + $0x398] ss:$12 sps:$4 sm:$0xff]  }
 0x235   :  { %1422 = vmatmul.mubr.bf16.gmra.mxu1 %v1165_v11  ;;  %1481 = vmatmul.mubr.bf16.gmra.mxu0 %v1165_v11  ;;  %v1160_v29 = vpop.f32.mrf.mxu0  ;;  %v9371_v11 = vld [vmem:[%s12824_s1 + $0x308] ss:$12 sps:$4 sm:$0xff]   ;;  %v9374_v21 = vld [vmem:[%s12824_s1 + $0x2ec] ss:$12 sps:$4 sm:$0xff]  }
 0x236   :  { %v1168_v34 = vpack.c.bf16 %v1160_v29, %v1160_v29  ;;  %1551 = vmatpush1.msra.mxu1 %v10396_v6  ;;  %1848 = vmatpush1.bf16.msra.mxu0 %v9356_v46  ;;  %v9372_v29 = vld [vmem:[%s12824_s1 + $0x2e8] ss:$12 sps:$4 sm:$0xff]   ;;  %v9390_v46 = vld [vmem:[%s12824_s1 + $0x46c] ss:$12 sps:$4 sm:$0xff]  }
 0x237   :  { %1552 = vmatprep.subr.mxu1 %v10403_v7  ;;  %1849 = vmatprep.subr.bf16.mxu0 %v9362_v31 }
 0x238   :  { %8069 = vmatprep.mubr.msk.bf16.mxu1 %vm634_vm1, %v1168_v34  ;;  %8072 = vmatprep.mubr.msk.bf16.mxu0 %vm634_vm1, %v1168_v34  ;;  %v9375_v34 = vld [vmem:[%s12824_s1 + $0x2f0] ss:$12 sps:$4 sm:$0xff]  }
 0x239   :  { %1553 = vmatpush1.msra.mxu1 %v10410_v8 }
 0x23a   :  { %1554 = vmatprep.subr.mxu1 %v10416_v9  ;;  %1850 = vmatpush1.bf16.msra.mxu0 %v9360_v50  ;;  %v967_v50 = vadd.f32 %v10614_v43, %v10602_v61 }
 0x23b   :  { %1555 = vmatpush1.msra.mxu1 %v10422_v10  ;;  %1851 = vmatprep.subr.bf16.mxu0 %v9366_v51 }
 0x23c   :  { %1556 = vmatprep.subr.mxu1 %v10428_v12 }
 0x23d   :  { %1432 = vmatmul.mubr.bf16.gmra.mxu1 %v1167_v36  ;;  %1489 = vmatmul.mubr.bf16.gmra.mxu0 %v1167_v36  ;;  %v9378_v36 = vld [vmem:[%s12824_s1 + $0x2d4] ss:$12 sps:$4 sm:$0xff]  }
 0x23e   :  { %1557 = vmatpush1.msra.mxu1 %v10434_v13  ;;  %1596 = vmatprep.mubr.f32.mxu1 %v9892_v1 }
 0x23f   :  { %1558 = vmatprep.subr.mxu1 %v10440_v14  ;;  %1852 = vmatpush1.bf16.msra.mxu0 %v9364_v52 }
 0x240   :  { %1559 = vmatpush1.msra.mxu1 %v10447_v15  ;;  %1853 = vmatprep.subr.bf16.mxu0 %v9370_v57 }
 0x241   :  { %1560 = vmatprep.subr.mxu1 %v10453_v16 }
 0x242   :  { %1561 = vmatpush1.msra.mxu1 %v10459_v17 }
 0x243   :  { %1562 = vmatprep.subr.mxu1 %v10465_v18  ;;  %1854 = vmatpush1.bf16.msra.mxu0 %v9368_v59 }
 0x244   :  { %1563 = vmatpush1.msra.mxu1 %v10474_v20  ;;  %1855 = vmatprep.subr.bf16.mxu0 %v9374_v21 }
 0x245   :  { %8078 = vmatmul.mubr.msk.f32.vlgmr.msra.gmra.mxu1 %vm154_vm0, %v8073_v37  ;;  %1904 = vmatprep.subr.bf16.mxu1 %v9893_v30  ;;  %v9376_v37 = vld [vmem:[%s12824_s1 + $0x2d0] ss:$12 sps:$4 sm:$0xff]  }
 0x246   :  { %1602 = vmatprep.mubr.f32.mxu1 %v9892_v1  ;;  %1905 = vmatpush1.bf16.msra.mxu1 %v9351_v38  ;;  %v9379_v38 = vld [vmem:[%s12824_s1 + $0x2d8] ss:$12 sps:$4 sm:$0xff]  }
 0x247   :  { %1906 = vmatprep.subr.bf16.mxu1 %v9893_v30  ;;  %1856 = vmatpush1.bf16.msra.mxu0 %v9372_v29 }
 0x248   :  { %1857 = vmatprep.subr.bf16.mxu0 %v9378_v36 }
 0x249   :  { %8079 = vmatmul.mubr.msk.f32.gmra.mxu1 %vm154_vm0, %v8074_v39  ;;  %v9382_v39 = vld [vmem:[%s12824_s1 + $0x3ac] ss:$12 sps:$4 sm:$0xff]  }
 0x24a   :  { %1608 = vmatprep.mubr.f32.mxu1 %v9892_v1  ;;  %1907 = vmatpush1.bf16.msra.mxu1 %v9355_v26  ;;  %v9380_v26 = vld [vmem:[%s12824_s1 + $0x3a8] ss:$12 sps:$4 sm:$0xff]  }
 0x24b   :  { %1908 = vmatprep.subr.bf16.mxu1 %v9893_v30  ;;  %1858 = vmatpush1.bf16.msra.mxu0 %v9376_v37 }
 0x24c   :  { %1871 = vmatprep.subr.bf16.mxu0 %v9382_v39 }
 0x24d   :  { %8080 = vmatmul.mubr.msk.f32.gmra.mxu1 %vm154_vm0, %v8075_v40  ;;  %v9383_v40 = vld [vmem:[%s12824_s1 + $0x3b0] ss:$12 sps:$4 sm:$0xff]  }
 0x24e   :  { %1614 = vmatprep.mubr.f32.mxu1 %v9892_v1  ;;  %1909 = vmatpush1.bf16.msra.mxu1 %v9359_v28 }
 0x24f   :  { %1910 = vmatprep.subr.bf16.mxu1 %v9893_v30  ;;  %1872 = vmatpush2.bf16.msra.mxu0 %v9380_v26 }
 0x251   :  { %8081 = vmatmul.mubr.msk.f32.gmra.mxu1 %vm154_vm0, %v8076_v27  ;;  %v9386_v27 = vld [vmem:[%s12824_s1 + $0x394] ss:$12 sps:$4 sm:$0xff]  }
 0x252   :  { %1620 = vmatprep.mubr.f32.mxu1 %v9892_v1  ;;  %1911 = vmatpush1.bf16.msra.mxu1 %v9363_v32 }
 0x253   :  { %1912 = vmatprep.subr.bf16.mxu1 %v9893_v30  ;;  %1873 = vmatprep.subr.bf16.mxu0 %v9386_v27 }
 0x255   :  { %8082 = vmatmul.mubr.msk.f32.gmra.mxu1 %vm154_vm0, %v8077_v44  ;;  %v9384_v44 = vld [vmem:[%s12824_s1 + $0x390] ss:$12 sps:$4 sm:$0xff]  }
 0x256   :  { %1913 = vmatpush1.bf16.msra.mxu1 %v9367_v56  ;;  %1874 = vmatpush2.bf16.msra.mxu0 %v9384_v44 }
 0x257   :  { %1914 = vmatprep.subr.bf16.mxu1 %v9893_v30  ;;  %2008 = vmatprep.subr.mxu0 %v10352_v58 }
 0x25a   :  { %1915 = vmatpush1.bf16.msra.mxu1 %v9371_v11 }
 0x25b   :  { %1916 = vmatprep.subr.bf16.mxu1 %v9893_v30 }
 0x25e   :  { %1917 = vmatpush1.bf16.msra.mxu1 %v9375_v34 }
 0x25f   :  { %1918 = vmatprep.subr.bf16.mxu1 %v9893_v30 }
 0x262   :  { %1919 = vmatpush1.bf16.msra.mxu1 %v9379_v38 }
 0x263   :  { %1932 = vmatprep.subr.bf16.mxu1 %v9893_v30 }
 0x266   :  { %1933 = vmatpush2.bf16.msra.mxu1 %v9383_v40 }
 0x267   :  { %1934 = vmatprep.subr.bf16.mxu1 %v9893_v30 }
 0x26a   :  { %1935 = vmatpush2.bf16.msra.mxu1 %v9387_v45 }
 0x26b   :  { %2307 = vmatprep.subr.bf16.mxu1 %v9390_v46 }
 0x2ed   :  { %v1413_v28 = vpop.f32.mrf.mxu1  ;;  %v1474_v31 = vpop.f32.mrf.mxu0 }
 0x2ee   :  { %v10794_v32 = vadd.f32 %v1413_v28, %v10610_v41  ;;  %v10797_v51 = vadd.f32 %v1474_v31, %v10612_v42 }
 0x2ef   :  { %v1415_v52 = vpop.f32.mrf.mxu1  ;;  %v1476_v56 = vpop.f32.mrf.mxu0 }
 0x2f0   :  { %v10799_v57 = vadd.f32 %v1415_v52, %v967_v50 }
 0x2f1   :  { %v1417_v58 = vpop.f32.mrf.mxu1  ;;  %v1477_v59 = vpop.f32.mrf.mxu0 }
 0x2f2   :  { %v10802_v11 = vadd.f32 %v1417_v58, %v10616_v47  ;;  %v10805_v21 = vadd.f32 %v1477_v59, %v10618_v48 }
 0x2f3   :  { %v10807_v29 = vpop.f32.mrf.mxu1  ;;  %v1479_v61 = vpop.f32.mrf.mxu0 }
 0x2f5   :  { %v1423_v41 = vpop.f32.mrf.mxu1  ;;  %v1482_v43 = vpop.f32.mrf.mxu0 }
 0x2f6   :  { %v10810_v42 = vadd.f32 %v1423_v41, %v10622_v53  ;;  %v10813_v34 = vadd.f32 %v1482_v43, %v10624_v54 }
 0x2f7   :  { %v10815_v36 = vpop.f32.mrf.mxu1  ;;  %v1484_v37 = vpop.f32.mrf.mxu0 }
 0x2f8   :  { %v9392_v37 = vld [vmem:[%s12824_s1 + $0x450] ss:$12 sps:$4 sm:$0xff]  }
 0x2f9   :  { %v1427_v38 = vpop.f32.mrf.mxu1  ;;  %v1485_v47 = vpop.f32.mrf.mxu0 }
 0x2fa   :  { %v10818_v39 = vadd.f32 %v1427_v38, %v10628_v2  ;;  %v10821_v48 = vadd.f32 %v1485_v47, %v10630_v3 }
 0x2fb   :  { %v10823_v26 = vpop.f32.mrf.mxu1  ;;  %v1487_v40 = vpop.f32.mrf.mxu0 }
 0x2fd   :  { %v1433_v27 = vpop.f32.mrf.mxu1  ;;  %v1490_v53 = vpop.f32.mrf.mxu0 }
 0x2fe   :  { %v10826_v44 = vadd.f32 %v1433_v27, %v10634_v35  ;;  %v10829_v54 = vadd.f32 %v1490_v53, %v10636_v22  ;;  %v9388_v35 = vld [vmem:[%s12824_s1 + $0x468] ss:$12 sps:$4 sm:$0xff]  }
 0x2ff   :  { %v10831_v45 = vpop.f32.mrf.mxu1  ;;  %v1492_v46 = vpop.f32.mrf.mxu0  ;;  %v9394_v22 = vld [vmem:[%s12824_s1 + $0x454] ss:$12 sps:$4 sm:$0xff]  }
 0x300   :  { %v9410_v46 = vld [vmem:[%s12824_s1 + $0x3f4] ss:$12 sps:$4 sm:$0xff]  }
 0x301   :  { %v1437_v28 = vpop.f32.mrf.mxu1  ;;  %v1493_v2 = vpop.f32.mrf.mxu0 }
 0x302   :  { %v9408_v28 = vld [vmem:[%s12824_s1 + $0x3f0] ss:$12 sps:$4 sm:$0xff]   ;;  %v9411_v2 = vld [vmem:[%s12824_s1 + $0x3f8] ss:$12 sps:$4 sm:$0xff]  }
 0x303   :  { %v1438_v31 = vpop.f32.mrf.mxu1  ;;  %v1494_v50 = vpop.f32.mrf.mxu0 }
 0x304   :  { %v9414_v31 = vld [vmem:[%s12824_s1 + $0x3dc] ss:$12 sps:$4 sm:$0xff]   ;;  %v9412_v50 = vld [vmem:[%s12824_s1 + $0x3d8] ss:$12 sps:$4 sm:$0xff]  }
 0x305   :  { %v1598_v3 = vpop.f32.mrf.mxu1 }
 0x307   :  { %v1600_v52 = vpop.f32.mrf.mxu1 }
 0x309   :  { %v1604_v56 = vpop.f32.mrf.mxu1 }
 0x30a   :  { %v1627_v61 = vpack.c.bf16 %v1604_v56, %v1598_v3  ;;  %v9415_v3 = vld [vmem:[%s12824_s1 + $0x3e0] ss:$12 sps:$4 sm:$0xff]  }
 0x30b   :  { %v1606_v58 = vpop.f32.mrf.mxu1  ;;  %v9416_v56 = vld [vmem:[%s12824_s1 + $0x3c0] ss:$12 sps:$4 sm:$0xff]  }
 0x30c   :  { %v1628_v59 = vpack.c.bf16 %v1606_v58, %v1600_v52  ;;  %v9418_v52 = vld [vmem:[%s12824_s1 + $0x3c4] ss:$12 sps:$4 sm:$0xff]   ;;  %v9419_v58 = vld [vmem:[%s12824_s1 + $0x3c8] ss:$12 sps:$4 sm:$0xff]  }
 0x30d   :  { %v1610_v41 = vpop.f32.mrf.mxu1 }
 0x30e   :  { %8153 = vmatprep.mubr.msk.bf16.mxu0 %vm634_vm1, %v1628_v59  ;;  %8156 = vmatprep.mubr.msk.bf16.mxu1 %vm634_vm1, %v1628_v59  ;;  %v9422_v59 = vld [vmem:[%s12824_s1 + $0x49c] ss:$12 sps:$4 sm:$0xff]  }
 0x30f   :  { %v1612_v43 = vpop.f32.mrf.mxu1  ;;  %1876 = vmatmul.mubr.bf16.vlgmr.msra.gmra.mxu0 %v1627_v61  ;;  %1937 = vmatmul.mubr.bf16.vlgmr.msra.gmra.mxu1 %v1627_v61  ;;  %v9423_v61 = vld [vmem:[%s12824_s1 + $0x4a0] ss:$12 sps:$4 sm:$0xff]  }
 0x310   :  { %2009 = vmatpush1.msra.mxu0 %v10360_v60  ;;  %2308 = vmatpush1.bf16.msra.mxu1 %v9388_v35  ;;  %v9420_v35 = vld [vmem:[%s12824_s1 + $0x498] ss:$12 sps:$4 sm:$0xff]  }
 0x311   :  { %v1616_v38 = vpop.f32.mrf.mxu1  ;;  %2010 = vmatprep.subr.mxu0 %v10366_v62  ;;  %2309 = vmatprep.subr.bf16.mxu1 %v9394_v22  ;;  %v9424_v22 = vld [vmem:[%s12824_s1 + $0x480] ss:$12 sps:$4 sm:$0xff]  }
 0x312   :  { %2011 = vmatpush1.msra.mxu0 %v10372_v63  ;;  %v1629_v27 = vpack.c.bf16 %v1616_v38, %v1610_v41  ;;  %v9426_v41 = vld [vmem:[%s12824_s1 + $0x484] ss:$12 sps:$4 sm:$0xff]  }
 0x313   :  { %v1618_v47 = vpop.f32.mrf.mxu1  ;;  %2012 = vmatprep.subr.mxu0 %v10378_v0  ;;  %v8159_v0 = vld [vmem:[%s12823_s8 + $0xa0] sm:$0xff] }
 0x314   :  { %v1630_v40 = vpack.c.bf16 %v1618_v47, %v1612_v43  ;;  %2013 = vmatpush1.msra.mxu0 %v10384_v4  ;;  %2310 = vmatpush1.bf16.msra.mxu1 %v9392_v37  ;;  %v9391_v4 = vld [vmem:[%s12824_s1 + $0x470] ss:$12 sps:$4 sm:$0xff]   ;;  %v9427_v43 = vld [vmem:[%s12824_s1 + $0x488] ss:$12 sps:$4 sm:$0xff]  }
 0x315   :  { %v1622_v60 = vpop.f32.mrf.mxu1  ;;  %2014 = vmatprep.subr.mxu0 %v10390_v5  ;;  %v8160_v5 = vld [vmem:[%s12823_s8 + $0xa8] sm:$0xff] }
 0x316   :  { %8154 = vmatprep.mubr.msk.bf16.mxu0 %vm634_vm1, %v1630_v40  ;;  %8157 = vmatprep.mubr.msk.bf16.mxu1 %vm634_vm1, %v1630_v40  ;;  %v1631_v63 = vpack.c.bf16 %v1622_v60, %v1622_v60 }
 0x317   :  { %1886 = vmatmul.mubr.bf16.gmra.mxu0 %v1629_v27  ;;  %1945 = vmatmul.mubr.bf16.gmra.mxu1 %v1629_v27  ;;  %v1624_v62 = vpop.f32.mrf.mxu1 }
 0x318   :  { %v1632_v53 = vpack.c.bf16 %v1624_v62, %v1624_v62  ;;  %2015 = vmatpush1.msra.mxu0 %v10396_v6  ;;  %v9395_v6 = vld [vmem:[%s12824_s1 + $0x458] ss:$12 sps:$4 sm:$0xff]  }
 0x319   :  { %2016 = vmatprep.subr.mxu0 %v10403_v7  ;;  %v8161_v7 = vld [vmem:[%s12823_s8 + $0xb0] sm:$0xff] }
 0x31a   :  { %8155 = vmatprep.mubr.msk.bf16.mxu0 %vm634_vm1, %v1632_v53  ;;  %8158 = vmatprep.mubr.msk.bf16.mxu1 %vm634_vm1, %v1632_v53 }
 0x31b   :  { %2017 = vmatpush1.msra.mxu0 %v10410_v8  ;;  %v8162_v8 = vld [vmem:[%s12823_s8 + $0xb8] sm:$0xff] }
 0x31c   :  { %2018 = vmatprep.subr.mxu0 %v10416_v9  ;;  %v8163_v9 = vld [vmem:[%s12823_s8 + $0xc0] sm:$0xf] }
 0x31d   :  { %2019 = vmatpush1.msra.mxu0 %v10422_v10  ;;  %v9398_v10 = vld [vmem:[%s12824_s1 + $0x43c] ss:$12 sps:$4 sm:$0xff]  }
 0x31e   :  { %2020 = vmatprep.subr.mxu0 %v10428_v12  ;;  %v9396_v12 = vld [vmem:[%s12824_s1 + $0x438] ss:$12 sps:$4 sm:$0xff]   ;;  %2311 = vmatprep.subr.bf16.mxu1 %v9398_v10 }
 0x31f   :  { %1896 = vmatmul.mubr.bf16.gmra.mxu0 %v1631_v63  ;;  %1953 = vmatmul.mubr.bf16.gmra.mxu1 %v1631_v63 }
 0x320   :  { %2021 = vmatpush1.msra.mxu0 %v10434_v13  ;;  %2060 = vmatprep.mubr.f32.mxu0 %v9892_v1  ;;  %v9399_v13 = vld [vmem:[%s12824_s1 + $0x440] ss:$12 sps:$4 sm:$0xff]  }
 0x321   :  { %2022 = vmatprep.subr.mxu0 %v10440_v14  ;;  %2312 = vmatpush1.bf16.msra.mxu1 %v9396_v12  ;;  %v9402_v14 = vld [vmem:[%s12824_s1 + $0x424] ss:$12 sps:$4 sm:$0xff]  }
 0x322   :  { %2023 = vmatpush1.msra.mxu0 %v10447_v15  ;;  %v9400_v15 = vld [vmem:[%s12824_s1 + $0x420] ss:$12 sps:$4 sm:$0xff]   ;;  %2313 = vmatprep.subr.bf16.mxu1 %v9402_v14 }
 0x323   :  { %2024 = vmatprep.subr.mxu0 %v10453_v16  ;;  %v9403_v16 = vld [vmem:[%s12824_s1 + $0x428] ss:$12 sps:$4 sm:$0xff]  }
 0x324   :  { %2025 = vmatpush1.msra.mxu0 %v10459_v17  ;;  %v9406_v17 = vld [vmem:[%s12824_s1 + $0x40c] ss:$12 sps:$4 sm:$0xff]  }
 0x325   :  { %2026 = vmatprep.subr.mxu0 %v10465_v18  ;;  %2314 = vmatpush1.bf16.msra.mxu1 %v9400_v15  ;;  %v9404_v18 = vld [vmem:[%s12824_s1 + $0x408] ss:$12 sps:$4 sm:$0xff]  }
 0x326   :  { %2027 = vmatpush1.msra.mxu0 %v10474_v20  ;;  %v9407_v20 = vld [vmem:[%s12824_s1 + $0x410] ss:$12 sps:$4 sm:$0xff]   ;;  %2315 = vmatprep.subr.bf16.mxu1 %v9406_v17 }
 0x327   :  { %8164 = vmatmul.mubr.msk.f32.vlgmr.msra.gmra.mxu0 %vm154_vm0, %v8159_v0  ;;  %2368 = vmatprep.subr.bf16.mxu0 %v9893_v30 }
 0x328   :  { %2066 = vmatprep.mubr.f32.mxu0 %v9892_v1  ;;  %2369 = vmatpush1.bf16.msra.mxu0 %v9391_v4 }
 0x329   :  { %2370 = vmatprep.subr.bf16.mxu0 %v9893_v30  ;;  %2316 = vmatpush1.bf16.msra.mxu1 %v9404_v18 }
 0x32a   :  { %2317 = vmatprep.subr.bf16.mxu1 %v9410_v46 }
 0x32b   :  { %8165 = vmatmul.mubr.msk.f32.gmra.mxu0 %vm154_vm0, %v8160_v5 }
 0x32c   :  { %2072 = vmatprep.mubr.f32.mxu0 %v9892_v1  ;;  %2371 = vmatpush1.bf16.msra.mxu0 %v9395_v6 }
 0x32d   :  { %2372 = vmatprep.subr.bf16.mxu0 %v9893_v30  ;;  %2318 = vmatpush1.bf16.msra.mxu1 %v9408_v28 }
 0x32e   :  { %2319 = vmatprep.subr.bf16.mxu1 %v9414_v31 }
 0x32f   :  { %8166 = vmatmul.mubr.msk.f32.gmra.mxu0 %vm154_vm0, %v8161_v7 }
 0x330   :  { %2078 = vmatprep.mubr.f32.mxu0 %v9892_v1  ;;  %2373 = vmatpush1.bf16.msra.mxu0 %v9399_v13 }
 0x331   :  { %2374 = vmatprep.subr.bf16.mxu0 %v9893_v30  ;;  %2320 = vmatpush1.bf16.msra.mxu1 %v9412_v50 }
 0x332   :  { %2321 = vmatprep.subr.bf16.mxu1 %v9418_v52 }
 0x333   :  { %8167 = vmatmul.mubr.msk.f32.gmra.mxu0 %vm154_vm0, %v8162_v8 }
 0x334   :  { %2084 = vmatprep.mubr.f32.mxu0 %v9892_v1  ;;  %2375 = vmatpush1.bf16.msra.mxu0 %v9403_v16 }
 0x335   :  { %2376 = vmatprep.subr.bf16.mxu0 %v9893_v30  ;;  %2322 = vmatpush1.bf16.msra.mxu1 %v9416_v56 }
 0x336   :  { %2335 = vmatprep.subr.bf16.mxu1 %v9422_v59 }
 0x337   :  { %8168 = vmatmul.mubr.msk.f32.gmra.mxu0 %vm154_vm0, %v8163_v9 }
 0x338   :  { %2377 = vmatpush1.bf16.msra.mxu0 %v9407_v20 }
 0x339   :  { %2378 = vmatprep.subr.bf16.mxu0 %v9893_v30  ;;  %2336 = vmatpush2.bf16.msra.mxu1 %v9420_v35 }
 0x33a   :  { %2337 = vmatprep.subr.bf16.mxu1 %v9426_v41 }
 0x33c   :  { %2379 = vmatpush1.bf16.msra.mxu0 %v9411_v2 }
 0x33d   :  { %2380 = vmatprep.subr.bf16.mxu0 %v9893_v30  ;;  %2338 = vmatpush2.bf16.msra.mxu1 %v9424_v22 }
 0x340   :  { %2381 = vmatpush1.bf16.msra.mxu0 %v9415_v3 }
 0x341   :  { %2382 = vmatprep.subr.bf16.mxu0 %v9893_v30 }
 0x344   :  { %2383 = vmatpush1.bf16.msra.mxu0 %v9419_v58 }
 0x345   :  { %2396 = vmatprep.subr.bf16.mxu0 %v9893_v30 }
 0x348   :  { %2397 = vmatpush2.bf16.msra.mxu0 %v9423_v61 }
 0x349   :  { %2398 = vmatprep.subr.bf16.mxu0 %v9893_v30 }
 0x34c   :  { %2399 = vmatpush2.bf16.msra.mxu0 %v9427_v43 }
 0x3cf   :  { %v1877_v37 = vpop.f32.mrf.mxu0  ;;  %v1938_v38 = vpop.f32.mrf.mxu1 }
 0x3d0   :  { %v10981_v47 = vadd.f32 %v1877_v37, %v10794_v32  ;;  %v10984_v40 = vadd.f32 %v1938_v38, %v10797_v51  ;;  %v2561_v37 = vld [vmem:[%s12825_s24 + $0xf8] sm:$0xff] }
 0x3d1   :  { %v1879_v27 = vpop.f32.mrf.mxu0  ;;  %v1940_v60 = vpop.f32.mrf.mxu1  ;;  %8833 = vmatprep.subr.mxu1 %v2561_v37  ;;  %v2545_v38 = vld [vmem:[%s12825_s24 + $0x78] sm:$0xff]  ;;  %8873 = vmatprep.subr.mxu0 %v2561_v37 }
 0x3d2   :  { %v10987_v62 = vadd.f32 %v1879_v27, %v10799_v57  ;;  %v2560_v27 = vld [vmem:[%s12825_s24 + $0xf0] sm:$0xff] }
 0x3d3   :  { %v1881_v53 = vpop.f32.mrf.mxu0  ;;  %v1941_v63 = vpop.f32.mrf.mxu1  ;;  %v2544_v60 = vld [vmem:[%s12825_s24 + $0x70] sm:$0xff] }
 0x3d4   :  { %v10990_v0 = vadd.f32 %v1881_v53, %v10802_v11  ;;  %v10993_v4 = vadd.f32 %v1941_v63, %v10805_v21  ;;  %v1506_v21 = vadd.f32 %v10823_v26, %v10632_v25  ;;  %v2559_v53 = vld [vmem:[%s12825_s24 + $0xe8] sm:$0xff] }
 0x3d5   :  { %v10995_v5 = vpop.f32.mrf.mxu0  ;;  %v1943_v32 = vpop.f32.mrf.mxu1  ;;  %v2543_v63 = vld [vmem:[%s12825_s24 + $0x68] sm:$0xff] }
 0x3d6   :  { %v2558_v32 = vld [vmem:[%s12825_s24 + $0xe0] sm:$0xff] }
 0x3d7   :  { %v1887_v6 = vpop.f32.mrf.mxu0  ;;  %v1946_v7 = vpop.f32.mrf.mxu1 }
 0x3d8   :  { %v10998_v51 = vadd.f32 %v1887_v6, %v10810_v42  ;;  %v11001_v8 = vadd.f32 %v1946_v7, %v10813_v34  ;;  %v2542_v6 = vld [vmem:[%s12825_s24 + $0x60] sm:$0xff]  ;;  %v2557_v7 = vld [vmem:[%s12825_s24 + $0xd8] sm:$0xff] }
 0x3d9   :  { %v11003_v57 = vpop.f32.mrf.mxu0  ;;  %v1948_v9 = vpop.f32.mrf.mxu1 }
 0x3da   :  { %v2541_v9 = vld [vmem:[%s12825_s24 + $0x58] sm:$0xff] }
 0x3db   :  { %v1891_v10 = vpop.f32.mrf.mxu0  ;;  %v1949_v11 = vpop.f32.mrf.mxu1 }
 0x3dc   :  { %v11008_v12 = vadd.f32 %v1891_v10, %v10818_v39  ;;  %v11011_v13 = vadd.f32 %v1949_v11, %v10821_v48  ;;  %v2556_v10 = vld [vmem:[%s12825_s24 + $0xd0] sm:$0xff] }
 0x3dd   :  { %v1893_v14 = vpop.f32.mrf.mxu0  ;;  %v1951_v42 = vpop.f32.mrf.mxu1  ;;  %v2540_v11 = vld [vmem:[%s12825_s24 + $0x50] sm:$0xff] }
 0x3de   :  { %v11013_v15 = vadd.f32 %v1893_v14, %v1506_v21  ;;  %v2555_v21 = vld [vmem:[%s12825_s24 + $0xc8] sm:$0xff]  ;;  %v2554_v42 = vld [vmem:[%s12825_s24 + $0xc0] sm:$0xff] }
 0x3df   :  { %v1897_v34 = vpop.f32.mrf.mxu0  ;;  %v1954_v16 = vpop.f32.mrf.mxu1  ;;  %v2539_v14 = vld [vmem:[%s12825_s24 + $0x48] sm:$0xff] }
 0x3e0   :  { %v11016_v17 = vadd.f32 %v1897_v34, %v10826_v44  ;;  %v11019_v18 = vadd.f32 %v1954_v16, %v10829_v54  ;;  %v2538_v34 = vld [vmem:[%s12825_s24 + $0x40] sm:$0xff]  ;;  %v2553_v16 = vld [vmem:[%s12825_s24 + $0xb8] sm:$0xff] }
 0x3e1   :  { %v11021_v20 = vpop.f32.mrf.mxu0  ;;  %v1956_v25 = vpop.f32.mrf.mxu1 }
 0x3e2   :  { %v2537_v25 = vld [vmem:[%s12825_s24 + $0x38] sm:$0xff] }
 0x3e3   :  { %v1901_v39 = vpop.f32.mrf.mxu0  ;;  %v1957_v26 = vpop.f32.mrf.mxu1 }
 0x3e4   :  { %v2552_v39 = vld [vmem:[%s12825_s24 + $0xb0] sm:$0xff] }
 0x3e5   :  { %v1902_v46 = vpop.f32.mrf.mxu0  ;;  %v1958_v48 = vpop.f32.mrf.mxu1  ;;  %v2536_v26 = vld [vmem:[%s12825_s24 + $0x30] sm:$0xff] }
 0x3e6   :  { %v2551_v46 = vld [vmem:[%s12825_s24 + $0xa8] sm:$0xff] }
 0x3e7   :  { %v2062_v28 = vpop.f32.mrf.mxu0  ;;  %v2535_v48 = vld [vmem:[%s12825_s24 + $0x28] sm:$0xff] }
 0x3e9   :  { %v2064_v2 = vpop.f32.mrf.mxu0 }
 0x3eb   :  { %v2068_v31 = vpop.f32.mrf.mxu0 }
 0x3ec   :  { %v2091_v52 = vpack.c.bf16 %v2068_v31, %v2062_v28  ;;  %v2550_v28 = vld [vmem:[%s12825_s24 + $0xa0] sm:$0xff]  ;;  %v2549_v31 = vld [vmem:[%s12825_s24 + $0x98] sm:$0xff] }
 0x3ed   :  { %v2070_v50 = vpop.f32.mrf.mxu0 }
 0x3ee   :  { %v2092_v3 = vpack.c.bf16 %v2070_v50, %v2064_v2  ;;  %v2534_v2 = vld [vmem:[%s12825_s24 + $0x20] sm:$0xff]  ;;  %v2533_v50 = vld [vmem:[%s12825_s24 + $0x18] sm:$0xff] }
 0x3ef   :  { %v2074_v56 = vpop.f32.mrf.mxu0 }
 0x3f0   :  { %8239 = vmatprep.mubr.msk.bf16.mxu1 %vm634_vm1, %v2092_v3  ;;  %8242 = vmatprep.mubr.msk.bf16.mxu0 %vm634_vm1, %v2092_v3  ;;  %v2548_v3 = vld [vmem:[%s12825_s24 + $0x90] sm:$0xff] }
 0x3f1   :  { %v2076_v44 = vpop.f32.mrf.mxu0  ;;  %2340 = vmatmul.mubr.bf16.vlgmr.msra.gmra.mxu1 %v2091_v52  ;;  %2401 = vmatmul.mubr.bf16.vlgmr.msra.gmra.mxu0 %v2091_v52  ;;  %v2532_v52 = vld [vmem:[%s12825_s24 + $0x10] sm:$0xff] }
 0x3f2   :  { %8834 = vmatpush3.msra.mxu1 %v2545_v38  ;;  %8874 = vmatpush3.msra.mxu0 %v2545_v38 }
 0x3f3   :  { %v2080_v54 = vpop.f32.mrf.mxu0  ;;  %8835 = vmatprep.subr.mxu1 %v2560_v27  ;;  %8875 = vmatprep.subr.mxu0 %v2560_v27 }
 0x3f4   :  { %v2093_v35 = vpack.c.bf16 %v2080_v54, %v2074_v56  ;;  %8836 = vmatpush3.msra.mxu1 %v2544_v60  ;;  %8876 = vmatpush3.msra.mxu0 %v2544_v60  ;;  %v2547_v56 = vld [vmem:[%s12825_s24 + $0x88] sm:$0xff]  ;;  %v2546_v54 = vld [vmem:[%s12825_s24 + $0x80] sm:$0xff]  ;;  %v977_v60 = vadd.f32 %v10626_v55, %v10606_v24 }
 0x3f5   :  { %v2082_v58 = vpop.f32.mrf.mxu0  ;;  %8837 = vmatprep.subr.mxu1 %v2559_v53  ;;  %8877 = vmatprep.subr.mxu0 %v2559_v53  ;;  %v987_v53 = vadd.f32 %v10638_v23, %v10608_v33 }
 0x3f6   :  { %v2094_v59 = vpack.c.bf16 %v2082_v58, %v2076_v44  ;;  %8838 = vmatpush3.msra.mxu1 %v2543_v63  ;;  %8878 = vmatpush3.msra.mxu0 %v2543_v63  ;;  %v2531_v44 = vld [vmem:[%s12825_s24 + $0x8] sm:$0xff]  ;;  %v2530_v58 = vld [vmem:[%s12825_s24] sm:$0xff] }
 0x3f7   :  { %v2086_v61 = vpop.f32.mrf.mxu0  ;;  %8839 = vmatprep.subr.mxu1 %v2558_v32  ;;  %8879 = vmatprep.subr.mxu0 %v2558_v32 }
 0x3f8   :  { %8240 = vmatprep.mubr.msk.bf16.mxu1 %vm634_vm1, %v2094_v59  ;;  %8243 = vmatprep.mubr.msk.bf16.mxu0 %vm634_vm1, %v2094_v59  ;;  %v2095_v43 = vpack.c.bf16 %v2086_v61, %v2086_v61  ;;  %v971_v61 = vadd.f32 %v10620_v49, %v10604_v19 }
 0x3f9   :  { %2350 = vmatmul.mubr.bf16.gmra.mxu1 %v2093_v35  ;;  %2409 = vmatmul.mubr.bf16.gmra.mxu0 %v2093_v35  ;;  %v2088_v41 = vpop.f32.mrf.mxu0 }
 0x3fa   :  { %v2096_v22 = vpack.c.bf16 %v2088_v41, %v2088_v41  ;;  %8840 = vmatpush3.msra.mxu1 %v2542_v6  ;;  %8880 = vmatpush3.msra.mxu0 %v2542_v6 }
 0x3fb   :  { %8841 = vmatprep.subr.mxu1 %v2557_v7  ;;  %8881 = vmatprep.subr.mxu0 %v2557_v7 }
 0x3fc   :  { %8241 = vmatprep.mubr.msk.bf16.mxu1 %vm634_vm1, %v2096_v22  ;;  %8244 = vmatprep.mubr.msk.bf16.mxu0 %vm634_vm1, %v2096_v22 }
 0x3fd   :  { %8842 = vmatpush3.msra.mxu1 %v2541_v9  ;;  %8882 = vmatpush3.msra.mxu0 %v2541_v9 }
 0x3fe   :  { %8843 = vmatprep.subr.mxu1 %v2556_v10  ;;  %8883 = vmatprep.subr.mxu0 %v2556_v10 }
 0x3ff   :  { %8844 = vmatpush3.msra.mxu1 %v2540_v11  ;;  %8884 = vmatpush3.msra.mxu0 %v2540_v11 }
 0x400   :  { %8845 = vmatprep.subr.mxu1 %v2555_v21  ;;  %8885 = vmatprep.subr.mxu0 %v2555_v21 }
 0x401   :  { %2360 = vmatmul.mubr.bf16.gmra.mxu1 %v2095_v43  ;;  %2417 = vmatmul.mubr.bf16.gmra.mxu0 %v2095_v43  ;;  %v1500_v43 = vadd.f32 %v10807_v29, %v971_v61  ;;  %v1503_v29 = vadd.f32 %v10815_v36, %v977_v60 }
 0x402   :  { %8846 = vmatpush3.msra.mxu1 %v2539_v14  ;;  %8886 = vmatpush3.msra.mxu0 %v2539_v14 }
 0x403   :  { %8847 = vmatprep.subr.mxu1 %v2554_v42  ;;  %8887 = vmatprep.subr.mxu0 %v2554_v42  ;;  %v1964_v63 = vadd.f32 %v10995_v5, %v1500_v43 }
 0x404   :  { %8848 = vmatpush3.msra.mxu1 %v2538_v34  ;;  %8888 = vmatpush3.msra.mxu0 %v2538_v34 }
 0x405   :  { %8849 = vmatprep.subr.mxu1 %v2553_v16  ;;  %8889 = vmatprep.subr.mxu0 %v2553_v16 }
 0x406   :  { %8850 = vmatpush3.msra.mxu1 %v2537_v25  ;;  %8890 = vmatpush3.msra.mxu0 %v2537_v25 }
 0x407   :  { %8851 = vmatprep.subr.mxu1 %v2552_v39  ;;  %8891 = vmatprep.subr.mxu0 %v2552_v39 }
 0x408   :  { %8852 = vmatpush3.msra.mxu1 %v2536_v26  ;;  %8892 = vmatpush3.msra.mxu0 %v2536_v26 }
 0x409   :  { %8853 = vmatprep.subr.mxu1 %v2551_v46  ;;  %8893 = vmatprep.subr.mxu0 %v2551_v46 }
 0x40a   :  { %8854 = vmatpush3.msra.mxu1 %v2535_v48  ;;  %8894 = vmatpush3.msra.mxu0 %v2535_v48 }
 0x40b   :  { %8855 = vmatprep.subr.mxu1 %v2550_v28  ;;  %8895 = vmatprep.subr.mxu0 %v2550_v28 }
 0x40c   :  { %8856 = vmatpush3.msra.mxu1 %v2534_v2  ;;  %8896 = vmatpush3.msra.mxu0 %v2534_v2 }
 0x40d   :  { %8857 = vmatprep.subr.mxu1 %v2549_v31  ;;  %8897 = vmatprep.subr.mxu0 %v2549_v31 }
 0x40e   :  { %8858 = vmatpush3.msra.mxu1 %v2533_v50  ;;  %8898 = vmatpush3.msra.mxu0 %v2533_v50 }
 0x40f   :  { %8859 = vmatprep.subr.mxu1 %v2548_v3  ;;  %8899 = vmatprep.subr.mxu0 %v2548_v3 }
 0x410   :  { %8860 = vmatpush3.msra.mxu1 %v2532_v52  ;;  %8900 = vmatpush3.msra.mxu0 %v2532_v52 }
 0x411   :  { %8861 = vmatprep.subr.mxu1 %v2547_v56  ;;  %8901 = vmatprep.subr.mxu0 %v2547_v56 }
 0x412   :  { %8862 = vmatpush3.msra.mxu1 %v2531_v44  ;;  %8902 = vmatpush3.msra.mxu0 %v2531_v44 }
 0x413   :  { %8863 = vmatprep.subr.mxu1 %v2546_v54  ;;  %8903 = vmatprep.subr.mxu0 %v2546_v54 }
 0x414   :  { %8864 = vmatpush3.msra.mxu1 %v2530_v58  ;;  %8904 = vmatpush3.msra.mxu0 %v2530_v58 }
 0x415   :  { %9004 = vmatprep.subr.mxu1 %v9892_v1 }
 0x4b1   :  { %v2341_v59 = vpop.f32.mrf.mxu1  ;;  %v2402_v35 = vpop.f32.mrf.mxu0 }
 0x4b2   :  { %v11130_v27 = vadd.f32 %v2402_v35, %v10984_v40  ;;  %v1509_v40 = vadd.f32 %v10831_v45, %v987_v53  ;;  %v11146_v7 = vadd.f32 %v2341_v59, %v10981_v47 }
 0x4b3   :  { %v2343_v41 = vpop.f32.mrf.mxu1  ;;  %v2404_v22 = vpop.f32.mrf.mxu0 }
 0x4b4   :  { %v2480_v23 = vmul.f32 %v11130_v27, %v11130_v27  ;;  %v1973_v5 = vadd.f32 %v11021_v20, %v1509_v40 }
 0x4b5   :  { %v2345_v37 = vpop.f32.mrf.mxu1  ;;  %v2405_v38 = vpop.f32.mrf.mxu0 }
 0x4b6   :  { %v11138_v19 = vadd.f32 %v2345_v37, %v10990_v0  ;;  %v11141_v49 = vadd.f32 %v2405_v38, %v10993_v4  ;;  %v11153_v0 = vadd.f32 %v2343_v41, %v10987_v62  ;;  %v1967_v4 = vadd.f32 %v11003_v57, %v1503_v29 }
 0x4b7   :  { %v2347_v32 = vpop.f32.mrf.mxu1  ;;  %v2407_v6 = vpop.f32.mrf.mxu0  ;;  %v2478_v57 = vmul.f32 %v11146_v7, %v11146_v7  ;;  %v2515_v42 = vsel %vm634_vm1, %v2480_v23, 0.0 }
 0x4b8   :  { %v11148_v24 = vadd.f32 %v2347_v32, %v1964_v63  ;;  %v2481_v9 = vmul.f32 %v11138_v19, %v11138_v19  ;;  %v2463_v10 = vsel %vm634_vm1, %v11141_v49, 0.0  ;;  %v2483_v62 = vmul.f32 %v11141_v49, %v11141_v49 }
 0x4b9   :  { %v2351_v33 = vpop.f32.mrf.mxu1  ;;  %v2410_v55 = vpop.f32.mrf.mxu0  ;;  %v2479_v34 = vmul.f32 %v11153_v0, %v11153_v0  ;;  %v2439_v25 = vadd.f32 %v11138_v19, %v11146_v7 }
 0x4ba   :  { %v11158_v36 = vadd.f32 %v2351_v33, %v10998_v51  ;;  %v11167_v11 = vadd.f32 %v2410_v55, %v11001_v8  ;;  %v2462_v51 = vsel %vm634_vm1, %v11130_v27, 0.0  ;;  %v2482_v20 = vmul.f32 %v11148_v24, %v11148_v24 }
 0x4bb   :  { %v2353_v45 = vpop.f32.mrf.mxu1  ;;  %v2412_v47 = vpop.f32.mrf.mxu0  ;;  %v2464_v39 = vadd.f32 %v2463_v10, %v2462_v51  ;;  %v2493_v2 = vadd.f32 %v2481_v9, %v2478_v57  ;;  %v2516_v31 = vsel %vm634_vm1, %v2483_v62, 0.0  ;;  %v2451_v50 = vadd.f32 %v11148_v24, %v11153_v0 }
 0x4bc   :  { %v2484_v26 = vmul.f32 %v11158_v36, %v11158_v36  ;;  %v11188_v46 = vadd.f32 %v2353_v45, %v1967_v4  ;;  %v2504_v3 = vadd.f32 %v2482_v20, %v2479_v34  ;;  %v2440_v52 = vadd.f32 %v2439_v25, %v11158_v36 }
 0x4bd   :  { %v2355_v21 = vpop.f32.mrf.mxu1  ;;  %v2413_v14 = vpop.f32.mrf.mxu0  ;;  %v2517_v34 = vadd.f32 %v2516_v31, %v2515_v42 }
 0x4be   :  { %v11179_v8 = vadd.f32 %v2355_v21, %v11008_v12  ;;  %v11182_v16 = vadd.f32 %v2413_v14, %v11011_v13  ;;  %v2465_v12 = vsel %vm634_vm1, %v11167_v11, 0.0  ;;  %v2486_v13 = vmul.f32 %v11167_v11, %v11167_v11 }
 0x4bf   :  { %v2357_v48 = vpop.f32.mrf.mxu1  ;;  %v2415_v28 = vpop.f32.mrf.mxu0  ;;  %v2494_v41 = vadd.f32 %v2493_v2, %v2484_v26  ;;  %v2466_v22 = vadd.f32 %v2465_v12, %v2464_v39  ;;  %v2485_v43 = vmul.f32 %v11188_v46, %v11188_v46  ;;  %v2452_v55 = vadd.f32 %v2451_v50, %v11188_v46 }
 0x4c0   :  { %v2487_v56 = vmul.f32 %v11179_v8, %v11179_v8  ;;  %v2467_v58 = vsel %vm634_vm1, %v11182_v16, 0.0  ;;  %v11203_v59 = vadd.f32 %v2357_v48, %v11013_v15  ;;  %v2441_v37 = vadd.f32 %v2440_v52, %v11179_v8 }
 0x4c1   :  { %v2361_v44 = vpop.f32.mrf.mxu1  ;;  %v2418_v54 = vpop.f32.mrf.mxu0  ;;  %v2518_v53 = vsel %vm634_vm1, %v2486_v13, 0.0  ;;  %v2468_v32 = vadd.f32 %v2467_v58, %v2466_v22  ;;  %v2489_v23 = vmul.f32 %v11182_v16, %v11182_v16  ;;  %v2505_v47 = vadd.f32 %v2504_v3, %v2485_v43 }
 0x4c2   :  { %v11206_v35 = vadd.f32 %v2361_v44, %v11016_v17  ;;  %v11209_v61 = vadd.f32 %v2418_v54, %v11019_v18  ;;  %v2495_v63 = vadd.f32 %v2494_v41, %v2487_v56  ;;  %v2488_v4 = vmul.f32 %v11203_v59, %v11203_v59 }
 0x4c3   :  { %v2363_v38 = vpop.f32.mrf.mxu1  ;;  %v2420_v60 = vpop.f32.mrf.mxu0  ;;  %v2520_v26 = vsel %vm634_vm1, %v2489_v23, 0.0  ;;  %v2519_v12 = vadd.f32 %v2518_v53, %v2517_v34 }
 0x4c4   :  { %v2443_v15 = vsel %vm2442_vm2, %v11206_v35, 0.0  ;;  %v2490_v17 = vmul.f32 %v11206_v35, %v11206_v35  ;;  %v2470_v18 = vsel %vm2469_vm3, %v11209_v61, 0.0  ;;  %v11221_v29 = vadd.f32 %v2363_v38, %v1973_v5 }
 0x4c5   :  { %v2444_v6 = vadd.f32 %v2443_v15, %v2441_v37  ;;  %v2365_v40 = vpop.f32.mrf.mxu1  ;;  %v2421_v33 = vpop.f32.mrf.mxu0  ;;  %v2471_v62 = vadd.f32 %v2470_v18, %v2468_v32  ;;  %v2453_v5 = vadd.f32 %v2452_v55, %v11203_v59  ;;  %v2492_v20 = vmul.f32 %v11209_v61, %v11209_v61 }
 0x4c6   :  { %v2496_v45 = vsel %vm2442_vm2, %v2490_v17, 0.0  ;;  %v2454_v21 = vsel %vm2442_vm2, %v11221_v29, 0.0  ;;  %v2491_v14 = vmul.f32 %v11221_v29, %v11221_v29  ;;  %v2506_v48 = vadd.f32 %v2505_v47, %v2488_v4  ;;  %v2565_v47 = vld [vmem:[%s12825_s24 + $0x118] sm:$0xff] }
 0x4c7   :  { %v2445_v9 = vrot.slane %v2444_v6, 4  ;;  %v2497_v10 = vadd.f32 %v2496_v45, %v2495_v63  ;;  %v2366_v57 = vpop.f32.mrf.mxu1  ;;  %v2422_v51 = vpop.f32.mrf.mxu0  ;;  %v2455_v28 = vadd.f32 %v2454_v21, %v2453_v5  ;;  %v2472_v3 = vrot.slane %v2471_v62, 4  ;;  %v2563_v5 = vld [vmem:[%s12825_s24 + $0x108] sm:$0xff] }
 0x4c8   :  { %v2507_v2 = vsel %vm2442_vm2, %v2491_v14, 0.0  ;;  %v2522_v52 = vsel %vm2469_vm3, %v2492_v20, 0.0  ;;  %v2521_v54 = vadd.f32 %v2520_v26, %v2519_v12  ;;  %v2562_v20 = vld [vmem:[%s12825_s24 + $0x100] sm:$0xff] }
 0x4c9   :  { %v2446_v25 = vadd.f32 %v2445_v9, %v2444_v6  ;;  %v2498_v39 = vrot.slane %v2497_v10, 4  ;;  %v2456_v56 = vrot.slane %v2455_v28, 4  ;;  %v2508_v44 = vadd.f32 %v2507_v2, %v2506_v48  ;;  %v2866_v26 = vld [vmem:[#allocation3 + $0x18] sm:$0xff]  ;;  %v2864_v48 = vld [vmem:[#allocation3 + $0x8] sm:$0xff] }
 0x4ca   :  { %v2473_v22 = vadd.f32 %v2472_v3, %v2471_v62  ;;  %v2523_v43 = vadd.f32 %v2522_v52, %v2521_v54 }
 0x4cb   :  { %v2447_v13 = vrot.slane %v2446_v25, 2  ;;  %v2499_v50 = vadd.f32 %v2498_v39, %v2497_v10  ;;  %v2457_v41 = vadd.f32 %v2456_v56, %v2455_v28  ;;  %v2509_v42 = vrot.slane %v2508_v44, 4  ;;  %v2564_v10 = vld [vmem:[%s12825_s24 + $0x110] sm:$0xff]  ;;  %v2867_v39 = vld [vmem:[#allocation3 + $0x20] sm:$0xff] }
 0x4cc   :  { %v2474_v18 = vrot.slane %v2473_v22, 2  ;;  %v2524_v63 = vrot.slane %v2523_v43, 4  ;;  %v2863_v28 = vld [vmem:[#allocation3] sm:$0xff]  ;;  %3045 = vmatprep.subr.mxu0 %v2867_v39 }
 0x4cd   :  { %v2500_v58 = vrot.slane %v2499_v50, 2  ;;  %v2448_v31 = vadd.f32 %v2447_v13, %v2446_v25  ;;  %v2458_v37 = vrot.slane %v2457_v41, 2  ;;  %v2510_v38 = vadd.f32 %v2509_v42, %v2508_v44 }
 0x4ce   :  { %v2475_v23 = vadd.f32 %v2474_v18, %v2473_v22  ;;  %v2525_v4 = vadd.f32 %v2524_v63, %v2523_v43  ;;  %v2860_v18 = vld [vmem:[%s12827_s25] sm:$0x1]  ;;  %v2865_v63 = vld [vmem:[#allocation3 + $0x10] sm:$0xff] }
 0x4cf   :  { %v2501_v60 = vadd.f32 %v2500_v58, %v2499_v50  ;;  %v2459_v15 = vadd.f32 %v2458_v37, %v2457_v41  ;;  %v2511_v17 = vrot.slane %v2510_v38, 2  ;;  %v2449_v53 = vrot.slane %v2448_v31, 1 }
 0x4d0   :  { %v2476_v57 = vrot.slane %v2475_v23, 1  ;;  %v2526_v51 = vrot.slane %v2525_v4, 2 }
 0x4d1   :  { %v2460_v32 = vrot.slane %v2459_v15, 1  ;;  %v2512_v6 = vadd.f32 %v2511_v17, %v2510_v38  ;;  %v2502_v40 = vrot.slane %v2501_v60, 1  ;;  %v2450_v45 = vadd.f32 %v2449_v53, %v2448_v31  ;;  %v2868_v53 = vld [vmem:[#allocation3 + $0x28] sm:$0xff] }
 0x4d2   :  { %v2527_v21 = vadd.f32 %v2526_v51, %v2525_v4  ;;  %v2477_v14 = vadd.f32 %v2476_v57, %v2475_v23 }
 0x4d3   :  { %v2461_v33 = vadd.f32 %v2460_v32, %v2459_v15  ;;  %v2513_v55 = vrot.slane %v2512_v6, 1  ;;  %v2503_v62 = vadd.f32 %v2502_v40, %v2501_v60  ;;  %v2856_v60 = vld [vmem:[%s12826_s21] sm:$0x1]  ;;  %v11285_v40 = vld [vmem:[#allocation5] sm:$0xff] }
 0x4d4   :  { %v2528_v34 = vrot.slane %v2527_v21, 1 }
 0x4d5   :  { %2633 = vmatprep.mubr.f32.mxu1 %v2461_v33  ;;  %v2514_v9 = vadd.f32 %v2513_v55, %v2512_v6  ;;  %v3158_v33 = vlaneseq }
 0x4d6   :  { %2634 = vmatmul.mubr.f32.vlgmr.msra.gmra.mxu1 %v2450_v45  ;;  %v2529_v25 = vadd.f32 %v2528_v34, %v2527_v21 }
 0x4d7   :  { %9005 = vmatpush3.msra.mxu1 %v2565_v47  ;;  %2777 = vmatprep.mubr.f32.mxu0 %v2514_v9  ;;  %v3159_v55 = vshrl.u32 %v3158_v33, 7 }
 0x4d8   :  { %9006 = vmatprep.subr.mxu1 %v9892_v1  ;;  %2778 = vmatmul.mubr.f32.vlgmr.msra.gmra.mxu0 %v2503_v62 }
 0x4d9   :  { %9007 = vmatpush3.msra.mxu1 %v2564_v10  ;;  %9012 = vmatprep.mubr.msk.f32.mxu1 %vm9894_vm4, %v9892_v1  ;;  %v11289_v4 = vsub.s32 0, %v3159_v55  ;;  %v3228_v55 = vld [vmem:[#allocation5 + $0x8] sm:$0x3f] }
 0x4da   :  { %9008 = vmatprep.subr.mxu1 %v9892_v1  ;;  %3081 = vmatprep.mubr.f32.mxu0 %v9892_v1 }
 0x4db   :  { %9009 = vmatpush3.msra.mxu1 %v2563_v5  ;;  %3046 = vmatpush1.msra.mxu0 %v2866_v26 }
 0x4dc   :  { %9010 = vmatprep.subr.mxu1 %v9892_v1  ;;  %3047 = vmatprep.subr.mxu0 %v2864_v48 }
 0x4dd   :  { %9011 = vmatpush3.msra.mxu1 %v2562_v20  ;;  %3048 = vmatpush1.msra.mxu0 %v2863_v28 }
 0x4de   :  { %9013 = vmatmul.mubr.msk.f32.vlgmr.msra.gmra.mxu1 %vm634_vm1, %v2477_v14  ;;  %9015 = vmatprep.subr.mxu1 %v9892_v1 }
 0x4df   :  { %9016 = vmatpush3.msra.mxu1 %v2565_v47  ;;  %9023 = vmatprep.mubr.msk.f32.mxu1 %vm9894_vm4, %v9892_v1 }
 0x4e0   :  { %9017 = vmatprep.subr.mxu1 %v9892_v1 }
 0x4e1   :  { %9018 = vmatpush3.msra.mxu1 %v2564_v10 }
 0x4e2   :  { %9019 = vmatprep.subr.mxu1 %v9892_v1 }
 0x4e3   :  { %9020 = vmatpush3.msra.mxu1 %v2563_v5 }
 0x4e4   :  { %9021 = vmatprep.subr.mxu1 %v9892_v1 }
 0x4e5   :  { %9022 = vmatpush3.msra.mxu1 %v2562_v20 }
 0x4e6   :  { %9024 = vmatmul.mubr.msk.f32.vlgmr.msra.gmra.mxu1 %vm634_vm1, %v2529_v25  ;;  %2901 = vmatprep.subr.mxu1 %v2867_v39 }
 0x4e7   :  { %2937 = vmatprep.mubr.f32.mxu1 %v9892_v1  ;;  %2902 = vmatpush1.msra.mxu1 %v2866_v26 }
 0x4e8   :  { %2903 = vmatprep.subr.mxu1 %v2864_v48 }
 0x4e9   :  { %2904 = vmatpush1.msra.mxu1 %v2863_v28 }
 0x4ea   :  { %9026 = vmatprep.subr.mxu1 %v9892_v1 }
 0x596   :  { %v8865_v2 = vpop.f32.mrf.mxu1 }
 0x598   :  { %v8866_v12 = vpop.f32.mrf.mxu1  ;;  %v8905_v13 = vpop.f32.mrf.mxu0 }
 0x599   :  { %v8867_v3 = vadd.f32 %v8866_v12, %v8865_v2 }
 0x59a   :  { %v8906_v44 = vpop.f32.mrf.mxu0 }
 0x59b   :  { %v8907_v54 = vadd.f32 %v8906_v44, %v8905_v13 }
 0x59e   :  { %v2705_v50 = vpop.f32.mrf.mxu1 }
 0x59f   :  { %v2706_v56 = vadd.f32 %v8867_v3, %v2705_v50 }
 0x5a0   :  { %v9014_v52 = vpop.f32.mrf.mxu1 }
 0x5a1   :  { %v2709_v58 = vmul.f32 0.0015432099, %v2706_v56 }
 0x5a3   :  { %v2854_v22 = vmul.f32 %v2709_v58, %v2709_v58 }
 0x5a6   :  { %v2849_v41 = vpop.f32.mrf.mxu1 }
 0x5a7   :  { %v2850_v42 = vadd.f32 %v8907_v54, %v2849_v41 }
 0x5a8   :  { %v9025_v31 = vpop.f32.mrf.mxu1 }
 0x5a9   :  { %v2853_v43 = vmul.f32 0.0015432099, %v2850_v42 }
 0x5ab   :  { %v2855_v37 = vsub.f32 %v2853_v43, %v2854_v22 }
 0x5ad   :  { %v2857_v38 = vadd.f32 1e-05, %v2855_v37 }
 0x5af   :  { %9768 = vrsqrt.f32 %v2857_v38 }
 0x5bc   :  { %v9769_v15 = vpop.eup %9768 }
 0x5bd   :  { %v2859_v17 = vmul.f32 %v9769_v15, %v2856_v60 }
 0x5bf   :  { %8247 = vmatmul.mubr.msk.f32.vlgmr.msra.gmra.mxu1 %vm2869_vm5, %v2859_v17  ;;  %v2861_v32 = vmul.f32 %v2859_v17, %v2709_v58 }
 0x5c0   :  { %9027 = vmatpush3.msra.mxu1 %v2868_v53  ;;  %9030 = vmatprep.mubr.msk.f32.mxu1 %vm9894_vm4, %v9892_v1 }
 0x5c1   :  { %9028 = vmatprep.subr.mxu1 %v9892_v1  ;;  %v2862_v6 = vsub.f32 %v2860_v18, %v2861_v32 }
 0x5c2   :  { %9029 = vmatpush3.msra.mxu1 %v2865_v63 }
 0x5c3   :  { %9031 = vmatmul.mubr.msk.f32.vlgmr.msra.gmra.mxu1 %vm2869_vm5, %v2859_v17  ;;  %8249 = vmatmul.mubr.msk.f32.vlgmr.msra.gmra.mxu0 %vm2869_vm5, %v2862_v6 }
 0x5c4   :  { %9033 = vmatprep.subr.mxu1 %v9892_v1  ;;  %9037 = vmatprep.mubr.msk.f32.mxu1 %vm9894_vm4, %v9892_v1 }
 0x5c5   :  { %9034 = vmatpush3.msra.mxu1 %v2868_v53  ;;  %3309 = vmatprep.mubr.f32.mxu0 %v9892_v1 }
 0x5c6   :  { %9035 = vmatprep.subr.mxu1 %v9892_v1 }
 0x5c7   :  { %9036 = vmatpush3.msra.mxu1 %v2865_v63 }
 0x5c8   :  { %9038 = vmatmul.mubr.msk.f32.vlgmr.msra.gmra.mxu1 %vm2869_vm5, %v2862_v6 }
 0x5c9   :  { %9050 = vmatprep.mubr.msk.f32.mxu1 %vm3229_vm6, %v11285_v40 }
 0x67f   :  { %v2939_v23 = vpop.f32.mrf.mxu1 }
 0x680   :  { %v3161_v47 = vrot.slane %v2939_v23, %v11289_v4  ;;  %v9430_v23 = vld [vmem:[%s12794_s7 + $0x194] ss:$8 sps:$4 sm:$0xff]  }
 0x681   :  { %v2941_v45 = vpop.f32.mrf.mxu1 }
 0x682   :  { %v3165_v9 = vrot.slane %v2941_v45, %v11289_v4  ;;  %v3182_v21 = vmul.f32 %v3161_v47, %v11206_v35  ;;  %v3173_v25 = vmul.f32 %v3161_v47, %v11138_v19  ;;  %v3179_v48 = vmul.f32 %v3161_v47, %v11179_v8  ;;  %v3438_v45 = vld [vmem:[#allocation5 + $0x18] sm:$0x3f] }
 0x683   :  { %v3010_v10 = vpop.f32.mrf.mxu1  ;;  %v3083_v62 = vpop.f32.mrf.mxu0  ;;  %v3176_v52 = vmul.f32 %v3161_v47, %v11158_v36 }
 0x684   :  { %v3188_v57 = vrot.slane %v3083_v62, %v11289_v4  ;;  %v3169_v20 = vrot.slane %v3010_v10, %v11289_v4  ;;  %v3183_v14 = vmul.f32 %v3165_v9, %v11221_v29  ;;  %v3180_v39 = vmul.f32 %v3165_v9, %v11203_v59  ;;  %v9431_v10 = vld [vmem:[%s12794_s7 + $0x180] ss:$8 sps:$4 sm:$0xff]   ;;  %v9436_v62 = vld [vmem:[%s12794_s7 + $0x174] ss:$8 sps:$4 sm:$0xff]  }
 0x685   :  { %v9032_v51 = vpop.f32.mrf.mxu1  ;;  %v3085_v5 = vpop.f32.mrf.mxu0  ;;  %v3177_v13 = vmul.f32 %v3165_v9, %v11188_v46  ;;  %v3174_v19 = vmul.f32 %v3165_v9, %v11148_v24  ;;  %v3171_v46 = vmul.f32 %v3165_v9, %v11153_v0  ;;  %v9433_v9 = vld [vmem:[%s12794_s7 + $0x184] ss:$8 sps:$4 sm:$0xff]  }
 0x686   :  { %v3192_v34 = vrot.slane %v3085_v5, %v11289_v4  ;;  %v3209_v12 = vadd.f32 %v3188_v57, %v3182_v21  ;;  %v3181_v50 = vmul.f32 %v3169_v20, %v11182_v16  ;;  %v3184_v35 = vmul.f32 %v3169_v20, %v11209_v61  ;;  %v9439_v51 = vld [vmem:[%s12794_s7 + $0x164] ss:$8 sps:$4 sm:$0xff]   ;;  %v9437_v5 = vld [vmem:[%s12794_s7 + $0x160] ss:$8 sps:$4 sm:$0xff]   ;;  %v9440_v21 = vld [vmem:[%s12794_s7 + $0x150] ss:$8 sps:$4 sm:$0xff]  }
 0x687   :  { %v3178_v59 = vmul.f32 %v3169_v20, %v11167_v11  ;;  %v3206_v56 = vadd.f32 %v3188_v57, %v3179_v48  ;;  %v3175_v16 = vmul.f32 %v3169_v20, %v11141_v49  ;;  %v3203_v61 = vadd.f32 %v3188_v57, %v3176_v52  ;;  %v9449_v48 = vld [vmem:[%s12794_s7 + $0x120] ss:$8 sps:$4 sm:$0xff]   ;;  %v9464_v52 = vld [vmem:[%s12794_s7 + $0x1d0] ss:$8 sps:$4 sm:$0xff]  }
 0x688   :  { %v3154_v26 = vpop.f32.mrf.mxu1  ;;  %v3210_v2 = vadd.f32 %v3192_v34, %v3183_v14  ;;  %v3207_v3 = vadd.f32 %v3192_v34, %v3180_v39  ;;  %v3204_v58 = vadd.f32 %v3192_v34, %v3177_v13  ;;  %v11312_v41 = vmax.f32 %v3209_v12, 0.0  ;;  %v9445_v14 = vld [vmem:[%s12794_s7 + $0x144] ss:$8 sps:$4 sm:$0xff]   ;;  %v9446_v39 = vld [vmem:[%s12794_s7 + $0x130] ss:$8 sps:$4 sm:$0xff]  }
 0x689   :  { %v3196_v28 = vrot.slane %v3154_v26, %v11289_v4  ;;  %v3201_v36 = vadd.f32 %v3192_v34, %v3174_v19  ;;  %v3170_v11 = vmul.f32 %v3161_v47, %v11146_v7  ;;  %v3172_v22 = vmul.f32 %v3169_v20, %v11130_v27  ;;  %v9428_v47 = vld [vmem:[%s12794_s7 + $0x190] ss:$8 sps:$4 sm:$0xff]   ;;  %v9442_v20 = vld [vmem:[%s12794_s7 + $0x154] ss:$8 sps:$4 sm:$0xff]   ;;  %v9451_v26 = vld [vmem:[%s12794_s7 + $0x124] ss:$8 sps:$4 sm:$0xff]  }
 0x68a   :  { %v9039_v29 = vpop.f32.mrf.mxu1  ;;  %v11308_v54 = vmax.f32 %v3210_v2, 0.0  ;;  %v11318_v24 = vmax.f32 %v3207_v3, 0.0  ;;  %v11324_v49 = vmax.f32 %v3206_v56, 0.0  ;;  %v3200_v0 = vadd.f32 %v3188_v57, %v3173_v25  ;;  %v9448_v25 = vld [vmem:[%s12794_s7 + $0x134] ss:$8 sps:$4 sm:$0xff]  }
 0x68b   :  { %v3208_v8 = vadd.f32 %v3196_v28, %v3181_v50  ;;  %v3211_v44 = vadd.f32 %v3196_v28, %v3184_v35  ;;  %v3205_v42 = vadd.f32 %v3196_v28, %v3178_v59  ;;  %v3202_v43 = vadd.f32 %v3196_v28, %v3175_v16  ;;  %v9452_v2 = vld [vmem:[%s12794_s7 + $0x210] ss:$8 sps:$4 sm:$0xff]   ;;  %v9457_v12 = vld [vmem:[%s12794_s7 + $0x204] ss:$8 sps:$4 sm:$0xff]   ;;  %v9455_v13 = vld [vmem:[%s12794_s7 + $0x200] ss:$8 sps:$4 sm:$0xff]  }
 0x68c   :  { %8251 = vmatprep.subr.msk.mxu0 %vm2442_vm2, %v11308_v54  ;;  %v11331_v38 = vmax.f32 %v3204_v58, 0.0  ;;  %v3198_v60 = vadd.f32 %v3192_v34, %v3171_v46  ;;  %v11336_v27 = vmax.f32 %v3203_v61, 0.0  ;;  %v3197_v7 = vadd.f32 %v3188_v57, %v3170_v11  ;;  %v9434_v57 = vld [vmem:[%s12794_s7 + $0x170] ss:$8 sps:$4 sm:$0xff]   ;;  %v9443_v34 = vld [vmem:[%s12794_s7 + $0x140] ss:$8 sps:$4 sm:$0xff]  }
 0x68d   :  { %v11314_v31 = vmax.f32 %v3211_v44, 0.0  ;;  %8252 = vmatpush1.msk.msra.mxu0 %vm2442_vm2, %v11312_v41  ;;  %v11326_v37 = vmax.f32 %v3208_v8, 0.0  ;;  %v3199_v15 = vadd.f32 %v3196_v28, %v3172_v22  ;;  %v11338_v17 = vmax.f32 %v3205_v42, 0.0  ;;  %v9454_v28 = vld [vmem:[%s12794_s7 + $0x214] ss:$8 sps:$4 sm:$0xff]  }
 0x68e   :  { %3269 = vmatprep.subr.mxu0 %v11318_v24  ;;  %v11342_v53 = vmax.f32 %v3201_v36, 0.0  ;;  %v11346_v18 = vmax.f32 %v3200_v0, 0.0  ;;  %v11348_v63 = vmax.f32 %v3202_v43, 0.0  ;;  %v11352_v32 = vmax.f32 %v3198_v60, 0.0  ;;  %v9460_v50 = vld [vmem:[%s12794_s7 + $0x1f4] ss:$8 sps:$4 sm:$0xff]  }
 0x68f   :  { %9040 = vmatprep.subr.msk.mxu1 %vm2442_vm2, %v11314_v31  ;;  %3270 = vmatpush1.msra.mxu0 %v11324_v49  ;;  %v11356_v6 = vmax.f32 %v3197_v7, 0.0  ;;  %v11358_v33 = vmax.f32 %v3199_v15, 0.0  ;;  %v9458_v35 = vld [vmem:[%s12794_s7 + $0x1f0] ss:$8 sps:$4 sm:$0xff]   ;;  %v9463_v29 = vld [vmem:[%s12794_s7 + $0x1e4] ss:$8 sps:$4 sm:$0xff]  }
 0x690   :  { %9041 = vmatpush3.msk.msra.mxu1 %vm2442_vm2, %v11314_v31  ;;  %3271 = vmatprep.subr.mxu0 %v11331_v38  ;;  %v9461_v3 = vld [vmem:[%s12794_s7 + $0x1e0] ss:$8 sps:$4 sm:$0xff]   ;;  %v9466_v19 = vld [vmem:[%s12794_s7 + $0x1d4] ss:$8 sps:$4 sm:$0xff]   ;;  %v9469_v56 = vld [vmem:[%s12794_s7 + $0x1c4] ss:$8 sps:$4 sm:$0xff]  }
 0x691   :  { %9042 = vmatprep.subr.mxu1 %v11326_v37  ;;  %3272 = vmatpush1.msra.mxu0 %v11336_v27  ;;  %v9467_v59 = vld [vmem:[%s12794_s7 + $0x1c0] ss:$8 sps:$4 sm:$0xff]   ;;  %v9470_v8 = vld [vmem:[%s12794_s7 + $0x230] ss:$8 sps:$4 sm:$0xff]   ;;  %v9472_v44 = vld [vmem:[%s12794_s7 + $0x234] ss:$8 sps:$4 sm:$0xff]  }
 0x692   :  { %9043 = vmatpush3.msra.mxu1 %v11326_v37  ;;  %3273 = vmatprep.subr.mxu0 %v11342_v53  ;;  %v9473_v58 = vld [vmem:[%s12794_s7 + $0x1b0] ss:$8 sps:$4 sm:$0xff]   ;;  %v9475_v46 = vld [vmem:[%s12794_s7 + $0x1b4] ss:$8 sps:$4 sm:$0xff]   ;;  %v9476_v16 = vld [vmem:[%s12794_s7 + $0x220] ss:$8 sps:$4 sm:$0xff]  }
 0x693   :  { %9044 = vmatprep.subr.mxu1 %v11338_v17  ;;  %3274 = vmatpush1.msra.mxu0 %v11346_v18  ;;  %v9478_v61 = vld [vmem:[%s12794_s7 + $0x224] ss:$8 sps:$4 sm:$0xff]   ;;  %v9479_v42 = vld [vmem:[%s12794_s7 + $0x1a0] ss:$8 sps:$4 sm:$0xff]   ;;  %v9484_v11 = vld [vmem:[%s12794_s7 + $0x74] ss:$8 sps:$4 sm:$0xff]  }
 0x694   :  { %9045 = vmatpush3.msra.mxu1 %v11338_v17  ;;  %3275 = vmatprep.subr.mxu0 %v11352_v32  ;;  %v9481_v36 = vld [vmem:[%s12794_s7 + $0x1a4] ss:$8 sps:$4 sm:$0xff]   ;;  %v9487_v22 = vld [vmem:[%s12794_s7 + $0x114] ss:$8 sps:$4 sm:$0xff]  }
 0x695   :  { %9046 = vmatprep.subr.mxu1 %v11348_v63  ;;  %3276 = vmatpush1.msra.mxu0 %v11356_v6 }
 0x696   :  { %9047 = vmatpush3.msra.mxu1 %v11348_v63  ;;  %8258 = vmatprep.subr.msk.mxu0 %vm2442_vm2, %v11308_v54 }
 0x697   :  { %9048 = vmatprep.subr.mxu1 %v11358_v33  ;;  %8253 = vmatmul.mubr.msk.f32.vlgmr.msra.gmra.mxu0 %vm3229_vm6, %v11285_v40  ;;  %v3437_v40 = vld [vmem:[#allocation5 + $0x10] sm:$0xff] }
 0x698   :  { %9049 = vmatpush3.msra.mxu1 %v11358_v33  ;;  %8259 = vmatpush1.msk.msra.mxu0 %vm2442_vm2, %v11312_v41 }
 0x699   :  { %9051 = vmatmul.mubr.msk.f32.vlgmr.msra.gmra.mxu1 %vm3229_vm6, %v3228_v55  ;;  %3469 = vmatprep.subr.mxu0 %v11318_v24 }
 0x69a   :  { %9053 = vmatprep.subr.msk.mxu1 %vm2442_vm2, %v11314_v31  ;;  %3470 = vmatpush1.msra.mxu0 %v11324_v49 }
 0x69b   :  { %9054 = vmatpush3.msk.msra.mxu1 %vm2442_vm2, %v11314_v31  ;;  %3471 = vmatprep.subr.mxu0 %v11331_v38 }
 0x69c   :  { %9055 = vmatprep.subr.mxu1 %v11326_v37  ;;  %3315 = vmatprep.mubr.f32.mxu0 %v9892_v1 }
 0x69d   :  { %3472 = vmatpush1.msra.mxu0 %v11336_v27  ;;  %9056 = vmatpush3.msra.mxu1 %v11326_v37 }
 0x69e   :  { %8254 = vmatmul.mubr.msk.f32.gmra.mxu0 %vm3229_vm6, %v3228_v55  ;;  %3473 = vmatprep.subr.mxu0 %v11342_v53 }
 0x69f   :  { %9057 = vmatprep.subr.mxu1 %v11338_v17  ;;  %3474 = vmatpush1.msra.mxu0 %v11346_v18 }
 0x6a0   :  { %9058 = vmatpush3.msra.mxu1 %v11338_v17  ;;  %3475 = vmatprep.subr.mxu0 %v11352_v32 }
 0x6a1   :  { %9059 = vmatprep.subr.mxu1 %v11348_v63  ;;  %3476 = vmatpush1.msra.mxu0 %v11356_v6 }
 0x6a2   :  { %3509 = vmatprep.mubr.f32.mxu0 %v9892_v1  ;;  %9060 = vmatpush3.msra.mxu1 %v11348_v63 }
 0x6a3   :  { %8260 = vmatmul.mubr.msk.f32.vlgmr.msra.gmra.mxu0 %vm3229_vm6, %v3437_v40  ;;  %9061 = vmatprep.subr.mxu1 %v11358_v33 }
 0x6a4   :  { %9063 = vmatprep.mubr.msk.f32.mxu1 %vm3229_vm6, %v3437_v40  ;;  %9062 = vmatpush3.msra.mxu1 %v11358_v33 }
 0x6a5   :  { %3515 = vmatprep.mubr.f32.mxu0 %v9892_v1  ;;  %9064 = vmatmul.mubr.msk.f32.vlgmr.msra.gmra.mxu1 %vm3229_vm6, %v3438_v45 }
 0x6a6   :  { %3820 = vmatprep.subr.bf16.mxu0 %v9430_v23  ;;  %3895 = vmatprep.mubr.bf16.mxu1 %v9893_v30 }
 0x6a7   :  { %8261 = vmatmul.mubr.msk.f32.gmra.mxu0 %vm3229_vm6, %v3438_v45  ;;  %3875 = vmatprep.subr.bf16.mxu1 %v9472_v44  ;;  %v9506_v44 = vld [vmem:[%s12794_s7 + $0x10] ss:$8 sps:$4 sm:$0xff]  }
 0x6a8   :  { %3821 = vmatpush1.bf16.msra.mxu0 %v9428_v47  ;;  %3876 = vmatpush1.bf16.msra.mxu1 %v9470_v8  ;;  %v9547_v8 = vld [vmem:[%s12794_s7 + $0x2a4] ss:$8 sps:$4 sm:$0xff]  }
 0x6a9   :  { %3822 = vmatprep.subr.bf16.mxu0 %v9433_v9  ;;  %3877 = vmatprep.subr.bf16.mxu1 %v9478_v61  ;;  %v9550_v61 = vld [vmem:[%s12794_s7 + $0x294] ss:$8 sps:$4 sm:$0xff]  }
 0x6ac   :  { %3823 = vmatpush1.bf16.msra.mxu0 %v9431_v10  ;;  %3878 = vmatpush1.bf16.msra.mxu1 %v9476_v16  ;;  %v9545_v16 = vld [vmem:[%s12794_s7 + $0x2a0] ss:$8 sps:$4 sm:$0xff]  }
 0x6ad   :  { %3824 = vmatprep.subr.bf16.mxu0 %v9436_v62  ;;  %4089 = vmatprep.subr.bf16.mxu1 %v9484_v11  ;;  %v9482_v62 = vld [vmem:[%s12794_s7 + $0x70] ss:$8 sps:$4 sm:$0xff]  }
 0x6ae   :  { %v9548_v11 = vld [vmem:[%s12794_s7 + $0x290] ss:$8 sps:$4 sm:$0xff]  }
 0x6b0   :  { %3825 = vmatpush1.bf16.msra.mxu0 %v9434_v57 }
 0x6b1   :  { %3826 = vmatprep.subr.bf16.mxu0 %v9439_v51 }
 0x6b4   :  { %3827 = vmatpush1.bf16.msra.mxu0 %v9437_v5 }
 0x6b5   :  { %3828 = vmatprep.subr.bf16.mxu0 %v9442_v20  ;;  %v9490_v20 = vld [vmem:[%s12794_s7 + $0x64] ss:$8 sps:$4 sm:$0xff]  }
 0x6b8   :  { %3829 = vmatpush1.bf16.msra.mxu0 %v9440_v21 }
 0x6b9   :  { %3830 = vmatprep.subr.bf16.mxu0 %v9445_v14  ;;  %v9485_v14 = vld [vmem:[%s12794_s7 + $0x110] ss:$8 sps:$4 sm:$0xff]  }
 0x6bc   :  { %3831 = vmatpush1.bf16.msra.mxu0 %v9443_v34 }
 0x6bd   :  { %3832 = vmatprep.subr.bf16.mxu0 %v9448_v25  ;;  %v9493_v25 = vld [vmem:[%s12794_s7 + $0x104] ss:$8 sps:$4 sm:$0xff]  }
 0x6c0   :  { %3833 = vmatpush1.bf16.msra.mxu0 %v9446_v39  ;;  %v9488_v39 = vld [vmem:[%s12794_s7 + $0x60] ss:$8 sps:$4 sm:$0xff]  }
 0x6c1   :  { %3834 = vmatprep.subr.bf16.mxu0 %v9451_v26  ;;  %v9496_v26 = vld [vmem:[%s12794_s7 + $0x54] ss:$8 sps:$4 sm:$0xff]  }
 0x6c4   :  { %3835 = vmatpush1.bf16.msra.mxu0 %v9449_v48  ;;  %v9491_v48 = vld [vmem:[%s12794_s7 + $0x100] ss:$8 sps:$4 sm:$0xff]  }
 0x6c5   :  { %3836 = vmatprep.subr.bf16.mxu0 %v9454_v28  ;;  %v9494_v28 = vld [vmem:[%s12794_s7 + $0x50] ss:$8 sps:$4 sm:$0xff]  }
 0x6c8   :  { %3837 = vmatpush2.bf16.msra.mxu0 %v9452_v2  ;;  %v9499_v2 = vld [vmem:[%s12794_s7 + $0x44] ss:$8 sps:$4 sm:$0xff]  }
 0x6c9   :  { %3838 = vmatprep.subr.bf16.mxu0 %v9457_v12 }
 0x6cc   :  { %3839 = vmatpush2.bf16.msra.mxu0 %v9455_v13  ;;  %v9497_v13 = vld [vmem:[%s12794_s7 + $0x40] ss:$8 sps:$4 sm:$0xff]  }
 0x6cd   :  { %3840 = vmatprep.subr.bf16.mxu0 %v9460_v50  ;;  %v9502_v50 = vld [vmem:[%s12794_s7 + $0x34] ss:$8 sps:$4 sm:$0xff]  }
 0x6d0   :  { %3841 = vmatpush2.bf16.msra.mxu0 %v9458_v35  ;;  %v9500_v35 = vld [vmem:[%s12794_s7 + $0x30] ss:$8 sps:$4 sm:$0xff]  }
 0x6d1   :  { %3842 = vmatprep.subr.bf16.mxu0 %v9463_v29  ;;  %v9505_v29 = vld [vmem:[%s12794_s7 + $0x24] ss:$8 sps:$4 sm:$0xff]  }
 0x6d4   :  { %3843 = vmatpush2.bf16.msra.mxu0 %v9461_v3  ;;  %v9544_v3 = vld [vmem:[%s12794_s7 + $0x2b4] ss:$8 sps:$4 sm:$0xff]  }
 0x6d5   :  { %3844 = vmatprep.subr.bf16.mxu0 %v9466_v19  ;;  %v11581_v19 = vld [vmem:[#allocation5 + $0x20] sm:$0xff] }
 0x6d8   :  { %3845 = vmatpush2.bf16.msra.mxu0 %v9464_v52  ;;  %v9503_v52 = vld [vmem:[%s12794_s7 + $0x20] ss:$8 sps:$4 sm:$0xff]  }
 0x6d9   :  { %3846 = vmatprep.subr.bf16.mxu0 %v9469_v56  ;;  %v9542_v56 = vld [vmem:[%s12794_s7 + $0x2b0] ss:$8 sps:$4 sm:$0xff]  }
 0x6dc   :  { %3847 = vmatpush2.bf16.msra.mxu0 %v9467_v59  ;;  %v9508_v59 = vld [vmem:[%s12794_s7 + $0x14] ss:$8 sps:$4 sm:$0xff]  }
 0x6dd   :  { %3848 = vmatprep.subr.bf16.mxu0 %v9475_v46  ;;  %v9511_v46 = vld [vmem:[%s12794_s7 + $0x4] ss:$8 sps:$4 sm:$0xff]  }
 0x6e0   :  { %3849 = vmatpush2.bf16.msra.mxu0 %v9473_v58  ;;  %v11600_v58 = vld [vmem:[#allocation5 + $0x28] sm:$0x3f] }
 0x6e1   :  { %3850 = vmatprep.subr.bf16.mxu0 %v9481_v36  ;;  %v9514_v36 = vld [vmem:[%s12794_s7 + $0xf4] ss:$8 sps:$4 sm:$0xff]  }
 0x6e4   :  { %3851 = vmatpush2.bf16.msra.mxu0 %v9479_v42  ;;  %v9509_v42 = vld [vmem:[%s12794_s7] ss:$8 sps:$4 sm:$0xff]  }
 0x6e5   :  { %4144 = vmatprep.subr.bf16.mxu0 %v9487_v22  ;;  %v9553_v22 = vld [vmem:[%s12794_s7 + $0x284] ss:$8 sps:$4 sm:$0xff]  }
 0x757   :  { %v11516_v0 = vpop.f32.mrf.mxu0 }
 0x759   :  { %v3313_v43 = vpop.f32.mrf.mxu0  ;;  %v9052_v15 = vpop.f32.mrf.mxu1 }
 0x75b   :  { %v3388_v23 = vpop.f32.mrf.mxu1 }
 0x75c   :  { %v3399_v12 = vpack.c.bf16 %v9052_v15, %v3388_v23  ;;  %v9517_v15 = vld [vmem:[%s12794_s7 + $0xe4] ss:$8 sps:$4 sm:$0xff]   ;;  %v9515_v23 = vld [vmem:[%s12794_s7 + $0xe0] ss:$8 sps:$4 sm:$0xff]  }
 0x75e   :  { %v11518_v60 = vpop.f32.mrf.mxu0 }
 0x75f   :  { %v3397_v7 = vpack.c.bf16 %v11518_v60, %v11516_v0  ;;  %v9572_v0 = vld [vmem:[%s12794_s7 + $0x310] ss:$8 sps:$4 sm:$0xff]   ;;  %v9574_v60 = vld [vmem:[%s12794_s7 + $0x314] ss:$8 sps:$4 sm:$0xff]  }
 0x760   :  { %v3319_v55 = vpop.f32.mrf.mxu0 }
 0x761   :  { %v3398_v34 = vpack.c.bf16 %v3319_v55, %v3313_v43  ;;  %v9512_v43 = vld [vmem:[%s12794_s7 + $0xf0] ss:$8 sps:$4 sm:$0xff]   ;;  %v9551_v55 = vld [vmem:[%s12794_s7 + $0x280] ss:$8 sps:$4 sm:$0xff]  }
 0x763   :  { %v3511_v40 = vpop.f32.mrf.mxu0 }
 0x765   :  { %v3513_v45 = vpop.f32.mrf.mxu0  ;;  %v9065_v47 = vpop.f32.mrf.mxu1 }
 0x767   :  { %v3517_v9 = vpop.f32.mrf.mxu0  ;;  %v3588_v10 = vpop.f32.mrf.mxu1 }
 0x768   :  { %v3597_v57 = vpack.c.bf16 %v3517_v9, %v3511_v40  ;;  %v3599_v51 = vpack.c.bf16 %v9065_v47, %v3588_v10  ;;  %v9556_v40 = vld [vmem:[%s12794_s7 + $0x274] ss:$8 sps:$4 sm:$0xff]   ;;  %v9554_v47 = vld [vmem:[%s12794_s7 + $0x270] ss:$8 sps:$4 sm:$0xff]   ;;  %v9559_v9 = vld [vmem:[%s12794_s7 + $0x264] ss:$8 sps:$4 sm:$0xff]  }
 0x769   :  { %v3519_v5 = vpop.f32.mrf.mxu0  ;;  %v9518_v10 = vld [vmem:[%s12794_s7 + $0xd0] ss:$8 sps:$4 sm:$0xff]  }
 0x76a   :  { %v3598_v21 = vpack.c.bf16 %v3519_v5, %v3513_v45  ;;  %8337 = vmatmul.mubr.msk.bf16.vlgmr.msra.gmra.mxu1 %vm634_vm1, %v3599_v51  ;;  %v9520_v45 = vld [vmem:[%s12794_s7 + $0xd4] ss:$8 sps:$4 sm:$0xff]   ;;  %v9521_v5 = vld [vmem:[%s12794_s7 + $0xc0] ss:$8 sps:$4 sm:$0xff]  }
 0x76b   :  { %4090 = vmatpush1.bf16.msra.mxu1 %v9482_v62  ;;  %4121 = vmatprep.mubr.bf16.mxu1 %v3398_v34  ;;  %v9523_v62 = vld [vmem:[%s12794_s7 + $0xc4] ss:$8 sps:$4 sm:$0xff]   ;;  %v9562_v51 = vld [vmem:[%s12794_s7 + $0x254] ss:$8 sps:$4 sm:$0xff]   ;;  %v9524_v34 = vld [vmem:[%s12794_s7 + $0xb0] ss:$8 sps:$4 sm:$0xff]  }
 0x76c   :  { %3852 = vmatprep.mubr.bf16.mxu0 %v3598_v21  ;;  %4091 = vmatprep.subr.bf16.mxu1 %v9490_v20  ;;  %v9526_v20 = vld [vmem:[%s12794_s7 + $0xb4] ss:$8 sps:$4 sm:$0xff]   ;;  %v9560_v21 = vld [vmem:[%s12794_s7 + $0x250] ss:$8 sps:$4 sm:$0xff]  }
 0x76d   :  { %3853 = vmatmul.mubr.bf16.vlgmr.msra.gmra.mxu0 %v3597_v57  ;;  %v9557_v57 = vld [vmem:[%s12794_s7 + $0x260] ss:$8 sps:$4 sm:$0xff]  }
 0x76e   :  { %4145 = vmatpush1.bf16.msra.mxu0 %v9485_v14  ;;  %4164 = vmatprep.mubr.bf16.mxu0 %v9893_v30  ;;  %v9565_v14 = vld [vmem:[%s12794_s7 + $0x244] ss:$8 sps:$4 sm:$0xff]  }
 0x76f   :  { %4146 = vmatprep.subr.bf16.mxu0 %v9493_v25  ;;  %4092 = vmatpush1.bf16.msra.mxu1 %v9488_v39  ;;  %v9529_v25 = vld [vmem:[%s12794_s7 + $0xa4] ss:$8 sps:$4 sm:$0xff]   ;;  %v9563_v39 = vld [vmem:[%s12794_s7 + $0x240] ss:$8 sps:$4 sm:$0xff]  }
 0x770   :  { %4093 = vmatprep.subr.bf16.mxu1 %v9496_v26  ;;  %v9568_v26 = vld [vmem:[%s12794_s7 + $0x334] ss:$8 sps:$4 sm:$0xff]  }
 0x772   :  { %4147 = vmatpush1.bf16.msra.mxu0 %v9491_v48  ;;  %v9527_v48 = vld [vmem:[%s12794_s7 + $0xa0] ss:$8 sps:$4 sm:$0xff]  }
 0x773   :  { %8375 = vmatprep.subr.msk.mxu0 %vm2442_vm2, %v11308_v54  ;;  %4094 = vmatpush1.bf16.msra.mxu1 %v9494_v28  ;;  %v9532_v28 = vld [vmem:[%s12794_s7 + $0x94] ss:$8 sps:$4 sm:$0xff]  }
 0x774   :  { %4095 = vmatprep.subr.bf16.mxu1 %v9499_v2  ;;  %v9566_v2 = vld [vmem:[%s12794_s7 + $0x330] ss:$8 sps:$4 sm:$0xff]  }
 0x775   :  { %8374 = vmatmul.mubr.msk.bf16.vlgmr.msra.gmra.mxu0 %vm634_vm1, %v3399_v12  ;;  %v9530_v12 = vld [vmem:[%s12794_s7 + $0x90] ss:$8 sps:$4 sm:$0xff]  }
 0x776   :  { %8376 = vmatpush1.msk.msra.mxu0 %vm2442_vm2, %v11312_v41  ;;  %4248 = vmatprep.mubr.f32.mxu0 %v9892_v1 }
 0x777   :  { %4208 = vmatprep.subr.mxu0 %v11318_v24  ;;  %4096 = vmatpush1.bf16.msra.mxu1 %v9497_v13  ;;  %v9535_v13 = vld [vmem:[%s12794_s7 + $0x84] ss:$8 sps:$4 sm:$0xff]  }
 0x778   :  { %4209 = vmatpush1.msra.mxu0 %v11324_v49  ;;  %4097 = vmatprep.subr.bf16.mxu1 %v9502_v50  ;;  %v9533_v50 = vld [vmem:[%s12794_s7 + $0x80] ss:$8 sps:$4 sm:$0xff]  }
 0x779   :  { %4210 = vmatprep.subr.mxu0 %v11331_v38 }
 0x77a   :  { %4211 = vmatpush1.msra.mxu0 %v11336_v27 }
 0x77b   :  { %4212 = vmatprep.subr.mxu0 %v11342_v53  ;;  %4098 = vmatpush1.bf16.msra.mxu1 %v9500_v35  ;;  %v9569_v35 = vld [vmem:[%s12794_s7 + $0x320] ss:$8 sps:$4 sm:$0xff]  }
 0x77c   :  { %4213 = vmatpush1.msra.mxu0 %v11346_v18  ;;  %4099 = vmatprep.subr.bf16.mxu1 %v9505_v29  ;;  %v9571_v29 = vld [vmem:[%s12794_s7 + $0x324] ss:$8 sps:$4 sm:$0xff]  }
 0x77d   :  { %4214 = vmatprep.subr.mxu0 %v11352_v32 }
 0x77e   :  { %4215 = vmatpush1.msra.mxu0 %v11356_v6 }
 0x77f   :  { %8377 = vmatmul.mubr.msk.f32.vlgmr.msra.gmra.mxu0 %vm3229_vm6, %v11581_v19  ;;  %4559 = vmatprep.subr.bf16.mxu0 %v9544_v3  ;;  %v9536_v3 = vld [vmem:[%s12794_s7 + $0x350] ss:$8 sps:$4 sm:$0xff]  }
 0x780   :  { %4100 = vmatpush1.bf16.msra.mxu1 %v9503_v52  ;;  %4254 = vmatprep.mubr.f32.mxu0 %v9892_v1  ;;  %v9541_v52 = vld [vmem:[%s12794_s7 + $0x344] ss:$8 sps:$4 sm:$0xff]  }
 0x781   :  { %4101 = vmatprep.subr.bf16.mxu1 %v9508_v59  ;;  %4560 = vmatpush1.bf16.msra.mxu0 %v9542_v56  ;;  %v9577_v59 = vld [vmem:[%s12794_s7 + $0x304] ss:$8 sps:$4 sm:$0xff]   ;;  %v9539_v56 = vld [vmem:[%s12794_s7 + $0x340] ss:$8 sps:$4 sm:$0xff]  }
 0x782   :  { %4561 = vmatprep.subr.bf16.mxu0 %v9547_v8  ;;  %v9578_v8 = vld [vmem:[%s12794_s7 + $0x2f0] ss:$8 sps:$4 sm:$0xff]  }
 0x783   :  { %8378 = vmatmul.mubr.msk.f32.gmra.mxu0 %vm3229_vm6, %v11600_v58 }
 0x784   :  { %4102 = vmatpush1.bf16.msra.mxu1 %v9506_v44  ;;  %v9580_v44 = vld [vmem:[%s12794_s7 + $0x2f4] ss:$8 sps:$4 sm:$0xff]  }
 0x785   :  { %4103 = vmatprep.subr.bf16.mxu1 %v9511_v46  ;;  %4562 = vmatpush1.bf16.msra.mxu0 %v9545_v16  ;;  %v9583_v46 = vld [vmem:[%s12794_s7 + $0x2e4] ss:$8 sps:$4 sm:$0xff]   ;;  %v9584_v16 = vld [vmem:[%s12794_s7 + $0x2d0] ss:$8 sps:$4 sm:$0xff]  }
 0x786   :  { %4563 = vmatprep.subr.bf16.mxu0 %v9550_v61  ;;  %v9586_v61 = vld [vmem:[%s12794_s7 + $0x2d4] ss:$8 sps:$4 sm:$0xff]  }
 0x788   :  { %4104 = vmatpush1.bf16.msra.mxu1 %v9509_v42  ;;  %v9587_v42 = vld [vmem:[%s12794_s7 + $0x2c0] ss:$8 sps:$4 sm:$0xff]  }
 0x789   :  { %4105 = vmatprep.subr.bf16.mxu1 %v9514_v36  ;;  %4564 = vmatpush1.bf16.msra.mxu0 %v9548_v11  ;;  %v9589_v36 = vld [vmem:[%s12794_s7 + $0x2c4] ss:$8 sps:$4 sm:$0xff]   ;;  %v9592_v11 = vld [vmem:[%s12794_s7 + $0x474] ss:$8 sps:$4 sm:$0xff]  }
 0x78a   :  { %4565 = vmatprep.subr.bf16.mxu0 %v9553_v22 }
 0x78c   :  { %4106 = vmatpush2.bf16.msra.mxu1 %v9512_v43 }
 0x78d   :  { %4107 = vmatprep.subr.bf16.mxu1 %v9517_v15  ;;  %4566 = vmatpush1.bf16.msra.mxu0 %v9551_v55 }
 0x78e   :  { %4567 = vmatprep.subr.bf16.mxu0 %v9556_v40 }
 0x790   :  { %4108 = vmatpush2.bf16.msra.mxu1 %v9515_v23 }
 0x791   :  { %4109 = vmatprep.subr.bf16.mxu1 %v9520_v45  ;;  %4568 = vmatpush1.bf16.msra.mxu0 %v9554_v47 }
 0x792   :  { %4569 = vmatprep.subr.bf16.mxu0 %v9559_v9 }
 0x794   :  { %4110 = vmatpush2.bf16.msra.mxu1 %v9518_v10 }
 0x795   :  { %4111 = vmatprep.subr.bf16.mxu1 %v9523_v62  ;;  %4570 = vmatpush1.bf16.msra.mxu0 %v9557_v57 }
 0x796   :  { %4571 = vmatprep.subr.bf16.mxu0 %v9562_v51 }
 0x798   :  { %4112 = vmatpush2.bf16.msra.mxu1 %v9521_v5 }
 0x799   :  { %4113 = vmatprep.subr.bf16.mxu1 %v9526_v20  ;;  %4572 = vmatpush1.bf16.msra.mxu0 %v9560_v21 }
 0x79a   :  { %4573 = vmatprep.subr.bf16.mxu0 %v9565_v14 }
 0x79c   :  { %4114 = vmatpush2.bf16.msra.mxu1 %v9524_v34 }
 0x79d   :  { %4115 = vmatprep.subr.bf16.mxu1 %v9529_v25  ;;  %4574 = vmatpush1.bf16.msra.mxu0 %v9563_v39 }
 0x79e   :  { %4575 = vmatprep.subr.bf16.mxu0 %v9568_v26 }
 0x7a0   :  { %4116 = vmatpush2.bf16.msra.mxu1 %v9527_v48 }
 0x7a1   :  { %4117 = vmatprep.subr.bf16.mxu1 %v9532_v28  ;;  %4576 = vmatpush2.bf16.msra.mxu0 %v9566_v2  ;;  %v9590_v28 = vld [vmem:[%s12794_s7 + $0x470] ss:$8 sps:$4 sm:$0xff]   ;;  %v9595_v2 = vld [vmem:[%s12794_s7 + $0x464] ss:$8 sps:$4 sm:$0xff]  }
 0x7a2   :  { %4577 = vmatprep.subr.bf16.mxu0 %v9571_v29 }
 0x7a4   :  { %4118 = vmatpush2.bf16.msra.mxu1 %v9530_v12  ;;  %v9593_v12 = vld [vmem:[%s12794_s7 + $0x460] ss:$8 sps:$4 sm:$0xff]  }
 0x7a5   :  { %4119 = vmatprep.subr.bf16.mxu1 %v9535_v13  ;;  %4578 = vmatpush2.bf16.msra.mxu0 %v9569_v35 }
 0x7a6   :  { %4579 = vmatprep.subr.bf16.mxu0 %v9574_v60 }
 0x7a8   :  { %4120 = vmatpush2.bf16.msra.mxu1 %v9533_v50 }
 0x7a9   :  { %9066 = vmatprep.subr.msk.mxu1 %vm2442_vm2, %v11314_v31  ;;  %4580 = vmatpush2.bf16.msra.mxu0 %v9572_v0 }
 0x7aa   :  { %4581 = vmatprep.subr.bf16.mxu0 %v9577_v59 }
 0x7ab   :  { %4122 = vmatmul.mubr.bf16.vlgmr.msra.gmra.mxu1 %v3397_v7  ;;  %v9538_v7 = vld [vmem:[%s12794_s7 + $0x354] ss:$8 sps:$4 sm:$0xff]  }
 0x7ac   :  { %9067 = vmatpush3.msk.msra.mxu1 %vm2442_vm2, %v11314_v31  ;;  %9076 = vmatprep.mubr.msk.f32.mxu1 %vm3229_vm6, %v11581_v19  ;;  %v9575_v19 = vld [vmem:[%s12794_s7 + $0x300] ss:$8 sps:$4 sm:$0xff]  }
 0x7ad   :  { %9068 = vmatprep.subr.mxu1 %v11326_v37  ;;  %4582 = vmatpush2.bf16.msra.mxu0 %v9575_v19 }
 0x7ae   :  { %9069 = vmatpush3.msra.mxu1 %v11326_v37  ;;  %4583 = vmatprep.subr.bf16.mxu0 %v9580_v44 }
 0x7af   :  { %9070 = vmatprep.subr.mxu1 %v11338_v17 }
 0x7b0   :  { %9071 = vmatpush3.msra.mxu1 %v11338_v17 }
 0x7b1   :  { %9072 = vmatprep.subr.mxu1 %v11348_v63  ;;  %4584 = vmatpush2.bf16.msra.mxu0 %v9578_v8 }
 0x7b2   :  { %9073 = vmatpush3.msra.mxu1 %v11348_v63  ;;  %4585 = vmatprep.subr.bf16.mxu0 %v9583_v46  ;;  %v4651_v46 = vld [vmem:[#allocation5 + $0x38] sm:$0x3f] }
 0x7b3   :  { %9074 = vmatprep.subr.mxu1 %v11358_v33 }
 0x7b4   :  { %9075 = vmatpush3.msra.mxu1 %v11358_v33 }
 0x7b5   :  { %9077 = vmatmul.mubr.msk.f32.vlgmr.msra.gmra.mxu1 %vm3229_vm6, %v11600_v58  ;;  %4614 = vmatprep.subr.bf16.mxu1 %v9538_v7  ;;  %v9581_v58 = vld [vmem:[%s12794_s7 + $0x2e0] ss:$8 sps:$4 sm:$0xff]  }
 0x7b6   :  { %4615 = vmatpush1.bf16.msra.mxu1 %v9536_v3  ;;  %4634 = vmatprep.mubr.bf16.mxu1 %v9893_v30 }
 0x7b7   :  { %4616 = vmatprep.subr.bf16.mxu1 %v9541_v52  ;;  %4586 = vmatpush2.bf16.msra.mxu0 %v9581_v58 }
 0x7b8   :  { %4587 = vmatprep.subr.bf16.mxu0 %v9586_v61  ;;  %v9596_v61 = vld [vmem:[%s12794_s7 + $0x3d0] ss:$8 sps:$4 sm:$0xff]  }
 0x7ba   :  { %4617 = vmatpush1.bf16.msra.mxu1 %v9539_v56 }
 0x7bb   :  { %8455 = vmatprep.subr.msk.mxu1 %vm2442_vm2, %v11308_v54  ;;  %4588 = vmatpush2.bf16.msra.mxu0 %v9584_v16  ;;  %v9598_v16 = vld [vmem:[%s12794_s7 + $0x3d4] ss:$8 sps:$4 sm:$0xff]  }
 0x7bc   :  { %4589 = vmatprep.subr.bf16.mxu0 %v9589_v36  ;;  %v9599_v36 = vld [vmem:[%s12794_s7 + $0x3c0] ss:$8 sps:$4 sm:$0xff]  }
 0x7bf   :  { %4590 = vmatpush2.bf16.msra.mxu0 %v9587_v42  ;;  %v9601_v42 = vld [vmem:[%s12794_s7 + $0x3c4] ss:$8 sps:$4 sm:$0xff]  }
 0x7c0   :  { %5088 = vmatprep.subr.bf16.mxu0 %v9592_v11  ;;  %v9604_v11 = vld [vmem:[%s12794_s7 + $0x3b4] ss:$8 sps:$4 sm:$0xff]  }
 0x82a   :  { %v3897_v22 = vpop.f32.mrf.mxu1 }
 0x82c   :  { %v3899_v43 = vpop.f32.mrf.mxu1 }
 0x82d   :  { %v3854_v15 = vpop.f32.mrf.mxu0 }
 0x82e   :  { %v3898_v55 = vadd.f32 %v3897_v22, %v3854_v15  ;;  %v3901_v40 = vpop.f32.mrf.mxu1  ;;  %v9602_v22 = vld [vmem:[%s12794_s7 + $0x3b0] ss:$8 sps:$4 sm:$0xff]   ;;  %v9605_v15 = vld [vmem:[%s12794_s7 + $0x3a0] ss:$8 sps:$4 sm:$0xff]  }
 0x82f   :  { %v3856_v23 = vpop.f32.mrf.mxu0 }
 0x830   :  { %v3900_v45 = vadd.f32 %v3899_v43, %v3856_v23  ;;  %v3903_v10 = vpop.f32.mrf.mxu1  ;;  %v9607_v43 = vld [vmem:[%s12794_s7 + $0x3a4] ss:$8 sps:$4 sm:$0xff]  }
 0x831   :  { %v3858_v47 = vpop.f32.mrf.mxu0  ;;  %v9613_v23 = vld [vmem:[%s12794_s7 + $0x384] ss:$8 sps:$4 sm:$0xff]  }
 0x832   :  { %v3902_v9 = vadd.f32 %v3901_v40, %v3858_v47  ;;  %v9608_v40 = vld [vmem:[%s12794_s7 + $0x390] ss:$8 sps:$4 sm:$0xff]   ;;  %v9616_v47 = vld [vmem:[%s12794_s7 + $0x374] ss:$8 sps:$4 sm:$0xff]  }
 0x833   :  { %v3860_v62 = vpop.f32.mrf.mxu0 }
 0x834   :  { %v3904_v57 = vadd.f32 %v3903_v10, %v3860_v62  ;;  %v9619_v10 = vld [vmem:[%s12794_s7 + $0x364] ss:$8 sps:$4 sm:$0xff]   ;;  %v9617_v62 = vld [vmem:[%s12794_s7 + $0x360] ss:$8 sps:$4 sm:$0xff]  }
 0x835   :  { %v4166_v51 = vpop.f32.mrf.mxu0 }
 0x837   :  { %v4168_v5 = vpop.f32.mrf.mxu0 }
 0x839   :  { %v4170_v20 = vpop.f32.mrf.mxu0 }
 0x83b   :  { %v4172_v21 = vpop.f32.mrf.mxu0 }
 0x83f   :  { %v4250_v14 = vpop.f32.mrf.mxu0 }
 0x841   :  { %v4252_v34 = vpop.f32.mrf.mxu0 }
 0x843   :  { %v4256_v25 = vpop.f32.mrf.mxu0 }
 0x844   :  { %v4336_v39 = vpack.c.bf16 %v4256_v25, %v4250_v14  ;;  %v9626_v14 = vld [vmem:[%s12794_s7 + $0x430] ss:$8 sps:$4 sm:$0xff]   ;;  %v9629_v25 = vld [vmem:[%s12794_s7 + $0x420] ss:$8 sps:$4 sm:$0xff]  }
 0x845   :  { %v4258_v26 = vpop.f32.mrf.mxu0 }
 0x846   :  { %v4337_v48 = vpack.c.bf16 %v4258_v26, %v4252_v34  ;;  %v9631_v34 = vld [vmem:[%s12794_s7 + $0x424] ss:$8 sps:$4 sm:$0xff]   ;;  %v9632_v26 = vld [vmem:[%s12794_s7 + $0x410] ss:$8 sps:$4 sm:$0xff]  }
 0x848   :  { %4591 = vmatprep.mubr.bf16.mxu0 %v4337_v48  ;;  %v9637_v48 = vld [vmem:[%s12794_s7 + $0x404] ss:$8 sps:$4 sm:$0xff]  }
 0x849   :  { %4592 = vmatmul.mubr.bf16.vlgmr.msra.gmra.mxu0 %v4336_v39  ;;  %v9634_v39 = vld [vmem:[%s12794_s7 + $0x414] ss:$8 sps:$4 sm:$0xff]  }
 0x84a   :  { %5089 = vmatpush1.bf16.msra.mxu0 %v9590_v28  ;;  %5108 = vmatprep.mubr.bf16.mxu0 %v9893_v30  ;;  %v9635_v28 = vld [vmem:[%s12794_s7 + $0x400] ss:$8 sps:$4 sm:$0xff]  }
 0x84b   :  { %5090 = vmatprep.subr.bf16.mxu0 %v9595_v2  ;;  %v9640_v2 = vld [vmem:[%s12794_s7 + $0x3f4] ss:$8 sps:$4 sm:$0xff]  }
 0x84e   :  { %5091 = vmatpush1.bf16.msra.mxu0 %v9593_v12  ;;  %v9638_v12 = vld [vmem:[%s12794_s7 + $0x3f0] ss:$8 sps:$4 sm:$0xff]  }
 0x84f   :  { %8535 = vmatprep.subr.msk.mxu0 %vm2442_vm2, %v11308_v54  ;;  %v4650_v54 = vld [vmem:[#allocation5 + $0x30] sm:$0xff] }
 0x86b   :  { %v4123_v13 = vpop.f32.mrf.mxu1 }
 0x86c   :  { %v4124_v50 = vadd.f32 %v4123_v13, %v3898_v55  ;;  %v9610_v55 = vld [vmem:[%s12794_s7 + $0x394] ss:$8 sps:$4 sm:$0xff]   ;;  %v9643_v13 = vld [vmem:[%s12794_s7 + $0x3e4] ss:$8 sps:$4 sm:$0xff]  }
 0x86d   :  { %v4125_v35 = vpop.f32.mrf.mxu1 }
 0x86e   :  { %v11794_v29 = vadd.f32 %v4166_v51, %v4124_v50  ;;  %v4126_v0 = vadd.f32 %v4125_v35, %v3900_v45  ;;  %v9611_v45 = vld [vmem:[%s12794_s7 + $0x380] ss:$8 sps:$4 sm:$0xff]   ;;  %v9620_v51 = vld [vmem:[%s12794_s7 + $0x450] ss:$8 sps:$4 sm:$0xff]  }
 0x86f   :  { %v4127_v60 = vpop.f32.mrf.mxu1  ;;  %v9641_v50 = vld [vmem:[%s12794_s7 + $0x3e0] ss:$8 sps:$4 sm:$0xff]  }
 0x870   :  { %v11796_v7 = vadd.f32 %v4168_v5, %v4126_v0  ;;  %v4128_v3 = vadd.f32 %v4127_v60, %v3902_v9  ;;  %v9614_v9 = vld [vmem:[%s12794_s7 + $0x370] ss:$8 sps:$4 sm:$0xff]   ;;  %v9625_v5 = vld [vmem:[%s12794_s7 + $0x444] ss:$8 sps:$4 sm:$0xff]  }
 0x871   :  { %v4129_v52 = vpop.f32.mrf.mxu1 }
 0x872   :  { %v11798_v19 = vadd.f32 %v4170_v20, %v4128_v3  ;;  %v4130_v59 = vadd.f32 %v4129_v52, %v3904_v57  ;;  %v9622_v57 = vld [vmem:[%s12794_s7 + $0x454] ss:$8 sps:$4 sm:$0xff]   ;;  %v9623_v20 = vld [vmem:[%s12794_s7 + $0x440] ss:$8 sps:$4 sm:$0xff]  }
 0x874   :  { %v11800_v56 = vadd.f32 %v4172_v21, %v4130_v59  ;;  %v9628_v21 = vld [vmem:[%s12794_s7 + $0x434] ss:$8 sps:$4 sm:$0xff]  }
 0x875   :  { %v9078_v8 = vpop.f32.mrf.mxu1 }
 0x877   :  { %v4327_v44 = vpop.f32.mrf.mxu1 }
 0x878   :  { %v4338_v58 = vpack.c.bf16 %v9078_v8, %v4327_v44 }
 0x87a   :  { %8454 = vmatmul.mubr.msk.bf16.vlgmr.msra.gmra.mxu1 %vm634_vm1, %v4338_v58 }
 0x87b   :  { %8456 = vmatpush1.msk.msra.mxu1 %vm2442_vm2, %v11312_v41  ;;  %4722 = vmatprep.mubr.f32.mxu1 %v9892_v1 }
 0x87c   :  { %4682 = vmatprep.subr.mxu1 %v11318_v24 }
 0x87d   :  { %4683 = vmatpush1.msra.mxu1 %v11324_v49 }
 0x87e   :  { %4684 = vmatprep.subr.mxu1 %v11331_v38 }
 0x87f   :  { %4685 = vmatpush1.msra.mxu1 %v11336_v27 }
 0x880   :  { %4686 = vmatprep.subr.mxu1 %v11342_v53 }
 0x881   :  { %4687 = vmatpush1.msra.mxu1 %v11346_v18 }
 0x882   :  { %4688 = vmatprep.subr.mxu1 %v11352_v32 }
 0x883   :  { %4689 = vmatpush1.msra.mxu1 %v11356_v6 }
 0x884   :  { %8457 = vmatmul.mubr.msk.f32.vlgmr.msra.gmra.mxu1 %vm3229_vm6, %v4650_v54  ;;  %9079 = vmatprep.subr.msk.mxu1 %vm2442_vm2, %v11314_v31 }
 0x885   :  { %9080 = vmatpush3.msk.msra.mxu1 %vm2442_vm2, %v11314_v31  ;;  %4728 = vmatprep.mubr.f32.mxu1 %v9892_v1 }
 0x886   :  { %9081 = vmatprep.subr.mxu1 %v11326_v37 }
 0x887   :  { %9082 = vmatpush3.msra.mxu1 %v11326_v37 }
 0x888   :  { %8458 = vmatmul.mubr.msk.f32.gmra.mxu1 %vm3229_vm6, %v4651_v46  ;;  %9083 = vmatprep.subr.mxu1 %v11338_v17 }
 0x889   :  { %9084 = vmatpush3.msra.mxu1 %v11338_v17  ;;  %9089 = vmatprep.mubr.msk.f32.mxu1 %vm3229_vm6, %v4650_v54 }
 0x88a   :  { %9085 = vmatprep.subr.mxu1 %v11348_v63 }
 0x88b   :  { %9086 = vmatpush3.msra.mxu1 %v11348_v63 }
 0x88c   :  { %9087 = vmatprep.subr.mxu1 %v11358_v33 }
 0x88d   :  { %9088 = vmatpush3.msra.mxu1 %v11358_v33 }
 0x88e   :  { %9090 = vmatmul.mubr.msk.f32.vlgmr.msra.gmra.mxu1 %vm3229_vm6, %v4651_v46  ;;  %5033 = vmatprep.subr.bf16.mxu1 %v9598_v16 }
 0x88f   :  { %5034 = vmatpush1.bf16.msra.mxu1 %v9596_v61 }
 0x890   :  { %5035 = vmatprep.subr.bf16.mxu1 %v9601_v42 }
 0x893   :  { %5036 = vmatpush1.bf16.msra.mxu1 %v9599_v36 }
 0x894   :  { %5037 = vmatprep.subr.bf16.mxu1 %v9604_v11 }
 0x897   :  { %5038 = vmatpush1.bf16.msra.mxu1 %v9602_v22 }
 0x898   :  { %5039 = vmatprep.subr.bf16.mxu1 %v9607_v43 }
 0x89b   :  { %5040 = vmatpush1.bf16.msra.mxu1 %v9605_v15 }
 0x89c   :  { %5041 = vmatprep.subr.bf16.mxu1 %v9610_v55 }
 0x89f   :  { %5042 = vmatpush1.bf16.msra.mxu1 %v9608_v40 }
 0x8a0   :  { %5043 = vmatprep.subr.bf16.mxu1 %v9613_v23 }
 0x8a3   :  { %5044 = vmatpush1.bf16.msra.mxu1 %v9611_v45 }
 0x8a4   :  { %5045 = vmatprep.subr.bf16.mxu1 %v9616_v47  ;;  %v9667_v47 = vld [vmem:[%s12794_s7 + $0x484] ss:$8 sps:$4 sm:$0xff]  }
 0x8a7   :  { %5046 = vmatpush1.bf16.msra.mxu1 %v9614_v9  ;;  %v9665_v9 = vld [vmem:[%s12794_s7 + $0x480] ss:$8 sps:$4 sm:$0xff]  }
 0x8a8   :  { %5047 = vmatprep.subr.bf16.mxu1 %v9619_v10  ;;  %v9670_v10 = vld [vmem:[%s12794_s7 + $0x574] ss:$8 sps:$4 sm:$0xff]  }
 0x8ab   :  { %5048 = vmatpush1.bf16.msra.mxu1 %v9617_v62  ;;  %v9668_v62 = vld [vmem:[%s12794_s7 + $0x570] ss:$8 sps:$4 sm:$0xff]  }
 0x8ac   :  { %5049 = vmatprep.subr.bf16.mxu1 %v9622_v57  ;;  %v9673_v57 = vld [vmem:[%s12794_s7 + $0x564] ss:$8 sps:$4 sm:$0xff]  }
 0x8af   :  { %5050 = vmatpush2.bf16.msra.mxu1 %v9620_v51  ;;  %v9671_v51 = vld [vmem:[%s12794_s7 + $0x560] ss:$8 sps:$4 sm:$0xff]  }
 0x8b0   :  { %5051 = vmatprep.subr.bf16.mxu1 %v9625_v5  ;;  %v9676_v5 = vld [vmem:[%s12794_s7 + $0x554] ss:$8 sps:$4 sm:$0xff]  }
 0x8b3   :  { %5052 = vmatpush2.bf16.msra.mxu1 %v9623_v20  ;;  %v9674_v20 = vld [vmem:[%s12794_s7 + $0x550] ss:$8 sps:$4 sm:$0xff]  }
 0x8b4   :  { %5053 = vmatprep.subr.bf16.mxu1 %v9628_v21  ;;  %v9679_v21 = vld [vmem:[%s12794_s7 + $0x544] ss:$8 sps:$4 sm:$0xff]  }
 0x8b7   :  { %5054 = vmatpush2.bf16.msra.mxu1 %v9626_v14  ;;  %v9677_v14 = vld [vmem:[%s12794_s7 + $0x540] ss:$8 sps:$4 sm:$0xff]  }
 0x8b8   :  { %5055 = vmatprep.subr.bf16.mxu1 %v9631_v34  ;;  %v9682_v34 = vld [vmem:[%s12794_s7 + $0x534] ss:$8 sps:$4 sm:$0xff]  }
 0x8bb   :  { %5056 = vmatpush2.bf16.msra.mxu1 %v9629_v25  ;;  %v9680_v25 = vld [vmem:[%s12794_s7 + $0x530] ss:$8 sps:$4 sm:$0xff]  }
 0x8bc   :  { %5057 = vmatprep.subr.bf16.mxu1 %v9634_v39  ;;  %v9685_v39 = vld [vmem:[%s12794_s7 + $0x524] ss:$8 sps:$4 sm:$0xff]  }
 0x8bf   :  { %5058 = vmatpush2.bf16.msra.mxu1 %v9632_v26  ;;  %v9683_v26 = vld [vmem:[%s12794_s7 + $0x520] ss:$8 sps:$4 sm:$0xff]  }
 0x8c0   :  { %5059 = vmatprep.subr.bf16.mxu1 %v9637_v48  ;;  %v9688_v48 = vld [vmem:[%s12794_s7 + $0x514] ss:$8 sps:$4 sm:$0xff]  }
 0x8c3   :  { %5060 = vmatpush2.bf16.msra.mxu1 %v9635_v28  ;;  %v9686_v28 = vld [vmem:[%s12794_s7 + $0x510] ss:$8 sps:$4 sm:$0xff]  }
 0x8c4   :  { %5061 = vmatprep.subr.bf16.mxu1 %v9640_v2  ;;  %v9691_v2 = vld [vmem:[%s12794_s7 + $0x504] ss:$8 sps:$4 sm:$0xff]  }
 0x8c7   :  { %5062 = vmatpush2.bf16.msra.mxu1 %v9638_v12  ;;  %v9689_v12 = vld [vmem:[%s12794_s7 + $0x500] ss:$8 sps:$4 sm:$0xff]  }
 0x8c8   :  { %5063 = vmatprep.subr.bf16.mxu1 %v9643_v13  ;;  %v9694_v13 = vld [vmem:[%s12794_s7 + $0x594] ss:$8 sps:$4 sm:$0xff]  }
 0x8cb   :  { %5064 = vmatpush2.bf16.msra.mxu1 %v9641_v50  ;;  %v9692_v50 = vld [vmem:[%s12794_s7 + $0x590] ss:$8 sps:$4 sm:$0xff]  }
 0x8cc   :  { %5562 = vmatprep.subr.bf16.mxu1 %v9694_v13 }
 0x909   :  { %v4593_v35 = vpop.f32.mrf.mxu0 }
 0x90b   :  { %v4595_v0 = vpop.f32.mrf.mxu0 }
 0x90d   :  { %v4597_v3 = vpop.f32.mrf.mxu0 }
 0x90f   :  { %v4599_v54 = vpop.f32.mrf.mxu0 }
 0x93a   :  { %v4636_v60 = vpop.f32.mrf.mxu1 }
 0x93b   :  { %v4637_v52 = vadd.f32 %v4636_v60, %v4593_v35  ;;  %v9697_v35 = vld [vmem:[%s12794_s7 + $0x584] ss:$8 sps:$4 sm:$0xff]  }
 0x93c   :  { %v4638_v59 = vpop.f32.mrf.mxu1 }
 0x93d   :  { %v11928_v8 = vadd.f32 %v4637_v52, %v11794_v29  ;;  %v4639_v44 = vadd.f32 %v4638_v59, %v4595_v0  ;;  %v9695_v0 = vld [vmem:[%s12794_s7 + $0x580] ss:$8 sps:$4 sm:$0xff]  }
 0x93e   :  { %v4640_v58 = vpop.f32.mrf.mxu1 }
 0x93f   :  { %v11931_v46 = vadd.f32 %v4639_v44, %v11796_v7  ;;  %v4641_v16 = vadd.f32 %v4640_v58, %v4597_v3 }
 0x940   :  { %v4642_v61 = vpop.f32.mrf.mxu1 }
 0x941   :  { %v11934_v42 = vadd.f32 %v4641_v16, %v11798_v19  ;;  %v4643_v36 = vadd.f32 %v4642_v61, %v4599_v54  ;;  %v5124_v19 = vld [vmem:[#allocation5 + $0x40] sm:$0xff] }
 0x943   :  { %v11937_v11 = vadd.f32 %v4643_v36, %v11800_v56  ;;  %v9662_v56 = vld [vmem:[%s12794_s7 + $0x490] ss:$8 sps:$4 sm:$0xff]  }
 0x944   :  { %v4724_v22 = vpop.f32.mrf.mxu1 }
 0x946   :  { %v4726_v43 = vpop.f32.mrf.mxu1 }
 0x948   :  { %v4730_v15 = vpop.f32.mrf.mxu1 }
 0x949   :  { %v4810_v40 = vpack.c.bf16 %v4730_v15, %v4724_v22 }
 0x94a   :  { %v4732_v29 = vpop.f32.mrf.mxu1 }
 0x94b   :  { %v4811_v55 = vpack.c.bf16 %v4732_v29, %v4726_v43 }
 0x94d   :  { %5065 = vmatprep.mubr.bf16.mxu1 %v4811_v55 }
 0x94e   :  { %v9091_v23 = vpop.f32.mrf.mxu1  ;;  %5066 = vmatmul.mubr.bf16.vlgmr.msra.gmra.mxu1 %v4810_v40 }
 0x94f   :  { %5582 = vmatprep.mubr.bf16.mxu1 %v9893_v30  ;;  %5563 = vmatpush1.bf16.msra.mxu1 %v9692_v50 }
 0x950   :  { %v4801_v7 = vpop.f32.mrf.mxu1  ;;  %5564 = vmatprep.subr.bf16.mxu1 %v9697_v35 }
 0x951   :  { %v4812_v45 = vpack.c.bf16 %v9091_v23, %v4801_v7 }
 0x953   :  { %8534 = vmatmul.mubr.msk.bf16.vlgmr.msra.gmra.mxu0 %vm634_vm1, %v4812_v45  ;;  %5565 = vmatpush1.bf16.msra.mxu1 %v9695_v0 }
 0x954   :  { %8536 = vmatpush1.msk.msra.mxu0 %vm2442_vm2, %v11312_v41  ;;  %5196 = vmatprep.mubr.f32.mxu0 %v9892_v1  ;;  %v5125_v41 = vld [vmem:[#allocation5 + $0x48] sm:$0x3f] }
 0x955   :  { %5156 = vmatprep.subr.mxu0 %v11318_v24  ;;  %v9644_v24 = vld [vmem:[%s12794_s7 + $0x4f0] ss:$8 sps:$4 sm:$0xff]   ;;  %5669 = vmatprep.subr.mxu1 %v9892_v1 }
 0x956   :  { %5157 = vmatpush1.msra.mxu0 %v11324_v49  ;;  %v9649_v49 = vld [vmem:[%s12794_s7 + $0x4e4] ss:$8 sps:$4 sm:$0xff]  }
 0x957   :  { %5158 = vmatprep.subr.mxu0 %v11331_v38  ;;  %v9652_v38 = vld [vmem:[%s12794_s7 + $0x4d4] ss:$8 sps:$4 sm:$0xff]  }
 0x958   :  { %5159 = vmatpush1.msra.mxu0 %v11336_v27  ;;  %v9650_v27 = vld [vmem:[%s12794_s7 + $0x4d0] ss:$8 sps:$4 sm:$0xff]  }
 0x959   :  { %5160 = vmatprep.subr.mxu0 %v11342_v53  ;;  %v9653_v53 = vld [vmem:[%s12794_s7 + $0x4c0] ss:$8 sps:$4 sm:$0xff]  }
 0x95a   :  { %5161 = vmatpush1.msra.mxu0 %v11346_v18  ;;  %v9658_v18 = vld [vmem:[%s12794_s7 + $0x4b4] ss:$8 sps:$4 sm:$0xff]  }
 0x95b   :  { %5162 = vmatprep.subr.mxu0 %v11352_v32  ;;  %v9661_v32 = vld [vmem:[%s12794_s7 + $0x4a4] ss:$8 sps:$4 sm:$0xff]  }
 0x95c   :  { %5163 = vmatpush1.msra.mxu0 %v11356_v6  ;;  %v9659_v6 = vld [vmem:[%s12794_s7 + $0x4a0] ss:$8 sps:$4 sm:$0xff]  }
 0x95d   :  { %8537 = vmatmul.mubr.msk.f32.vlgmr.msra.gmra.mxu0 %vm3229_vm6, %v5124_v19  ;;  %9092 = vmatprep.subr.msk.mxu0 %vm2442_vm2, %v11314_v31 }
 0x95e   :  { %9093 = vmatpush3.msk.msra.mxu0 %vm2442_vm2, %v11314_v31  ;;  %5202 = vmatprep.mubr.f32.mxu0 %v9892_v1  ;;  %v9646_v31 = vld [vmem:[%s12794_s7 + $0x4f4] ss:$8 sps:$4 sm:$0xff]  }
 0x95f   :  { %9094 = vmatprep.subr.mxu0 %v11326_v37 }
 0x960   :  { %9095 = vmatpush3.msra.mxu0 %v11326_v37  ;;  %v9647_v37 = vld [vmem:[%s12794_s7 + $0x4e0] ss:$8 sps:$4 sm:$0xff]  }
 0x961   :  { %8538 = vmatmul.mubr.msk.f32.gmra.mxu0 %vm3229_vm6, %v5125_v41  ;;  %9096 = vmatprep.subr.mxu0 %v11338_v17 }
 0x962   :  { %9097 = vmatpush3.msra.mxu0 %v11338_v17  ;;  %9102 = vmatprep.mubr.msk.f32.mxu0 %vm3229_vm6, %v5124_v19  ;;  %v9655_v17 = vld [vmem:[%s12794_s7 + $0x4c4] ss:$8 sps:$4 sm:$0xff]  }
 0x963   :  { %9098 = vmatprep.subr.mxu0 %v11348_v63 }
 0x964   :  { %9099 = vmatpush3.msra.mxu0 %v11348_v63  ;;  %v9656_v63 = vld [vmem:[%s12794_s7 + $0x4b0] ss:$8 sps:$4 sm:$0xff]  }
 0x965   :  { %9100 = vmatprep.subr.mxu0 %v11358_v33 }
 0x966   :  { %9101 = vmatpush3.msra.mxu0 %v11358_v33  ;;  %v9664_v33 = vld [vmem:[%s12794_s7 + $0x494] ss:$8 sps:$4 sm:$0xff]  }
 0x967   :  { %9103 = vmatmul.mubr.msk.f32.vlgmr.msra.gmra.mxu0 %vm3229_vm6, %v5125_v41  ;;  %5507 = vmatprep.subr.bf16.mxu0 %v9646_v31 }
 0x968   :  { %5508 = vmatpush1.bf16.msra.mxu0 %v9644_v24 }
 0x969   :  { %5509 = vmatprep.subr.bf16.mxu0 %v9649_v49  ;;  %v5651_v49 = vld [vmem:[%s12796_s9 + $0x68] sm:$0xff] }
 0x96c   :  { %5510 = vmatpush1.bf16.msra.mxu0 %v9647_v37  ;;  %v5650_v37 = vld [vmem:[%s12796_s9 + $0x60] sm:$0xff] }
 0x96d   :  { %5511 = vmatprep.subr.bf16.mxu0 %v9652_v38  ;;  %v5649_v38 = vld [vmem:[%s12796_s9 + $0x58] sm:$0xff] }
 0x970   :  { %5512 = vmatpush1.bf16.msra.mxu0 %v9650_v27  ;;  %v5648_v27 = vld [vmem:[%s12796_s9 + $0x50] sm:$0xff] }
 0x971   :  { %5513 = vmatprep.subr.bf16.mxu0 %v9655_v17  ;;  %v5647_v17 = vld [vmem:[%s12796_s9 + $0x48] sm:$0xff] }
 0x974   :  { %5514 = vmatpush1.bf16.msra.mxu0 %v9653_v53  ;;  %v5646_v53 = vld [vmem:[%s12796_s9 + $0x40] sm:$0xff] }
 0x975   :  { %5515 = vmatprep.subr.bf16.mxu0 %v9658_v18  ;;  %v5645_v18 = vld [vmem:[%s12796_s9 + $0x38] sm:$0xff] }
 0x978   :  { %5516 = vmatpush1.bf16.msra.mxu0 %v9656_v63  ;;  %v5644_v63 = vld [vmem:[%s12796_s9 + $0x30] sm:$0xff] }
 0x979   :  { %5517 = vmatprep.subr.bf16.mxu0 %v9661_v32  ;;  %v5643_v32 = vld [vmem:[%s12796_s9 + $0x28] sm:$0xff] }
 0x97c   :  { %5518 = vmatpush1.bf16.msra.mxu0 %v9659_v6  ;;  %v5642_v6 = vld [vmem:[%s12796_s9 + $0x20] sm:$0xff] }
 0x97d   :  { %5519 = vmatprep.subr.bf16.mxu0 %v9664_v33  ;;  %v5641_v33 = vld [vmem:[%s12796_s9 + $0x18] sm:$0xff] }
 0x980   :  { %5520 = vmatpush1.bf16.msra.mxu0 %v9662_v56  ;;  %v5640_v56 = vld [vmem:[%s12796_s9 + $0x10] sm:$0xff] }
 0x981   :  { %5521 = vmatprep.subr.bf16.mxu0 %v9667_v47  ;;  %v5639_v47 = vld [vmem:[%s12796_s9 + $0x8] sm:$0xff] }
 0x984   :  { %5522 = vmatpush1.bf16.msra.mxu0 %v9665_v9  ;;  %v5638_v9 = vld [vmem:[%s12796_s9] sm:$0xff] }
 0x985   :  { %5523 = vmatprep.subr.bf16.mxu0 %v9670_v10  ;;  %v5665_v10 = vld [vmem:[%s12796_s9 + $0xd8] sm:$0xff] }
 0x988   :  { %5524 = vmatpush2.bf16.msra.mxu0 %v9668_v62  ;;  %v5664_v62 = vld [vmem:[%s12796_s9 + $0xd0] sm:$0xff] }
 0x989   :  { %5525 = vmatprep.subr.bf16.mxu0 %v9673_v57  ;;  %v5663_v57 = vld [vmem:[%s12796_s9 + $0xc8] sm:$0xff] }
 0x98c   :  { %5526 = vmatpush2.bf16.msra.mxu0 %v9671_v51  ;;  %v5662_v51 = vld [vmem:[%s12796_s9 + $0xc0] sm:$0xff] }
 0x98d   :  { %5527 = vmatprep.subr.bf16.mxu0 %v9676_v5  ;;  %v5661_v5 = vld [vmem:[%s12796_s9 + $0xb8] sm:$0xff] }
 0x990   :  { %5528 = vmatpush2.bf16.msra.mxu0 %v9674_v20  ;;  %v5660_v20 = vld [vmem:[%s12796_s9 + $0xb0] sm:$0xff] }
 0x991   :  { %5529 = vmatprep.subr.bf16.mxu0 %v9679_v21  ;;  %v5659_v21 = vld [vmem:[%s12796_s9 + $0xa8] sm:$0xff] }
 0x994   :  { %5530 = vmatpush2.bf16.msra.mxu0 %v9677_v14  ;;  %v5658_v14 = vld [vmem:[%s12796_s9 + $0xa0] sm:$0xff] }
 0x995   :  { %5531 = vmatprep.subr.bf16.mxu0 %v9682_v34  ;;  %v5657_v34 = vld [vmem:[%s12796_s9 + $0x98] sm:$0xff] }
 0x998   :  { %5532 = vmatpush2.bf16.msra.mxu0 %v9680_v25  ;;  %v5656_v25 = vld [vmem:[%s12796_s9 + $0x90] sm:$0xff] }
 0x999   :  { %5533 = vmatprep.subr.bf16.mxu0 %v9685_v39  ;;  %v5655_v39 = vld [vmem:[%s12796_s9 + $0x88] sm:$0xff] }
 0x99c   :  { %5534 = vmatpush2.bf16.msra.mxu0 %v9683_v26  ;;  %v5654_v26 = vld [vmem:[%s12796_s9 + $0x80] sm:$0xff] }
 0x99d   :  { %5535 = vmatprep.subr.bf16.mxu0 %v9688_v48 }
 0x9a0   :  { %5536 = vmatpush2.bf16.msra.mxu0 %v9686_v28 }
 0x9a1   :  { %5537 = vmatprep.subr.bf16.mxu0 %v9691_v2 }
 0x9a4   :  { %5538 = vmatpush2.bf16.msra.mxu0 %v9689_v12 }
 0x9a5   :  { %5743 = vmatprep.subr.mxu0 %v9892_v1 }
 0xa0e   :  { %v5067_v60 = vpop.f32.mrf.mxu1 }
 0xa10   :  { %v5069_v3 = vpop.f32.mrf.mxu1 }
 0xa12   :  { %v5071_v44 = vpop.f32.mrf.mxu1 }
 0xa13   :  { %v5110_v52 = vpop.f32.mrf.mxu0 }
 0xa14   :  { %v5111_v59 = vadd.f32 %v5110_v52, %v5067_v60  ;;  %v5073_v43 = vpop.f32.mrf.mxu1 }
 0xa15   :  { %v5112_v58 = vpop.f32.mrf.mxu0 }
 0xa16   :  { %v12080_v54 = vadd.f32 %v5111_v59, %v11928_v8  ;;  %v5113_v16 = vadd.f32 %v5112_v58, %v5069_v3 }
 0xa17   :  { %v5114_v61 = vpop.f32.mrf.mxu0 }
 0xa18   :  { %v12083_v36 = vadd.f32 %v5113_v16, %v11931_v46  ;;  %v5115_v22 = vadd.f32 %v5114_v61, %v5071_v44  ;;  %v5653_v46 = vld [vmem:[%s12796_s9 + $0x78] sm:$0xff] }
 0xa19   :  { %v5116_v15 = vpop.f32.mrf.mxu0 }
 0xa1a   :  { %v12086_v29 = vadd.f32 %v5115_v22, %v11934_v42  ;;  %v5117_v55 = vadd.f32 %v5116_v15, %v5073_v43 }
 0xa1c   :  { %v12089_v40 = vadd.f32 %v5117_v55, %v11937_v11  ;;  %v5652_v11 = vld [vmem:[%s12796_s9 + $0x70] sm:$0xff] }
 0xa1d   :  { %v5198_v23 = vpop.f32.mrf.mxu0 }
 0xa1f   :  { %v5200_v7 = vpop.f32.mrf.mxu0 }
 0xa21   :  { %v5204_v45 = vpop.f32.mrf.mxu0 }
 0xa22   :  { %v5284_v41 = vpack.c.bf16 %v5204_v45, %v5198_v23 }
 0xa23   :  { %v5206_v8 = vpop.f32.mrf.mxu0 }
 0xa24   :  { %v5285_v19 = vpack.c.bf16 %v5206_v8, %v5200_v7 }
 0xa26   :  { %5539 = vmatprep.mubr.bf16.mxu0 %v5285_v19 }
 0xa27   :  { %v9104_v31 = vpop.f32.mrf.mxu0  ;;  %5540 = vmatmul.mubr.bf16.vlgmr.msra.gmra.mxu0 %v5284_v41 }
 0xa28   :  { %5744 = vmatpush1.msra.mxu0 %v5653_v46 }
 0xa29   :  { %v5275_v42 = vpop.f32.mrf.mxu0  ;;  %5745 = vmatprep.subr.mxu0 %v9892_v1 }
 0xa2a   :  { %v5286_v24 = vpack.c.bf16 %v9104_v31, %v5275_v42  ;;  %5746 = vmatpush1.msra.mxu0 %v5652_v11 }
 0xa2b   :  { %5747 = vmatprep.subr.mxu0 %v9892_v1 }
 0xa2c   :  { %8614 = vmatmul.mubr.msk.bf16.vlgmr.msra.gmra.mxu1 %vm634_vm1, %v5286_v24  ;;  %5748 = vmatpush1.msra.mxu0 %v5651_v49 }
 0xa2d   :  { %5670 = vmatpush1.msra.mxu1 %v5653_v46  ;;  %5749 = vmatprep.subr.mxu0 %v9892_v1 }
 0xa2e   :  { %5671 = vmatprep.subr.mxu1 %v9892_v1  ;;  %5750 = vmatpush1.msra.mxu0 %v5650_v37 }
 0xa2f   :  { %5672 = vmatpush1.msra.mxu1 %v5652_v11  ;;  %5751 = vmatprep.subr.mxu0 %v9892_v1 }
 0xa30   :  { %5673 = vmatprep.subr.mxu1 %v9892_v1  ;;  %5752 = vmatpush1.msra.mxu0 %v5649_v38 }
 0xa31   :  { %5674 = vmatpush1.msra.mxu1 %v5651_v49  ;;  %5753 = vmatprep.subr.mxu0 %v9892_v1 }
 0xa32   :  { %5675 = vmatprep.subr.mxu1 %v9892_v1  ;;  %5754 = vmatpush1.msra.mxu0 %v5648_v27 }
 0xa33   :  { %5676 = vmatpush1.msra.mxu1 %v5650_v37  ;;  %5755 = vmatprep.subr.mxu0 %v9892_v1 }
 0xa34   :  { %5677 = vmatprep.subr.mxu1 %v9892_v1  ;;  %5756 = vmatpush1.msra.mxu0 %v5647_v17 }
 0xa35   :  { %5678 = vmatpush1.msra.mxu1 %v5649_v38  ;;  %5757 = vmatprep.subr.mxu0 %v9892_v1 }
 0xa36   :  { %5679 = vmatprep.subr.mxu1 %v9892_v1  ;;  %5758 = vmatpush1.msra.mxu0 %v5646_v53 }
 0xa37   :  { %5680 = vmatpush1.msra.mxu1 %v5648_v27  ;;  %5759 = vmatprep.subr.mxu0 %v9892_v1 }
 0xa38   :  { %5681 = vmatprep.subr.mxu1 %v9892_v1  ;;  %5760 = vmatpush1.msra.mxu0 %v5645_v18 }
 0xa39   :  { %5682 = vmatpush1.msra.mxu1 %v5647_v17  ;;  %5761 = vmatprep.subr.mxu0 %v9892_v1 }
 0xa3a   :  { %5683 = vmatprep.subr.mxu1 %v9892_v1  ;;  %5762 = vmatpush1.msra.mxu0 %v5644_v63 }
 0xa3b   :  { %5684 = vmatpush1.msra.mxu1 %v5646_v53  ;;  %5763 = vmatprep.subr.mxu0 %v9892_v1 }
 0xa3c   :  { %5685 = vmatprep.subr.mxu1 %v9892_v1  ;;  %5764 = vmatpush1.msra.mxu0 %v5643_v32 }
 0xa3d   :  { %5686 = vmatpush1.msra.mxu1 %v5645_v18  ;;  %5765 = vmatprep.subr.mxu0 %v9892_v1 }
 0xa3e   :  { %5687 = vmatprep.subr.mxu1 %v9892_v1  ;;  %5766 = vmatpush1.msra.mxu0 %v5642_v6 }
 0xa3f   :  { %5688 = vmatpush1.msra.mxu1 %v5644_v63  ;;  %5767 = vmatprep.subr.mxu0 %v9892_v1 }
 0xa40   :  { %5689 = vmatprep.subr.mxu1 %v9892_v1  ;;  %5768 = vmatpush1.msra.mxu0 %v5641_v33 }
 0xa41   :  { %5690 = vmatpush1.msra.mxu1 %v5643_v32  ;;  %5769 = vmatprep.subr.mxu0 %v9892_v1 }
 0xa42   :  { %5691 = vmatprep.subr.mxu1 %v9892_v1  ;;  %5770 = vmatpush1.msra.mxu0 %v5640_v56 }
 0xa43   :  { %5692 = vmatpush1.msra.mxu1 %v5642_v6  ;;  %5771 = vmatprep.subr.mxu0 %v9892_v1 }
 0xa44   :  { %5693 = vmatprep.subr.mxu1 %v9892_v1  ;;  %5772 = vmatpush1.msra.mxu0 %v5639_v47 }
 0xa45   :  { %5694 = vmatpush1.msra.mxu1 %v5641_v33  ;;  %5773 = vmatprep.subr.mxu0 %v9892_v1 }
 0xa46   :  { %5695 = vmatprep.subr.mxu1 %v9892_v1  ;;  %5774 = vmatpush1.msra.mxu0 %v5638_v9 }
 0xa47   :  { %5696 = vmatpush1.msra.mxu1 %v5640_v56  ;;  %5783 = vmatprep.subr.mxu0 %v9892_v1 }
 0xa48   :  { %5697 = vmatprep.subr.mxu1 %v9892_v1  ;;  %5784 = vmatpush2.msra.mxu0 %v5665_v10 }
 0xa49   :  { %5698 = vmatpush1.msra.mxu1 %v5639_v47  ;;  %5785 = vmatprep.subr.mxu0 %v9892_v1 }
 0xa4a   :  { %5699 = vmatprep.subr.mxu1 %v9892_v1  ;;  %5786 = vmatpush2.msra.mxu0 %v5664_v62 }
 0xa4b   :  { %5700 = vmatpush1.msra.mxu1 %v5638_v9  ;;  %5787 = vmatprep.subr.mxu0 %v9892_v1 }
 0xa4c   :  { %5709 = vmatprep.subr.mxu1 %v9892_v1  ;;  %5788 = vmatpush2.msra.mxu0 %v5663_v57 }
 0xa4d   :  { %5710 = vmatpush2.msra.mxu1 %v5665_v10  ;;  %5789 = vmatprep.subr.mxu0 %v9892_v1 }
 0xa4e   :  { %5711 = vmatprep.subr.mxu1 %v9892_v1  ;;  %5790 = vmatpush2.msra.mxu0 %v5662_v51 }
 0xa4f   :  { %5712 = vmatpush2.msra.mxu1 %v5664_v62  ;;  %5791 = vmatprep.subr.mxu0 %v9892_v1 }
 0xa50   :  { %5713 = vmatprep.subr.mxu1 %v9892_v1  ;;  %5792 = vmatpush2.msra.mxu0 %v5661_v5 }
 0xa51   :  { %5714 = vmatpush2.msra.mxu1 %v5663_v57  ;;  %5793 = vmatprep.subr.mxu0 %v9892_v1 }
 0xa52   :  { %5715 = vmatprep.subr.mxu1 %v9892_v1  ;;  %5794 = vmatpush2.msra.mxu0 %v5660_v20 }
 0xa53   :  { %5716 = vmatpush2.msra.mxu1 %v5662_v51  ;;  %5795 = vmatprep.subr.mxu0 %v9892_v1 }
 0xa54   :  { %5717 = vmatprep.subr.mxu1 %v9892_v1  ;;  %5796 = vmatpush2.msra.mxu0 %v5659_v21 }
 0xa55   :  { %5718 = vmatpush2.msra.mxu1 %v5661_v5  ;;  %5797 = vmatprep.subr.mxu0 %v9892_v1 }
 0xa56   :  { %5719 = vmatprep.subr.mxu1 %v9892_v1  ;;  %5798 = vmatpush2.msra.mxu0 %v5658_v14 }
 0xa57   :  { %5720 = vmatpush2.msra.mxu1 %v5660_v20  ;;  %5799 = vmatprep.subr.mxu0 %v9892_v1  ;;  %v5830_v20 = vld [vmem:[#allocation7 + $0x38] sm:$0xff] }
 0xa58   :  { %5721 = vmatprep.subr.mxu1 %v9892_v1  ;;  %5800 = vmatpush2.msra.mxu0 %v5657_v34 }
 0xa59   :  { %5722 = vmatpush2.msra.mxu1 %v5659_v21  ;;  %5801 = vmatprep.subr.mxu0 %v9892_v1  ;;  %v5829_v21 = vld [vmem:[#allocation7 + $0x30] sm:$0xff] }
 0xa5a   :  { %5723 = vmatprep.subr.mxu1 %v9892_v1  ;;  %5802 = vmatpush2.msra.mxu0 %v5656_v25 }
 0xa5b   :  { %5724 = vmatpush2.msra.mxu1 %v5658_v14  ;;  %5803 = vmatprep.subr.mxu0 %v9892_v1  ;;  %v5828_v14 = vld [vmem:[#allocation7 + $0x28] sm:$0xff] }
 0xa5c   :  { %5725 = vmatprep.subr.mxu1 %v9892_v1  ;;  %5804 = vmatpush2.msra.mxu0 %v5655_v39 }
 0xa5d   :  { %5726 = vmatpush2.msra.mxu1 %v5657_v34  ;;  %5805 = vmatprep.subr.mxu0 %v9892_v1  ;;  %v5827_v34 = vld [vmem:[#allocation7 + $0x20] sm:$0xff] }
 0xa5e   :  { %5727 = vmatprep.subr.mxu1 %v9892_v1  ;;  %5806 = vmatpush2.msra.mxu0 %v5654_v26 }
 0xa5f   :  { %5728 = vmatpush2.msra.mxu1 %v5656_v25  ;;  %6440 = vmatprep.subr.bf16.mxu0 %v9893_v30  ;;  %v5826_v25 = vld [vmem:[#allocation7 + $0x18] sm:$0xff] }
 0xa60   :  { %5729 = vmatprep.subr.mxu1 %v9892_v1 }
 0xa61   :  { %5730 = vmatpush2.msra.mxu1 %v5655_v39  ;;  %v5825_v39 = vld [vmem:[#allocation7 + $0x10] sm:$0xff] }
 0xa62   :  { %5731 = vmatprep.subr.mxu1 %v9892_v1 }
 0xa63   :  { %5732 = vmatpush2.msra.mxu1 %v5654_v26  ;;  %v5824_v26 = vld [vmem:[#allocation7 + $0x8] sm:$0xff] }
 0xa64   :  { %5858 = vmatprep.subr.mxu1 %v5830_v20 }
 0xae7   :  { %v5541_v48 = vpop.f32.mrf.mxu0 }
 0xae9   :  { %v5543_v28 = vpop.f32.mrf.mxu0 }
 0xaeb   :  { %v5545_v12 = vpop.f32.mrf.mxu0 }
 0xaec   :  { %v5584_v2 = vpop.f32.mrf.mxu1 }
 0xaed   :  { %v5585_v13 = vadd.f32 %v5584_v2, %v5541_v48  ;;  %v5547_v59 = vpop.f32.mrf.mxu0  ;;  %v5823_v48 = vld [vmem:[#allocation7] sm:$0xff]  ;;  %v9699_v2 = vld [vmem:[%s12800_s13 + $0x30] sm:$0xff]  }
 0xaee   :  { %v5586_v50 = vpop.f32.mrf.mxu1 }
 0xaef   :  { %v5587_v35 = vadd.f32 %v5586_v50, %v5543_v28  ;;  %v12235_v52 = vadd.f32 %v5585_v13, %v12080_v54  ;;  %v9698_v28 = vld [vmem:[%s12800_s13 + $0x38] sm:$0xff]   ;;  %v9701_v13 = vld [vmem:[%s12800_s13 + $0x20] sm:$0xff]  }
 0xaf0   :  { %v5588_v0 = vpop.f32.mrf.mxu1  ;;  %v9702_v50 = vld [vmem:[%s12800_s13 + $0x18] sm:$0xff]  }
 0xaf1   :  { %v12232_v60 = vadd.f32 %v5587_v35, %v12083_v36  ;;  %v5589_v3 = vadd.f32 %v5588_v0, %v5545_v12  ;;  %v5617_v43 = vmul.f32 %v12235_v52, %v12235_v52  ;;  %v9700_v12 = vld [vmem:[%s12800_s13 + $0x28] sm:$0xff]   ;;  %v9703_v35 = vld [vmem:[%s12800_s13 + $0x10] sm:$0xff]  }
 0xaf2   :  { %v5590_v44 = vpop.f32.mrf.mxu1  ;;  %v9704_v0 = vld [vmem:[%s12800_s13 + $0x8] sm:$0xff]  }
 0xaf3   :  { %v12238_v58 = vadd.f32 %v5589_v3, %v12086_v29  ;;  %v5591_v16 = vadd.f32 %v5590_v44, %v5547_v59  ;;  %v5618_v61 = vmul.f32 %v12232_v60, %v12232_v60  ;;  %v5607_v29 = vsel %vm5606_vm8, %v12232_v60, 0.0  ;;  %v9705_v3 = vld [vmem:[%s12800_s13] sm:$0xff]   ;;  %v9706_v59 = vld [vmem:[%s12800_s13 + $0x68] sm:$0xff]  }
 0xaf4   :  { %v9707_v44 = vld [vmem:[%s12800_s13 + $0x60] sm:$0xff]  }
 0xaf5   :  { %v5598_v36 = vsel %vm5597_vm7, %v12238_v58, 0.0  ;;  %v5619_v22 = vmul.f32 %v12238_v58, %v12238_v58  ;;  %v12247_v54 = vadd.f32 %v5591_v16, %v12089_v40  ;;  %v5629_v40 = vsel %vm5606_vm8, %v5618_v61, 0.0 }
 0xaf6   :  { %v5599_v15 = vadd.f32 %v5598_v36, %v12235_v52 }
 0xaf7   :  { %v5621_v55 = vsel %vm5597_vm7, %v5619_v22, 0.0  ;;  %v5609_v23 = vsel %vm5608_vm9, %v12247_v54, 0.0  ;;  %v5620_v7 = vmul.f32 %v12247_v54, %v12247_v54 }
 0xaf8   :  { %v5600_v45 = vrot.slane %v5599_v15, 4  ;;  %v5622_v8 = vadd.f32 %v5621_v55, %v5617_v43  ;;  %v5610_v19 = vadd.f32 %v5609_v23, %v5607_v29 }
 0xaf9   :  { %v5630_v41 = vsel %vm5608_vm9, %v5620_v7, 0.0  ;;  %v5816_v7 = vld [vmem:[%s12798_s11] sm:$0x1] }
 0xafa   :  { %v5601_v31 = vadd.f32 %v5600_v45, %v5599_v15  ;;  %v5623_v46 = vrot.slane %v5622_v8, 4  ;;  %v5611_v42 = vrot.slane %v5610_v19, 4  ;;  %v5631_v11 = vadd.f32 %v5630_v41, %v5629_v40  ;;  %v5820_v40 = vld [vmem:[%s12799_s12] sm:$0x1] }
 0xafc   :  { %v5602_v24 = vrot.slane %v5601_v31, 2  ;;  %v5624_v49 = vadd.f32 %v5623_v46, %v5622_v8  ;;  %v5612_v37 = vadd.f32 %v5611_v42, %v5610_v19  ;;  %v5632_v38 = vrot.slane %v5631_v11, 4  ;;  %v9709_v46 = vld [vmem:[%s12800_s13 + $0x50] sm:$0xff]   ;;  %v9710_v42 = vld [vmem:[%s12800_s13 + $0x48] sm:$0xff]  }
 0xafe   :  { %v5603_v27 = vadd.f32 %v5602_v24, %v5601_v31  ;;  %v5625_v17 = vrot.slane %v5624_v49, 2  ;;  %v5613_v53 = vrot.slane %v5612_v37, 2  ;;  %v5633_v18 = vadd.f32 %v5632_v38, %v5631_v11  ;;  %v9708_v31 = vld [vmem:[%s12800_s13 + $0x58] sm:$0xff]   ;;  %v9711_v11 = vld [vmem:[%s12800_s13 + $0x40] sm:$0xff]  }
 0xb00   :  { %v5614_v63 = vadd.f32 %v5613_v53, %v5612_v37  ;;  %v5634_v32 = vrot.slane %v5633_v18, 2  ;;  %v5626_v6 = vadd.f32 %v5625_v17, %v5624_v49  ;;  %v5604_v33 = vrot.slane %v5603_v27, 1 }
 0xb02   :  { %v5615_v56 = vrot.slane %v5614_v63, 1  ;;  %v5635_v47 = vadd.f32 %v5634_v32, %v5633_v18  ;;  %v5627_v9 = vrot.slane %v5626_v6, 1  ;;  %v5605_v57 = vadd.f32 %v5604_v33, %v5603_v27 }
 0xb04   :  { %v5616_v10 = vadd.f32 %v5615_v56, %v5614_v63  ;;  %v5636_v62 = vrot.slane %v5635_v47, 1  ;;  %v5628_v5 = vadd.f32 %v5627_v9, %v5626_v6 }
 0xb06   :  { %8615 = vmatprep.mubr.msk.f32.mxu1 %vm5606_vm8, %v5616_v10  ;;  %v5637_v51 = vadd.f32 %v5636_v62, %v5635_v47 }
 0xb07   :  { %5734 = vmatmul.mubr.f32.vlgmr.msra.gmra.mxu1 %v5605_v57 }
 0xb08   :  { %8616 = vmatprep.mubr.msk.f32.mxu0 %vm5606_vm8, %v5637_v51  ;;  %5898 = vmatprep.mubr.f32.mxu1 %v9892_v1 }
 0xb09   :  { %5808 = vmatmul.mubr.f32.vlgmr.msra.gmra.mxu0 %v5628_v5  ;;  %5859 = vmatpush1.msra.mxu1 %v5829_v21  ;;  %v9713_v5 = vld [vmem:[%s12800_s13 + $0xa0] sm:$0xff]  }
 0xb0a   :  { %5860 = vmatprep.subr.mxu1 %v5828_v14  ;;  %6441 = vmatpush1.bf16.msra.mxu0 %v9698_v28  ;;  %v9722_v28 = vld [vmem:[%s12800_s13 + $0xc8] sm:$0xff]  }
 0xb0b   :  { %5861 = vmatpush1.msra.mxu1 %v5827_v34  ;;  %6442 = vmatprep.subr.bf16.mxu0 %v9893_v30 }
 0xb0c   :  { %5862 = vmatprep.subr.mxu1 %v5826_v25 }
 0xb0d   :  { %5863 = vmatpush1.msra.mxu1 %v5825_v39 }
 0xb0e   :  { %5864 = vmatprep.subr.mxu1 %v5824_v26  ;;  %6443 = vmatpush1.bf16.msra.mxu0 %v9699_v2  ;;  %v9723_v2 = vld [vmem:[%s12800_s13 + $0xc0] sm:$0xff]  }
 0xb0f   :  { %5865 = vmatpush1.msra.mxu1 %v5823_v48  ;;  %6444 = vmatprep.subr.bf16.mxu0 %v9893_v30 }
 0xb10   :  { %5932 = vmatprep.subr.mxu1 %v5830_v20  ;;  %v9714_v20 = vld [vmem:[%s12800_s13 + $0x98] sm:$0xff]  }
 0xb12   :  { %6445 = vmatpush1.bf16.msra.mxu0 %v9700_v12  ;;  %v9724_v12 = vld [vmem:[%s12800_s13 + $0xb8] sm:$0xff]  }
 0xb13   :  { %6446 = vmatprep.subr.bf16.mxu0 %v9893_v30 }
 0xb16   :  { %6447 = vmatpush1.bf16.msra.mxu0 %v9701_v13  ;;  %v9725_v13 = vld [vmem:[%s12800_s13 + $0xb0] sm:$0xff]  }
 0xb17   :  { %6448 = vmatprep.subr.bf16.mxu0 %v9893_v30 }
 0xb1a   :  { %6449 = vmatpush1.bf16.msra.mxu0 %v9702_v50 }
 0xb1b   :  { %6450 = vmatprep.subr.bf16.mxu0 %v9893_v30 }
 0xb1e   :  { %6451 = vmatpush1.bf16.msra.mxu0 %v9703_v35 }
 0xb1f   :  { %6452 = vmatprep.subr.bf16.mxu0 %v9893_v30 }
 0xb22   :  { %6453 = vmatpush1.bf16.msra.mxu0 %v9704_v0 }
 0xb23   :  { %6454 = vmatprep.subr.bf16.mxu0 %v9893_v30 }
 0xb26   :  { %6455 = vmatpush1.bf16.msra.mxu0 %v9705_v3 }
 0xb27   :  { %6460 = vmatprep.subr.bf16.mxu0 %v9893_v30 }
 0xb2a   :  { %6461 = vmatpush2.bf16.msra.mxu0 %v9706_v59 }
 0xb2b   :  { %6462 = vmatprep.subr.bf16.mxu0 %v9893_v30 }
 0xb2e   :  { %6463 = vmatpush2.bf16.msra.mxu0 %v9707_v44 }
 0xb2f   :  { %6464 = vmatprep.subr.bf16.mxu0 %v9893_v30 }
 0xb32   :  { %6465 = vmatpush2.bf16.msra.mxu0 %v9708_v31  ;;  %v9731_v31 = vld [vmem:[%s12800_s13 + $0xf0] sm:$0xff]  }
 0xb33   :  { %6466 = vmatprep.subr.bf16.mxu0 %v9893_v30 }
 0xb36   :  { %6467 = vmatpush2.bf16.msra.mxu0 %v9709_v46  ;;  %v9746_v46 = vld [vmem:[%s12800_s13 + $0x158] sm:$0xff]  }
 0xb37   :  { %6468 = vmatprep.subr.bf16.mxu0 %v9893_v30 }
 0xb3a   :  { %6469 = vmatpush2.bf16.msra.mxu0 %v9710_v42  ;;  %v9732_v42 = vld [vmem:[%s12800_s13 + $0xe8] sm:$0xff]  }
 0xb3b   :  { %6470 = vmatprep.subr.bf16.mxu0 %v9893_v30 }
 0xb3e   :  { %6471 = vmatpush2.bf16.msra.mxu0 %v9711_v11  ;;  %v9747_v11 = vld [vmem:[%s12800_s13 + $0x150] sm:$0xff]  }
 0xbc7   :  { %v5735_v16 = vpop.f32.mrf.mxu1 }
 0xbc8   :  { %v5739_v61 = vmul.f32 0.010204081, %v5735_v16 }
 0xbc9   :  { %v5737_v36 = vpop.f32.mrf.mxu1  ;;  %v5809_v22 = vpop.f32.mrf.mxu0 }
 0xbca   :  { %v5814_v43 = vmul.f32 %v5739_v61, %v5739_v61  ;;  %v5813_v15 = vmul.f32 0.010204081, %v5809_v22  ;;  %v6716_v36 = vld [vmem:[#allocation8 + $0xc] sm:$0xf] }
 0xbcb   :  { %v5811_v29 = vpop.f32.mrf.mxu0  ;;  %v9740_v22 = vld [vmem:[%s12800_s13 + $0x188] sm:$0xff]  }
 0xbcc   :  { %v5815_v55 = vsub.f32 %v5813_v15, %v5814_v43  ;;  %v6481_v43 = vld [vmem:[#allocation8 + $0x8] sm:$0xf]  ;;  %v9726_v15 = vld [vmem:[%s12800_s13 + $0x118] sm:$0xff]   ;;  %v9741_v29 = vld [vmem:[%s12800_s13 + $0x180] sm:$0xff]  }
 0xbce   :  { %v5817_v23 = vadd.f32 1e-05, %v5815_v55  ;;  %v9727_v55 = vld [vmem:[%s12800_s13 + $0x110] sm:$0xff]  }
 0xbd0   :  { %9770 = vrsqrt.f32 %v5817_v23  ;;  %v9742_v23 = vld [vmem:[%s12800_s13 + $0x178] sm:$0xff]  }
 0xbdd   :  { %v9771_v45 = vpop.eup %9770 }
 0xbde   :  { %v5819_v8 = vmul.f32 %v9771_v45, %v5816_v7  ;;  %v9728_v7 = vld [vmem:[%s12800_s13 + $0x108] sm:$0xff]   ;;  %v9743_v45 = vld [vmem:[%s12800_s13 + $0x170] sm:$0xff]  }
 0xbe0   :  { %8617 = vmatmul.mubr.msk.f32.vlgmr.msra.gmra.mxu1 %vm634_vm1, %v5819_v8  ;;  %v5821_v19 = vmul.f32 %v5819_v8, %v5739_v61  ;;  %v9729_v8 = vld [vmem:[%s12800_s13 + $0x100] sm:$0xff]  }
 0xbe1   :  { %5933 = vmatpush1.msra.mxu1 %v5829_v21  ;;  %5972 = vmatprep.mubr.f32.mxu1 %v9892_v1  ;;  %v9715_v21 = vld [vmem:[%s12800_s13 + $0x90] sm:$0xff]  }
 0xbe2   :  { %5934 = vmatprep.subr.mxu1 %v5828_v14  ;;  %v5822_v41 = vsub.f32 %v5820_v40, %v5821_v19  ;;  %v9716_v14 = vld [vmem:[%s12800_s13 + $0x88] sm:$0xff]   ;;  %v9730_v40 = vld [vmem:[%s12800_s13 + $0xf8] sm:$0xff]  }
 0xbe3   :  { %5935 = vmatpush1.msra.mxu1 %v5827_v34  ;;  %v9717_v34 = vld [vmem:[%s12800_s13 + $0x80] sm:$0xff]   ;;  %v9744_v19 = vld [vmem:[%s12800_s13 + $0x168] sm:$0xff]  }
 0xbe4   :  { %5936 = vmatprep.subr.mxu1 %v5826_v25  ;;  %v9718_v25 = vld [vmem:[%s12800_s13 + $0x78] sm:$0xff]  }
 0xbe5   :  { %5937 = vmatpush1.msra.mxu1 %v5825_v39  ;;  %v9719_v39 = vld [vmem:[%s12800_s13 + $0x70] sm:$0xff]  }
 0xbe6   :  { %5938 = vmatprep.subr.mxu1 %v5824_v26  ;;  %v9720_v26 = vld [vmem:[%s12800_s13 + $0xd8] sm:$0xff]  }
 0xbe7   :  { %5939 = vmatpush1.msra.mxu1 %v5823_v48  ;;  %v9721_v48 = vld [vmem:[%s12800_s13 + $0xd0] sm:$0xff]  }
 0xbe8   :  { %8618 = vmatmul.mubr.msk.f32.vlgmr.msra.gmra.mxu1 %vm634_vm1, %v5822_v41  ;;  %v9745_v41 = vld [vmem:[%s12800_s13 + $0x160] sm:$0xff]  }
 0xbe9   :  { %6082 = vmatprep.mubr.f32.mxu1 %v9892_v1 }
 0xca0   :  { %v5900_v24 = vpop.f32.mrf.mxu1 }
 0xca1   :  { %v5982_v37 = vrot.slane %v5900_v24, %v11289_v4  ;;  %v9733_v24 = vld [vmem:[%s12800_s13 + $0xe0] sm:$0xff]  }
 0xca2   :  { %v5902_v49 = vpop.f32.mrf.mxu1 }
 0xca3   :  { %v5986_v38 = vrot.slane %v5902_v49, %v11289_v4  ;;  %v5989_v53 = vmul.f32 %v5982_v37, %v12238_v58  ;;  %v5987_v33 = vmul.f32 %v5982_v37, %v12235_v52  ;;  %v6007_v52 = vld [vmem:[#allocation8] sm:$0xf]  ;;  %v6120_v58 = vld [vmem:[#allocation8 + $0x4] sm:$0xf]  ;;  %v9748_v49 = vld [vmem:[%s12800_s13 + $0x1b8] sm:$0xff]  }
 0xca4   :  { %v9734_v37 = vld [vmem:[%s12800_s13 + $0x148] sm:$0xff]  }
 0xca5   :  { %v5988_v63 = vmul.f32 %v5986_v38, %v12232_v60  ;;  %v5990_v32 = vmul.f32 %v5986_v38, %v12247_v54  ;;  %v9712_v54 = vld [vmem:[%s12800_s13 + $0xa8] sm:$0xff]   ;;  %v9735_v38 = vld [vmem:[%s12800_s13 + $0x140] sm:$0xff]  }
 0xca8   :  { %v5974_v27 = vpop.f32.mrf.mxu1 }
 0xca9   :  { %v5994_v17 = vrot.slane %v5974_v27, %v11289_v4  ;;  %v9736_v27 = vld [vmem:[%s12800_s13 + $0x138] sm:$0xff]  }
 0xcaa   :  { %v5976_v18 = vpop.f32.mrf.mxu1 }
 0xcab   :  { %v5998_v6 = vrot.slane %v5976_v18, %v11289_v4  ;;  %v6001_v56 = vadd.f32 %v5994_v17, %v5989_v53  ;;  %v5999_v10 = vadd.f32 %v5994_v17, %v5987_v33  ;;  %v9737_v17 = vld [vmem:[%s12800_s13 + $0x130] sm:$0xff]   ;;  %v9738_v53 = vld [vmem:[%s12800_s13 + $0x128] sm:$0xff]   ;;  %v9739_v18 = vld [vmem:[%s12800_s13 + $0x120] sm:$0xff]  }
 0xcac   :  { %v9752_v33 = vld [vmem:[%s12800_s13 + $0x198] sm:$0xff]  }
 0xcad   :  { %v6000_v47 = vadd.f32 %v5998_v6, %v5988_v63  ;;  %v6002_v9 = vadd.f32 %v5998_v6, %v5990_v32  ;;  %v12337_v57 = vmax.f32 %v6001_v56, 0.0  ;;  %v12345_v60 = vmax.f32 %v5999_v10, 0.0  ;;  %v9749_v63 = vld [vmem:[%s12800_s13 + $0x1b0] sm:$0xff]   ;;  %v9750_v32 = vld [vmem:[%s12800_s13 + $0x1a8] sm:$0xff]   ;;  %v9751_v6 = vld [vmem:[%s12800_s13 + $0x1a0] sm:$0xff]  }
 0xcae   :  { %v9753_v56 = vld [vmem:[%s12800_s13 + $0x190] sm:$0xff]  }
 0xcaf   :  { %v12335_v62 = vmax.f32 %v6002_v9, 0.0  ;;  %v12339_v51 = vmax.f32 %v6000_v47, 0.0 }
 0xcb1   :  { %8619 = vmatprep.subr.msk.mxu1 %vm5597_vm7, %v12335_v62  ;;  %8729 = vmatprep.subr.msk.mxu0 %vm5597_vm7, %v12335_v62 }
 0xcb2   :  { %8620 = vmatpush1.msk.msra.mxu1 %vm5597_vm7, %v12337_v57 }
 0xcb3   :  { %6048 = vmatprep.subr.mxu1 %v12339_v51 }
 0xcb4   :  { %6049 = vmatpush1.msra.mxu1 %v12345_v60 }
 0xcb5   :  { %8621 = vmatmul.mubr.msk.f32.vlgmr.msra.gmra.mxu1 %vm6008_vm10, %v6007_v52  ;;  %8622 = vmatprep.subr.msk.mxu1 %vm5597_vm7, %v12335_v62 }
 0xcb6   :  { %8623 = vmatpush1.msk.msra.mxu1 %vm5597_vm7, %v12337_v57  ;;  %6188 = vmatprep.mubr.f32.mxu1 %v9892_v1 }
 0xcb7   :  { %6154 = vmatprep.subr.mxu1 %v12339_v51 }
 0xcb8   :  { %6155 = vmatpush1.msra.mxu1 %v12345_v60 }
 0xcb9   :  { %8624 = vmatmul.mubr.msk.f32.vlgmr.msra.gmra.mxu1 %vm6008_vm10, %v6120_v58  ;;  %6313 = vmatprep.subr.bf16.mxu1 %v9893_v30 }
 0xcba   :  { %6314 = vmatpush1.bf16.msra.mxu1 %v9712_v54 }
 0xcbb   :  { %6315 = vmatprep.subr.bf16.mxu1 %v9893_v30 }
 0xcbe   :  { %6316 = vmatpush1.bf16.msra.mxu1 %v9713_v5 }
 0xcbf   :  { %6317 = vmatprep.subr.bf16.mxu1 %v9893_v30 }
 0xcc2   :  { %6318 = vmatpush1.bf16.msra.mxu1 %v9714_v20 }
 0xcc3   :  { %6319 = vmatprep.subr.bf16.mxu1 %v9893_v30 }
 0xcc6   :  { %6320 = vmatpush1.bf16.msra.mxu1 %v9715_v21 }
 0xcc7   :  { %6321 = vmatprep.subr.bf16.mxu1 %v9893_v30 }
 0xcca   :  { %6322 = vmatpush1.bf16.msra.mxu1 %v9716_v14 }
 0xccb   :  { %6323 = vmatprep.subr.bf16.mxu1 %v9893_v30 }
 0xcce   :  { %6324 = vmatpush1.bf16.msra.mxu1 %v9717_v34 }
 0xccf   :  { %6325 = vmatprep.subr.bf16.mxu1 %v9893_v30 }
 0xcd2   :  { %6326 = vmatpush1.bf16.msra.mxu1 %v9718_v25 }
 0xcd3   :  { %6327 = vmatprep.subr.bf16.mxu1 %v9893_v30 }
 0xcd6   :  { %6328 = vmatpush1.bf16.msra.mxu1 %v9719_v39 }
 0xcd7   :  { %6333 = vmatprep.subr.bf16.mxu1 %v9893_v30 }
 0xcda   :  { %6334 = vmatpush2.bf16.msra.mxu1 %v9720_v26 }
 0xcdb   :  { %6335 = vmatprep.subr.bf16.mxu1 %v9893_v30 }
 0xcde   :  { %6336 = vmatpush2.bf16.msra.mxu1 %v9721_v48 }
 0xcdf   :  { %6337 = vmatprep.subr.bf16.mxu1 %v9893_v30 }
 0xce2   :  { %6338 = vmatpush2.bf16.msra.mxu1 %v9722_v28 }
 0xce3   :  { %6339 = vmatprep.subr.bf16.mxu1 %v9893_v30 }
 0xce6   :  { %6340 = vmatpush2.bf16.msra.mxu1 %v9723_v2  ;;  %v6951_v2 = vld [vmem:[#allocation8 + $0x10] sm:$0xf] }
 0xce7   :  { %6341 = vmatprep.subr.bf16.mxu1 %v9893_v30 }
 0xcea   :  { %6342 = vmatpush2.bf16.msra.mxu1 %v9724_v12  ;;  %v9754_v12 = vld [vmem:[%s12800_s13 + $0x1f8] sm:$0xff]  }
 0xceb   :  { %6343 = vmatprep.subr.bf16.mxu1 %v9893_v30 }
 0xcee   :  { %6344 = vmatpush2.bf16.msra.mxu1 %v9725_v13  ;;  %v9758_v13 = vld [vmem:[%s12800_s13 + $0x1d8] sm:$0xff]  }
 0xcef   :  { %8683 = vmatprep.subr.msk.mxu1 %vm5597_vm7, %v12335_v62 }
 0xd75   :  { %v6084_v50 = vpop.f32.mrf.mxu1 }
 0xd76   :  { %v6089_v3 = vpack.c.bf16 %v6084_v50, %v6084_v50  ;;  %v9759_v50 = vld [vmem:[%s12800_s13 + $0x1d0] sm:$0xff]  }
 0xd77   :  { %v6086_v35 = vpop.f32.mrf.mxu1 }
 0xd78   :  { %v6090_v0 = vpack.c.bf16 %v6086_v35, %v6086_v35  ;;  %v9760_v35 = vld [vmem:[%s12800_s13 + $0x1c8] sm:$0xff]  }
 0xd79   :  { %v6190_v59 = vpop.f32.mrf.mxu1 }
 0xd7a   :  { %8682 = vmatprep.mubr.msk.bf16.mxu0 %vm5606_vm8, %v6090_v0  ;;  %v6195_v61 = vpack.c.bf16 %v6190_v59, %v6190_v59  ;;  %v9761_v0 = vld [vmem:[%s12800_s13 + $0x1c0] sm:$0xff]  }
 0xd7b   :  { %v6192_v44 = vpop.f32.mrf.mxu1  ;;  %6473 = vmatmul.mubr.bf16.vlgmr.msra.gmra.mxu0 %v6089_v3  ;;  %v9762_v3 = vld [vmem:[%s12800_s13 + $0x228] sm:$0xff]   ;;  %v9763_v59 = vld [vmem:[%s12800_s13 + $0x220] sm:$0xff]  }
 0xd7c   :  { %v6196_v16 = vpack.c.bf16 %v6192_v44, %v6192_v44  ;;  %8730 = vmatpush1.msk.msra.mxu0 %vm5597_vm7, %v12337_v57  ;;  %6784 = vmatprep.mubr.f32.mxu0 %v9892_v1  ;;  %v9764_v44 = vld [vmem:[%s12800_s13 + $0x218] sm:$0xff]  }
 0xd7d   :  { %6750 = vmatprep.subr.mxu0 %v12339_v51 }
 0xd7e   :  { %6751 = vmatpush1.msra.mxu0 %v12345_v60  ;;  %8667 = vmatprep.mubr.msk.bf16.mxu1 %vm5606_vm8, %v6196_v16  ;;  %v9765_v16 = vld [vmem:[%s12800_s13 + $0x210] sm:$0xff]  }
 0xd7f   :  { %6346 = vmatmul.mubr.bf16.vlgmr.msra.gmra.mxu1 %v6195_v61  ;;  %6909 = vmatprep.subr.bf16.mxu0 %v9893_v30  ;;  %v9766_v61 = vld [vmem:[%s12800_s13 + $0x208] sm:$0xff]  }
 0xd80   :  { %8684 = vmatpush1.msk.msra.mxu1 %vm5597_vm7, %v12337_v57  ;;  %6549 = vmatprep.mubr.f32.mxu1 %v9892_v1 }
 0xd81   :  { %6515 = vmatprep.subr.mxu1 %v12339_v51 }
 0xd82   :  { %6516 = vmatpush1.msra.mxu1 %v12345_v60 }
 0xd83   :  { %6674 = vmatprep.subr.bf16.mxu1 %v9893_v30  ;;  %8731 = vmatmul.mubr.msk.f32.vlgmr.msra.gmra.mxu0 %vm6008_vm10, %v6716_v36  ;;  %v9767_v36 = vld [vmem:[%s12800_s13 + $0x200] sm:$0xff]  }
 0xd84   :  { %6910 = vmatpush1.bf16.msra.mxu0 %v9740_v22 }
 0xd85   :  { %6911 = vmatprep.subr.bf16.mxu0 %v9893_v30 }
 0xd87   :  { %8685 = vmatmul.mubr.msk.f32.vlgmr.msra.gmra.mxu1 %vm6008_vm10, %v6481_v43 }
 0xd88   :  { %6675 = vmatpush1.bf16.msra.mxu1 %v9726_v15  ;;  %6912 = vmatpush1.bf16.msra.mxu0 %v9741_v29 }
 0xd89   :  { %6676 = vmatprep.subr.bf16.mxu1 %v9893_v30  ;;  %6913 = vmatprep.subr.bf16.mxu0 %v9893_v30 }
 0xd8c   :  { %6677 = vmatpush1.bf16.msra.mxu1 %v9727_v55  ;;  %6914 = vmatpush1.bf16.msra.mxu0 %v9742_v23 }
 0xd8d   :  { %6678 = vmatprep.subr.bf16.mxu1 %v9893_v30  ;;  %6915 = vmatprep.subr.bf16.mxu0 %v9893_v30 }
 0xd90   :  { %6679 = vmatpush1.bf16.msra.mxu1 %v9728_v7  ;;  %6916 = vmatpush1.bf16.msra.mxu0 %v9743_v45 }
 0xd91   :  { %6680 = vmatprep.subr.bf16.mxu1 %v9893_v30  ;;  %6917 = vmatprep.subr.bf16.mxu0 %v9893_v30 }
 0xd94   :  { %6681 = vmatpush1.bf16.msra.mxu1 %v9729_v8  ;;  %6918 = vmatpush1.bf16.msra.mxu0 %v9744_v19 }
 0xd95   :  { %6682 = vmatprep.subr.bf16.mxu1 %v9893_v30  ;;  %6919 = vmatprep.subr.bf16.mxu0 %v9893_v30 }
 0xd98   :  { %6683 = vmatpush1.bf16.msra.mxu1 %v9730_v40  ;;  %6920 = vmatpush1.bf16.msra.mxu0 %v9745_v41 }
 0xd99   :  { %6684 = vmatprep.subr.bf16.mxu1 %v9893_v30  ;;  %6921 = vmatprep.subr.bf16.mxu0 %v9893_v30 }
 0xd9c   :  { %6685 = vmatpush1.bf16.msra.mxu1 %v9731_v31  ;;  %6922 = vmatpush1.bf16.msra.mxu0 %v9746_v46  ;;  %v7208_v46 = vld [vmem:[%s12802_s15 + $0x38] sm:$0xff] }
 0xd9d   :  { %6686 = vmatprep.subr.bf16.mxu1 %v9893_v30  ;;  %6923 = vmatprep.subr.bf16.mxu0 %v9893_v30 }
 0xda0   :  { %6687 = vmatpush1.bf16.msra.mxu1 %v9732_v42  ;;  %6924 = vmatpush1.bf16.msra.mxu0 %v9747_v11  ;;  %v7207_v42 = vld [vmem:[%s12802_s15 + $0x30] sm:$0xff]  ;;  %v7206_v11 = vld [vmem:[%s12802_s15 + $0x28] sm:$0xff] }
 0xda1   :  { %6688 = vmatprep.subr.bf16.mxu1 %v9893_v30  ;;  %6929 = vmatprep.subr.bf16.mxu0 %v9893_v30 }
 0xda4   :  { %6689 = vmatpush1.bf16.msra.mxu1 %v9733_v24  ;;  %6930 = vmatpush2.bf16.msra.mxu0 %v9748_v49  ;;  %v7205_v24 = vld [vmem:[%s12802_s15 + $0x20] sm:$0xff]  ;;  %v7204_v49 = vld [vmem:[%s12802_s15 + $0x18] sm:$0xff] }
 0xda5   :  { %6694 = vmatprep.subr.bf16.mxu1 %v9893_v30  ;;  %6931 = vmatprep.subr.bf16.mxu0 %v9893_v30 }
 0xda8   :  { %6695 = vmatpush2.bf16.msra.mxu1 %v9734_v37  ;;  %6932 = vmatpush2.bf16.msra.mxu0 %v9749_v63  ;;  %v7203_v37 = vld [vmem:[%s12802_s15 + $0x10] sm:$0xff] }
 0xda9   :  { %6696 = vmatprep.subr.bf16.mxu1 %v9893_v30  ;;  %6933 = vmatprep.subr.bf16.mxu0 %v9893_v30 }
 0xdac   :  { %6697 = vmatpush2.bf16.msra.mxu1 %v9735_v38  ;;  %6934 = vmatpush2.bf16.msra.mxu0 %v9750_v32  ;;  %v7202_v38 = vld [vmem:[%s12802_s15 + $0x8] sm:$0xff] }
 0xdad   :  { %6698 = vmatprep.subr.bf16.mxu1 %v9893_v30  ;;  %6935 = vmatprep.subr.bf16.mxu0 %v9893_v30 }
 0xdb0   :  { %6699 = vmatpush2.bf16.msra.mxu1 %v9736_v27  ;;  %6936 = vmatpush2.bf16.msra.mxu0 %v9751_v6  ;;  %v7201_v27 = vld [vmem:[%s12802_s15] sm:$0xff] }
 0xdb1   :  { %6700 = vmatprep.subr.bf16.mxu1 %v9893_v30  ;;  %6937 = vmatprep.subr.bf16.mxu0 %v9893_v30 }
 0xdb4   :  { %6701 = vmatpush2.bf16.msra.mxu1 %v9737_v17  ;;  %6938 = vmatpush2.bf16.msra.mxu0 %v9752_v33 }
 0xdb5   :  { %6702 = vmatprep.subr.bf16.mxu1 %v9893_v30  ;;  %6939 = vmatprep.subr.bf16.mxu0 %v9893_v30 }
 0xdb8   :  { %6703 = vmatpush2.bf16.msra.mxu1 %v9738_v53  ;;  %6940 = vmatpush2.bf16.msra.mxu0 %v9753_v56 }
 0xdb9   :  { %6704 = vmatprep.subr.bf16.mxu1 %v9893_v30  ;;  %9105 = vmatprep.subr.mxu0 %v9892_v1 }
 0xdbc   :  { %6705 = vmatpush2.bf16.msra.mxu1 %v9739_v18 }
 0xdbd   :  { %8775 = vmatprep.subr.msk.mxu1 %vm5597_vm7, %v12335_v62 }
 0xe3b   :  { %v6474_v47 = vpop.f32.mrf.mxu0 }
 0xe3d   :  { %v6476_v9 = vpop.f32.mrf.mxu0 }
 0xe3f   :  { %v6347_v10 = vpop.f32.mrf.mxu1  ;;  %v6477_v62 = vpop.f32.mrf.mxu0 }
 0xe40   :  { %v12547_v52 = vadd.f32 %v6474_v47, %v6347_v10 }
 0xe41   :  { %v6349_v58 = vpop.f32.mrf.mxu1  ;;  %v6478_v54 = vpop.f32.mrf.mxu0 }
 0xe43   :  { %v6350_v5 = vpop.f32.mrf.mxu1  ;;  %v6786_v20 = vpop.f32.mrf.mxu0 }
 0xe44   :  { %v6791_v14 = vpack.c.bf16 %v6786_v20, %v6786_v20 }
 0xe45   :  { %v6351_v21 = vpop.f32.mrf.mxu1  ;;  %v6788_v34 = vpop.f32.mrf.mxu0 }
 0xe46   :  { %v6792_v25 = vpack.c.bf16 %v6788_v34, %v6788_v34 }
 0xe47   :  { %v6551_v39 = vpop.f32.mrf.mxu1 }
 0xe48   :  { %8774 = vmatprep.mubr.msk.bf16.mxu0 %vm5606_vm8, %v6792_v25  ;;  %v6556_v28 = vpack.c.bf16 %v6551_v39, %v6551_v39  ;;  %v7370_v25 = vld [vmem:[%s12803_s16 + $0x18] sm:$0xff]  ;;  %v7369_v39 = vld [vmem:[%s12803_s16 + $0x10] sm:$0xff] }
 0xe49   :  { %v6553_v26 = vpop.f32.mrf.mxu1  ;;  %6942 = vmatmul.mubr.bf16.vlgmr.msra.gmra.mxu0 %v6791_v14 }
 0xe4a   :  { %v6557_v48 = vpack.c.bf16 %v6553_v26, %v6553_v26  ;;  %9121 = vmatprep.mubr.msk.f32.mxu0 %vm9894_vm4, %v9892_v1  ;;  %9106 = vmatpush3.msra.mxu0 %v7208_v46  ;;  %v7368_v26 = vld [vmem:[%s12803_s16 + $0x8] sm:$0xff] }
 0xe4b   :  { %9107 = vmatprep.subr.mxu0 %v9892_v1 }
 0xe4c   :  { %8728 = vmatprep.mubr.msk.bf16.mxu1 %vm5606_vm8, %v6557_v48  ;;  %9108 = vmatpush3.msra.mxu0 %v7207_v42  ;;  %v7367_v48 = vld [vmem:[%s12803_s16] sm:$0xff] }
 0xe4d   :  { %6707 = vmatmul.mubr.bf16.vlgmr.msra.gmra.mxu1 %v6556_v28  ;;  %9109 = vmatprep.subr.mxu0 %v9892_v1 }
 0xe4e   :  { %8776 = vmatpush1.msk.msra.mxu1 %vm5597_vm7, %v12337_v57  ;;  %7019 = vmatprep.mubr.f32.mxu1 %v9892_v1  ;;  %v9755_v57 = vld [vmem:[%s12800_s13 + $0x1f0] sm:$0xff]  }
 0xe4f   :  { %6985 = vmatprep.subr.mxu1 %v12339_v51  ;;  %v9756_v51 = vld [vmem:[%s12800_s13 + $0x1e8] sm:$0xff]   ;;  %9110 = vmatpush3.msra.mxu0 %v7206_v11 }
 0xe50   :  { %6986 = vmatpush1.msra.mxu1 %v12345_v60  ;;  %v9757_v60 = vld [vmem:[%s12800_s13 + $0x1e0] sm:$0xff]   ;;  %9111 = vmatprep.subr.mxu0 %v9892_v1 }
 0xe51   :  { %7144 = vmatprep.subr.bf16.mxu1 %v9893_v30  ;;  %9112 = vmatpush3.msra.mxu0 %v7205_v24 }
 0xe52   :  { %9113 = vmatprep.subr.mxu0 %v9892_v1 }
 0xe53   :  { %9114 = vmatpush3.msra.mxu0 %v7204_v49 }
 0xe54   :  { %9115 = vmatprep.subr.mxu0 %v9892_v1 }
 0xe55   :  { %8777 = vmatmul.mubr.msk.f32.vlgmr.msra.gmra.mxu1 %vm6008_vm10, %v6951_v2  ;;  %9116 = vmatpush3.msra.mxu0 %v7203_v37 }
 0xe56   :  { %7145 = vmatpush1.bf16.msra.mxu1 %v9754_v12  ;;  %9117 = vmatprep.subr.mxu0 %v9892_v1 }
 0xe57   :  { %7146 = vmatprep.subr.bf16.mxu1 %v9893_v30  ;;  %9118 = vmatpush3.msra.mxu0 %v7202_v38 }
 0xe58   :  { %9119 = vmatprep.subr.mxu0 %v9892_v1 }
 0xe59   :  { %9120 = vmatpush3.msra.mxu0 %v7201_v27 }
 0xe5a   :  { %7147 = vmatpush1.bf16.msra.mxu1 %v9755_v57  ;;  %9124 = vmatprep.subr.mxu0 %v9892_v1 }
 0xe5b   :  { %7148 = vmatprep.subr.bf16.mxu1 %v9893_v30 }
 0xe5e   :  { %7149 = vmatpush1.bf16.msra.mxu1 %v9756_v51 }
 0xe5f   :  { %7150 = vmatprep.subr.bf16.mxu1 %v9893_v30 }
 0xe62   :  { %7151 = vmatpush1.bf16.msra.mxu1 %v9757_v60 }
 0xe63   :  { %7152 = vmatprep.subr.bf16.mxu1 %v9893_v30 }
 0xe66   :  { %7153 = vmatpush1.bf16.msra.mxu1 %v9758_v13 }
 0xe67   :  { %7154 = vmatprep.subr.bf16.mxu1 %v9893_v30 }
 0xe6a   :  { %7155 = vmatpush1.bf16.msra.mxu1 %v9759_v50 }
 0xe6b   :  { %7156 = vmatprep.subr.bf16.mxu1 %v9893_v30 }
 0xe6e   :  { %7157 = vmatpush1.bf16.msra.mxu1 %v9760_v35 }
 0xe6f   :  { %7158 = vmatprep.subr.bf16.mxu1 %v9893_v30 }
 0xe72   :  { %7159 = vmatpush1.bf16.msra.mxu1 %v9761_v0  ;;  %v7360_v0 = vld [vmem:[%s12804_s17] sm:$0x1] }
 0xe73   :  { %7164 = vmatprep.subr.bf16.mxu1 %v9893_v30 }
 0xe76   :  { %7165 = vmatpush2.bf16.msra.mxu1 %v9762_v3 }
 0xe77   :  { %7166 = vmatprep.subr.bf16.mxu1 %v9893_v30 }
 0xe7a   :  { %7167 = vmatpush2.bf16.msra.mxu1 %v9763_v59 }
 0xe7b   :  { %7168 = vmatprep.subr.bf16.mxu1 %v9893_v30 }
 0xe7e   :  { %7169 = vmatpush2.bf16.msra.mxu1 %v9764_v44  ;;  %v7364_v44 = vld [vmem:[%s12805_s18] sm:$0x1] }
 0xe7f   :  { %7170 = vmatprep.subr.bf16.mxu1 %v9893_v30 }
 0xe82   :  { %7171 = vmatpush2.bf16.msra.mxu1 %v9765_v16 }
 0xe83   :  { %7172 = vmatprep.subr.bf16.mxu1 %v9893_v30 }
 0xe86   :  { %7173 = vmatpush2.bf16.msra.mxu1 %v9766_v61 }
 0xe87   :  { %7174 = vmatprep.subr.bf16.mxu1 %v9893_v30 }
 0xe8a   :  { %7175 = vmatpush2.bf16.msra.mxu1 %v9767_v36 }
 0xe8b   :  { %9154 = vmatprep.subr.mxu1 %v9892_v1 }
 0xf09   :  { %v6943_v22 = vpop.f32.mrf.mxu0 }
 0xf0b   :  { %v6945_v43 = vpop.f32.mrf.mxu0 }
 0xf0d   :  { %v6708_v15 = vpop.f32.mrf.mxu1  ;;  %v6946_v29 = vpop.f32.mrf.mxu0 }
 0xf0e   :  { %v6714_v55 = vadd.f32 %v6708_v15, %v12547_v52 }
 0xf0f   :  { %v6710_v23 = vpop.f32.mrf.mxu1  ;;  %v6947_v7 = vpop.f32.mrf.mxu0 }
 0xf10   :  { %v6949_v45 = vadd.f32 %v6943_v22, %v6714_v55 }
 0xf11   :  { %v6711_v8 = vpop.f32.mrf.mxu1 }
 0xf12   :  { %v7528_v8 = vld [vmem:[%s12806_s19] sm:$0x3] }
 0xf13   :  { %v6712_v19 = vpop.f32.mrf.mxu1 }
 0xf14   :  { %v8827_v19 = vld [vmem:[%s12806_s19 + $0x2] sm:$0x3] }
 0xf15   :  { %v7021_v40 = vpop.f32.mrf.mxu1 }
 0xf16   :  { %v7026_v31 = vpack.c.bf16 %v7021_v40, %v7021_v40  ;;  %v7613_v40 = vld [vmem:[%s12807_s20 + $0x38] sm:$0xff] }
 0xf17   :  { %v7023_v30 = vpop.f32.mrf.mxu1 }
 0xf18   :  { %v7027_v41 = vpack.c.bf16 %v7023_v30, %v7023_v30  ;;  %v7695_v30 = vld [vmem:[%s12807_s20 + $0x70] sm:$0xff] }
 0xf1a   :  { %8820 = vmatprep.mubr.msk.bf16.mxu1 %vm5606_vm8, %v7027_v41  ;;  %v7612_v41 = vld [vmem:[%s12807_s20 + $0x30] sm:$0xff] }
 0xf1b   :  { %7177 = vmatmul.mubr.bf16.vlgmr.msra.gmra.mxu1 %v7026_v31  ;;  %v7694_v31 = vld [vmem:[%s12807_s20 + $0x68] sm:$0xff] }
 0xf1c   :  { %9162 = vmatprep.mubr.msk.f32.mxu1 %vm9894_vm4, %v9892_v1  ;;  %9155 = vmatpush3.msra.mxu1 %v7370_v25 }
 0xf1d   :  { %9156 = vmatprep.subr.mxu1 %v9892_v1 }
 0xf1e   :  { %9157 = vmatpush3.msra.mxu1 %v7369_v39 }
 0xf1f   :  { %9158 = vmatprep.subr.mxu1 %v9892_v1 }
 0xf20   :  { %9159 = vmatpush3.msra.mxu1 %v7368_v26 }
 0xf21   :  { %9160 = vmatprep.subr.mxu1 %v9892_v1 }
 0xf22   :  { %9161 = vmatpush3.msra.mxu1 %v7367_v48 }
 0xf23   :  { %9170 = vmatprep.subr.mxu1 %v9892_v1 }
 0xfdb   :  { %v7178_v17 = vpop.f32.mrf.mxu1 }
 0xfdc   :  { %v12652_v53 = vadd.f32 %v7178_v17, %v6949_v45  ;;  %v7607_v17 = vld [vmem:[%s12807_s20 + $0x8] sm:$0xff] }
 0xfdd   :  { %v7180_v18 = vpop.f32.mrf.mxu1 }
 0xfde   :  { %v7186_v63 = vsel %vm7185_vm11, %v12652_v53, 0.0  ;;  %v7193_v32 = vmul.f32 %v12652_v53, %v12652_v53  ;;  %v7606_v18 = vld [vmem:[%s12807_s20] sm:$0xff] }
 0xfdf   :  { %v7187_v6 = vrot.slane %v7186_v63, 4  ;;  %v7181_v33 = vpop.f32.mrf.mxu1 }
 0xfe0   :  { %v7194_v9 = vsel %vm7185_vm11, %v7193_v32, 0.0 }
 0xfe1   :  { %v7188_v56 = vadd.f32 %v7187_v6, %v7186_v63  ;;  %v7182_v47 = vpop.f32.mrf.mxu1  ;;  %v7195_v52 = vrot.slane %v7194_v9, 4 }
 0xfe2   :  { %v8832_v47 = vld [vmem:[#allocation2] ss:$0 sm:$0xff] }
 0xfe3   :  { %v7189_v10 = vrot.slane %v7188_v56, 2  ;;  %v7196_v5 = vadd.f32 %v7195_v52, %v7194_v9 }
 0xfe5   :  { %v7190_v62 = vadd.f32 %v7189_v10, %v7188_v56  ;;  %v7197_v20 = vrot.slane %v7196_v5, 2 }
 0xfe7   :  { %v7191_v58 = vrot.slane %v7190_v62, 1  ;;  %v7198_v21 = vadd.f32 %v7197_v20, %v7196_v5 }
 0xfe9   :  { %v7192_v54 = vadd.f32 %v7191_v58, %v7190_v62  ;;  %v7199_v14 = vrot.slane %v7198_v21, 1 }
 0xfeb   :  { %9122 = vmatmul.mubr.msk.f32.vlgmr.msra.gmra.mxu0 %vm7209_vm12, %v7192_v54  ;;  %v7200_v34 = vadd.f32 %v7199_v14, %v7198_v21 }
 0xfec   :  { %9125 = vmatpush3.msra.mxu0 %v7208_v46  ;;  %9140 = vmatprep.mubr.msk.f32.mxu0 %vm9894_vm4, %v9892_v1  ;;  %v7611_v46 = vld [vmem:[%s12807_s20 + $0x28] sm:$0xff] }
 0xfed   :  { %9126 = vmatprep.subr.mxu0 %v9892_v1 }
 0xfee   :  { %9127 = vmatpush3.msra.mxu0 %v7207_v42  ;;  %v7693_v42 = vld [vmem:[%s12807_s20 + $0x60] sm:$0xff] }
 0xfef   :  { %9128 = vmatprep.subr.mxu0 %v9892_v1 }
 0xff0   :  { %9129 = vmatpush3.msra.mxu0 %v7206_v11  ;;  %v7610_v11 = vld [vmem:[%s12807_s20 + $0x20] sm:$0xff] }
 0xff1   :  { %9130 = vmatprep.subr.mxu0 %v9892_v1 }
 0xff2   :  { %9131 = vmatpush3.msra.mxu0 %v7205_v24  ;;  %v7692_v24 = vld [vmem:[%s12807_s20 + $0x58] sm:$0xff] }
 0xff3   :  { %9132 = vmatprep.subr.mxu0 %v9892_v1 }
 0xff4   :  { %9133 = vmatpush3.msra.mxu0 %v7204_v49  ;;  %v7609_v49 = vld [vmem:[%s12807_s20 + $0x18] sm:$0xff] }
 0xff5   :  { %9134 = vmatprep.subr.mxu0 %v9892_v1 }
 0xff6   :  { %9135 = vmatpush3.msra.mxu0 %v7203_v37  ;;  %v7691_v37 = vld [vmem:[%s12807_s20 + $0x50] sm:$0xff] }
 0xff7   :  { %9136 = vmatprep.subr.mxu0 %v9892_v1 }
 0xff8   :  { %9137 = vmatpush3.msra.mxu0 %v7202_v38  ;;  %v7608_v38 = vld [vmem:[%s12807_s20 + $0x10] sm:$0xff] }
 0xff9   :  { %9138 = vmatprep.subr.mxu0 %v9892_v1 }
 0xffa   :  { %9139 = vmatpush3.msra.mxu0 %v7201_v27  ;;  %v7690_v27 = vld [vmem:[%s12807_s20 + $0x48] sm:$0xff] }
 0xffb   :  { %9141 = vmatmul.mubr.msk.f32.vlgmr.msra.gmra.mxu0 %vm7209_vm12, %v7200_v34  ;;  %9143 = vmatprep.subr.mxu0 %v9892_v1 }
 0xffc   :  { %9151 = vmatprep.mubr.msk.f32.mxu0 %vm9894_vm4, %v9892_v1  ;;  %9144 = vmatpush3.msra.mxu0 %v7370_v25 }
 0xffd   :  { %9145 = vmatprep.subr.mxu0 %v9892_v1 }
 0xffe   :  { %9146 = vmatpush3.msra.mxu0 %v7369_v39 }
 0xfff   :  { %9147 = vmatprep.subr.mxu0 %v9892_v1 }
0x1000   :  { %9148 = vmatpush3.msra.mxu0 %v7368_v26 }
0x1001   :  { %9149 = vmatprep.subr.mxu0 %v9892_v1 }
0x1002   :  { %9150 = vmatpush3.msra.mxu0 %v7367_v48 }
0x1003   :  { %9165 = vmatprep.subr.mxu0 %v9892_v1 }
0x10ab   :  { %v7279_v28 = vpop.f32.mrf.mxu0 }
0x10ac   :  { %v7283_v12 = vmul.f32 0.125, %v7279_v28 }
0x10ad   :  { %v9123_v2 = vpop.f32.mrf.mxu0 }
0x10ae   :  { %v7358_v51 = vmul.f32 %v7283_v12, %v7283_v12 }
0x10bb   :  { %v7353_v57 = vpop.f32.mrf.mxu0 }
0x10bc   :  { %v7357_v60 = vmul.f32 0.125, %v7353_v57 }
0x10bd   :  { %v9142_v13 = vpop.f32.mrf.mxu0 }
0x10be   :  { %v7359_v50 = vsub.f32 %v7357_v60, %v7358_v51 }
0x10c0   :  { %v7361_v35 = vadd.f32 1e-05, %v7359_v50 }
0x10c2   :  { %9772 = vrsqrt.f32 %v7361_v35 }
0x10cf   :  { %v9773_v3 = vpop.eup %9772 }
0x10d0   :  { %v7363_v59 = vmul.f32 %v9773_v3, %v7360_v0 }
0x10d2   :  { %9152 = vmatmul.mubr.msk.f32.vlgmr.msra.gmra.mxu0 %vm634_vm1, %v7363_v59  ;;  %v7365_v16 = vmul.f32 %v7363_v59, %v7283_v12 }
0x10d3   :  { %9167 = vmatprep.mubr.msk.f32.mxu0 %vm9894_vm4, %v9892_v1 }
0x10d4   :  { %v7366_v61 = vsub.f32 %v7364_v44, %v7365_v16 }
0x10d6   :  { %9163 = vmatmul.mubr.msk.f32.vlgmr.msra.gmra.mxu1 %vm634_vm1, %v7366_v61 }
0x10d7   :  { %9172 = vmatprep.mubr.msk.f32.mxu1 %vm9894_vm4, %v9892_v1 }
0x1192   :  { %v7440_v36 = vpop.f32.mrf.mxu0 }
0x1193   :  { %v7520_v22 = vrot.slane %v7440_v36, %v11289_v4 }
0x1194   :  { %v9153_v43 = vpop.f32.mrf.mxu0 }
0x1195   :  { %v7521_v29 = vmul.f32 %v7520_v22, %v12652_v53  ;;  %v7689_v53 = vld [vmem:[%s12807_s20 + $0x40] sm:$0xff] }
0x1196   :  { %v7513_v15 = vpop.f32.mrf.mxu1 }
0x1197   :  { %v7525_v55 = vrot.slane %v7513_v15, %v11289_v4  ;;  %v7696_v4 = vld [vmem:[%s12807_s20 + $0x78] sm:$0xff] }
0x1198   :  { %v9164_v23 = vpop.f32.mrf.mxu1 }
0x1199   :  { %v7526_v7 = vadd.f32 %v7525_v55, %v7521_v29 }
0x119b   :  { %v7527_v45 = vmax.f32 %v7526_v7, 0.0 }
0x119d   :  { %9166 = vmatpush3.msk.msra.mxu0 %vm2442_vm2, %v7527_v45  ;;  %9171 = vmatpush3.msk.msra.mxu1 %vm2442_vm2, %v7527_v45 }
0x119e   :  { %9168 = vmatmul.mubr.msk.f32.vlgmr.msra.gmra.mxu0 %vm7529_vm13, %v7528_v8  ;;  %9173 = vmatmul.mubr.msk.f32.vlgmr.msra.gmra.mxu1 %vm7529_vm13, %v8827_v19 }
0x119f   :  { %9175 = vmatprep.subr.mxu0 %v9892_v1  ;;  %9194 = vmatprep.subr.mxu1 %v9892_v1 }
0x11a0   :  { %9176 = vmatpush3.msra.mxu0 %v7696_v4  ;;  %9195 = vmatpush3.msra.mxu1 %v7613_v40 }
0x11a1   :  { %9177 = vmatprep.subr.mxu0 %v9892_v1  ;;  %9196 = vmatprep.subr.mxu1 %v9892_v1 }
0x11a2   :  { %9178 = vmatpush3.msra.mxu0 %v7695_v30  ;;  %9197 = vmatpush3.msra.mxu1 %v7612_v41 }
0x11a3   :  { %9179 = vmatprep.subr.mxu0 %v9892_v1  ;;  %9198 = vmatprep.subr.mxu1 %v9892_v1 }
0x11a4   :  { %9180 = vmatpush3.msra.mxu0 %v7694_v31  ;;  %9199 = vmatpush3.msra.mxu1 %v7611_v46 }
0x11a5   :  { %9181 = vmatprep.subr.mxu0 %v9892_v1  ;;  %9200 = vmatprep.subr.mxu1 %v9892_v1 }
0x11a6   :  { %9182 = vmatpush3.msra.mxu0 %v7693_v42  ;;  %9201 = vmatpush3.msra.mxu1 %v7610_v11 }
0x11a7   :  { %9183 = vmatprep.subr.mxu0 %v9892_v1  ;;  %9202 = vmatprep.subr.mxu1 %v9892_v1 }
0x11a8   :  { %9184 = vmatpush3.msra.mxu0 %v7692_v24  ;;  %9203 = vmatpush3.msra.mxu1 %v7609_v49 }
0x11a9   :  { %9185 = vmatprep.subr.mxu0 %v9892_v1  ;;  %9204 = vmatprep.subr.mxu1 %v9892_v1 }
0x11aa   :  { %9186 = vmatpush3.msra.mxu0 %v7691_v37  ;;  %9205 = vmatpush3.msra.mxu1 %v7608_v38 }
0x11ab   :  { %9187 = vmatprep.subr.mxu0 %v9892_v1  ;;  %9206 = vmatprep.subr.mxu1 %v9892_v1 }
0x11ac   :  { %9188 = vmatpush3.msra.mxu0 %v7690_v27  ;;  %9207 = vmatpush3.msra.mxu1 %v7607_v17 }
0x11ad   :  { %9189 = vmatprep.subr.mxu0 %v9892_v1  ;;  %9208 = vmatprep.subr.mxu1 %v9892_v1 }
0x11ae   :  { %9191 = vmatprep.mubr.msk.f32.mxu0 %vm9894_vm4, %v9892_v1  ;;  %9210 = vmatprep.mubr.msk.f32.mxu1 %vm9894_vm4, %v9892_v1 }
0x11af   :  { %9190 = vmatpush3.msra.mxu0 %v7689_v53  ;;  %9209 = vmatpush3.msra.mxu1 %v7606_v18 }
0x125e   :  { %v7602_v63 = vpop.f32.mrf.mxu0  ;;  %v7685_v32 = vpop.f32.mrf.mxu1 }
0x125f   :  { %9192 = vmatmul.mubr.msk.f32.vlgmr.msra.gmra.mxu0 %vm7209_vm12, %v7685_v32  ;;  %9211 = vmatmul.mubr.msk.f32.vlgmr.msra.gmra.mxu1 %vm7209_vm12, %v7602_v63 }
0x1260   :  { %v9169_v6 = vpop.f32.mrf.mxu0  ;;  %v9174_v33 = vpop.f32.mrf.mxu1 }
0x131f   :  { %v7766_v56 = vpop.f32.mrf.mxu0  ;;  %v7839_v1 = vpop.f32.mrf.mxu1 }
0x1320   :  { %v7840_v9 = vadd.f32 %v7839_v1, %v7766_v56 }
0x1321   :  { %v9193_v10 = vpop.f32.mrf.mxu0  ;;  %v9212_v62 = vpop.f32.mrf.mxu1 }
0x1322   :  { %v7850_v52 = vadd.f32 %v8832_v47, %v7840_v9 }
0x1324   :  { %7852 = vst.msk [vmem:[%s12809_s22] sm:$0x3] %vm7851_vm14, %v7850_v52 }
0x1325   :  { %7857 = vsyncpa [#allocation4], 1 }
0x1326   :  { %7858 = vsyncpa [#allocation6], 1 }
0x1327   :  { %7859 = vsyncpa [#allocation9], 1 }

</bundles_post_ra>
